<compile_context>
chip_gen: v6e
topology: v6e:2x2x1
jax: 0.10.0
libtpu: 0.0.40
codegen_flags: <defaults>
</compile_context>

<pallas_src>
import functools

import jax
import jax.numpy as jnp
from jax.experimental import pallas as pl
from jax.experimental.pallas import tpu as pltpu

LATENT = 32
HEAD_LANES = 128      # lane-dense fused [mean | log_var | zeros] head width


def _round_up(n, m):
    return ((n + m - 1) // m) * m


def _lrelu(y):
    # LeakyReLU(0.2) as a single max (identical to where(y>0, y, 0.2*y)).
    return jnp.maximum(y, 0.2 * y)


def vae_kernel(
    # inputs
    x_ref, eps_ref,
    ew0, eb0, ew1, eb1, ew2, eb2, ew3, eb3, ew4, eb4,   # encoder
    hw, hb,                                             # fused lane-dense head
    dw0, db0, dw1, db1, dw2, db2, dw3, db3, dw4, db4,   # decoder
    # outputs
    xhat_ref, mv_ref,
    *, act_dtype,
):
    def layer(h, w_ref, b_ref):
        # bf16 x bf16 -> f32 MXU accumulation; bias add in f32; activation
        # chain in act_dtype (bf16 on v6e/v7x, f32 on v5e).
        acc = jnp.dot(h.astype(w_ref.dtype), w_ref[...],
                      preferred_element_type=jnp.float32)
        y = (acc + b_ref[...].astype(jnp.float32)).astype(act_dtype)
        return _lrelu(y)

    def linear_f32(h, w_ref, b_ref):
        acc = jnp.dot(h.astype(w_ref.dtype), w_ref[...],
                      preferred_element_type=jnp.float32)
        return acc + b_ref[...].astype(jnp.float32)

    # ---- encoder: 5 x (Linear + LeakyReLU(0.2)) ----
    h = x_ref[...]
    h = layer(h, ew0, eb0)    # seq_pad -> 256
    h = layer(h, ew1, eb1)    # 256 -> 512
    h = layer(h, ew2, eb2)    # 512 -> 512
    h = layer(h, ew3, eb3)    # 512 -> 256
    h = layer(h, ew4, eb4)    # 256 -> 128

    # ---- fused lane-dense head: 128 -> 128, lanes = [mean | log_var | 0] ----
    mv = linear_f32(h, hw, hb)               # (bt, 128) f32
    mv_ref[...] = mv.astype(mv_ref.dtype)

    # ---- reparameterization fused across lanes:
    #   eps128 = [1 x32 | eps x32 | 0 x64]  =>  z128 = mv * eps128
    #          = [mean | log_var*eps | 0]
    #   dw0 is stacked [W; W; 0] so z128 @ dw0 == (mean + log_var*eps) @ W.
    #   (Module semantics: z = mean + log_var*eps — NO exp(0.5*log_var).)
    z = mv * eps_ref[...].astype(jnp.float32)

    # ---- decoder: 4 x (Linear + LeakyReLU) + final Linear ----
    d = layer(z, dw0, db0)    # 128 (= stacked 2x32) -> 128
    d = layer(d, dw1, db1)    # 128 -> 256
    d = layer(d, dw2, db2)    # 256 -> 512
    d = layer(d, dw3, db3)    # 512 -> 256
    xhat = linear_f32(d, dw4, db4)           # 256 -> seq_pad (no activation)

    xhat_ref[...] = xhat.astype(xhat_ref.dtype)


def init_params(key, seq_len):
    """Deterministic synthetic init, PyTorch-Linear-style U(-1/sqrt(in), 1/sqrt(in)).

    Weights stored as (in_features, out_features); biases as (1, out_features).
    Layout matches the PyTorch module (separate mean/logvar heads), f32.
    """
    dims = [
        # encoder
        (seq_len, 256), (256, 512), (512, 512), (512, 256), (256, 128),
        # mean / logvar heads
        (128, LATENT), (128, LATENT),
        # decoder
        (LATENT, 128), (128, 256), (256, 512), (512, 256), (256, seq_len),
    ]
    params = []
    for (fan_in, fan_out) in dims:
        key, kw, kb = jax.random.split(key, 3)
        bound = 1.0 / (fan_in ** 0.5)
        w = jax.random.uniform(kw, (fan_in, fan_out), jnp.float32, -bound, bound)
        b = jax.random.uniform(kb, (1, fan_out), jnp.float32, -bound, bound)
        params.append((w, b))
    return params


def prepare_params(params, seq_len):
    """Pad seq-facing dims to a multiple of 128, build the lane-dense fused
    [mean|log_var] head (128 output lanes), stack the decoder input weight so
    the reparameterization fuses into one full-vreg multiply, cast weights to
    bf16 (biases stay f32).  Returns a flat tuple of 11 (w, b) layers."""
    seq_pad = _round_up(seq_len, 128)
    ((ew0, eb0), (ew1, eb1), (ew2, eb2), (ew3, eb3), (ew4, eb4),
     (mw, mb), (vw, vb),
     (dw0, db0), (dw1, db1), (dw2, db2), (dw3, db3), (dw4, db4)) = params

    if seq_pad != seq_len:
        pad = seq_pad - seq_len
        ew0 = jnp.pad(ew0, ((0, pad), (0, 0)))   # zero rows match zero-padded x cols
        dw4 = jnp.pad(dw4, ((0, 0), (0, pad)))   # padded outputs sliced off outside
        db4 = jnp.pad(db4, ((0, 0), (0, pad)))

    # Lane-dense fused head: lanes [0:32]=mean, [32:64]=log_var, rest zero.
    hw = jnp.zeros((128, HEAD_LANES), jnp.float32)
    hw = hw.at[:, :LATENT].set(mw).at[:, LATENT:2 * LATENT].set(vw)
    hb = jnp.zeros((1, HEAD_LANES), jnp.float32)
    hb = hb.at[:, :LATENT].set(mb).at[:, LATENT:2 * LATENT].set(vb)

    # Decoder input weight stacked [W; W; 0]:
    #   [mean | log_var*eps | 0] @ dw0s == (mean + log_var*eps) @ W.
    dw0s = jnp.zeros((HEAD_LANES, dw0.shape[1]), jnp.float32)
    dw0s = dw0s.at[:LATENT, :].set(dw0).at[LATENT:2 * LATENT, :].set(dw0)

    layers = [
        (ew0, eb0), (ew1, eb1), (ew2, eb2), (ew3, eb3), (ew4, eb4),
        (hw, hb),
        (dw0s, db0), (dw1, db1), (dw2, db2), (dw3, db3), (dw4, db4),
    ]
    flat = []
    for w, b in layers:
        flat.append(w.astype(jnp.bfloat16))   # halves the dominant weight DMA
        flat.append(b.astype(jnp.float32))
    return tuple(flat)


@functools.partial(
    jax.jit,
    static_argnames=("seq_len", "act_dtype", "use_buffered", "xhat_dtype"))
def _vae_forward(x, eps, params_flat, *, seq_len, act_dtype, use_buffered,
                 xhat_dtype):
    batch = x.shape[0]
    seq_pad = params_flat[0].shape[0]        # padded input dim of the first layer

    # Batch tiling: sublane (8) aligned, capped at 512 rows per grid step.
    bt = min(512, _round_up(batch, 8))
    bpad = _round_up(batch, bt)
    # Keep >= 2 grid steps when there is enough work so v7x's two TensorCores
    # both get a share of the "parallel" batch axis (harmless on v5e/v6e).
    if bpad // bt == 1 and bt >= 256:
        bt = _round_up(bt // 2, 8)
        bpad = _round_up(batch, bt)
    nb = bpad // bt

    # Activations stream as bf16 (the first matmul consumes bf16 anyway).
    xp = x.astype(jnp.bfloat16)
    if bpad != batch or seq_pad != x.shape[1]:
        # TODO(synk): for seq_len not a multiple of 128, pre-pad x once at
        # data-prep time to avoid this extra full-batch copy before the kernel.
        xp = jnp.pad(xp, ((0, bpad - batch), (0, seq_pad - x.shape[1])))

    # eps laid out lane-dense: [1.0 x32 | eps x32 | 0 x64] per row, so the
    # reparameterization is a single full-vreg multiply inside the kernel.
    epsp = jnp.zeros((bpad, HEAD_LANES), jnp.float32)
    epsp = epsp.at[:, :LATENT].set(1.0)
    epsp = epsp.at[:batch, LATENT:2 * LATENT].set(eps.astype(jnp.float32))

    # Constant-index weight/bias specs: VMEM-resident across all batch tiles.
    # Buffered(1): they never change, so don't double-buffer them.
    if use_buffered:
        param_specs = [
            pl.BlockSpec(p.shape, lambda i: (0, 0), pipeline_mode=pl.Buffered(1))
            for p in params_flat
        ]
    else:
        param_specs = [pl.BlockSpec(p.shape, lambda i: (0, 0))
                       for p in params_flat]

    in_specs = [
        pl.BlockSpec((bt, seq_pad), lambda i: (i, 0)),      # x tile
        pl.BlockSpec((bt, HEAD_LANES), lambda i: (i, 0)),   # eps tile
    ] + param_specs
    out_specs = (
        pl.BlockSpec((bt, seq_pad), lambda i: (i, 0)),      # x_hat tile
        pl.BlockSpec((bt, HEAD_LANES), lambda i: (i, 0)),   # [mean|log_var|0]
    )
    out_shapes = (
        jax.ShapeDtypeStruct((bpad, seq_pad), xhat_dtype),
        jax.ShapeDtypeStruct((bpad, HEAD_LANES), jnp.float32),
    )

    # Advisory cost hint so XLA can overlap the weight prefetch with neighbours.
    weights = params_flat[0::2]
    flops = 2 * bpad * sum(int(w.shape[0]) * int(w.shape[1]) for w in weights)
    bytes_accessed = (
        sum(int(p.size) * p.dtype.itemsize for p in params_flat)
        + int(xp.size) * xp.dtype.itemsize
        + int(epsp.size) * 4
        + bpad * seq_pad * jnp.dtype(xhat_dtype).itemsize
        + bpad * HEAD_LANES * 4
    )

    kernel = functools.partial(vae_kernel, act_dtype=act_dtype)

    xhat_p, mv_p = pl.pallas_call(
        kernel,
        out_shape=out_shapes,
        grid=(nb,),
        in_specs=in_specs,
        out_specs=out_specs,
        compiler_params=pltpu.CompilerParams(
            dimension_semantics=("parallel",),
            vmem_limit_bytes=32 << 20,   # ~6 MiB working set at bt=512; <64 MiB v7x
        ),
        cost_estimate=pl.CostEstimate(
            flops=flops, transcendentals=0, bytes_accessed=bytes_accessed),
    )(xp, epsp, *params_flat)

    x_hat = xhat_p[:batch, :seq_len]
    mean = mv_p[:batch, :LATENT]
    log_var = mv_p[:batch, LATENT:2 * LATENT]
    return x_hat, mean, log_var


def _act_dtype_for_backend():
    # bf16 VALU only on v6e/v7x; keep the elementwise chain in f32 elsewhere.
    try:
        kind = jax.devices()[0].device_kind.lower()
    except Exception:
        return jnp.float32
    return jnp.bfloat16 if ("v6" in kind or "v7" in kind) else jnp.float32


_BUFFERED_OK = [True]


def vae_forward(x, eps, params_flat, *, seq_len, xhat_dtype=jnp.float32):
    # NOTE: at small batch this launch is bound by the one-shot ~2 MiB weight
    # DMA; if called repeatedly, keep weights resident across calls (P10) or
    # batch more rows per call — nothing inside the kernel can beat that floor.
    act_dtype = _act_dtype_for_backend()
    kwargs = dict(seq_len=seq_len, act_dtype=act_dtype, xhat_dtype=xhat_dtype)
    if _BUFFERED_OK[0]:
        try:
            return _vae_forward(x, eps, params_flat, use_buffered=True, **kwargs)
        except Exception:
            # pipeline_mode=pl.Buffered(1) unsupported on this build: fall back
            # to default double-buffered constant weight specs.
            _BUFFERED_OK[0] = False
    return _vae_forward(x, eps, params_flat, use_buffered=False, **kwargs)


def reference_forward(x, eps, prepared, seq_len, act_dtype):
    """Pure-JAX reference mirroring the kernel numerics (bf16 matmul inputs,
    f32 MXU accumulation, act_dtype elementwise chain, fused lane-dense head
    and lane-fused reparameterization)."""
    layers = [(prepared[2 * i], prepared[2 * i + 1])
              for i in range(len(prepared) // 2)]
    seq_pad = layers[0][0].shape[0]

    def layer(h, w, b):
        acc = jnp.dot(h.astype(w.dtype), w, preferred_element_type=jnp.float32)
        return _lrelu((acc + b.astype(jnp.float32)).astype(act_dtype))

    def lin32(h, w, b):
        return (jnp.dot(h.astype(w.dtype), w, preferred_element_type=jnp.float32)
                + b.astype(jnp.float32))

    h = x.astype(jnp.bfloat16)
    if seq_pad != h.shape[1]:
        h = jnp.pad(h, ((0, 0), (0, seq_pad - h.shape[1])))
    for (w, b) in layers[0:5]:
        h = layer(h, w, b)
    mv = lin32(h, *layers[5])
    mean, log_var = mv[:, :LATENT], mv[:, LATENT:2 * LATENT]

    epsp = jnp.zeros((x.shape[0], HEAD_LANES), jnp.float32)
    epsp = epsp.at[:, :LATENT].set(1.0)
    epsp = epsp.at[:, LATENT:2 * LATENT].set(eps.astype(jnp.float32))
    d = mv * epsp
    for (w, b) in layers[6:10]:
        d = layer(d, w, b)
    xhat = lin32(d, *layers[10])[:, :seq_len]
    return xhat, mean, log_var


if __name__ == "__main__":
    SEQ_LEN = 256   # constructor arg (PyTorch default 300 would be zero-padded
                    # to 384 automatically; 256 keeps every tile MXU/lane aligned)
    BATCH = 8

    key = jax.random.PRNGKey(0)
    k_params, k_x, k_eps = jax.random.split(key, 3)

    params_f32 = init_params(k_params, SEQ_LEN)
    params_flat = prepare_params(params_f32, SEQ_LEN)

    x = jax.random.normal(k_x, (BATCH, SEQ_LEN), jnp.float32)
    # epsilon = randn_like(log_var): generated deterministically outside the kernel.
    eps = jax.random.normal(k_eps, (BATCH, LATENT), jnp.float32)

    x_hat, mean, log_var = vae_forward(x, eps, params_flat, seq_len=SEQ_LEN)
    jax.block_until_ready((x_hat, mean, log_var))

    # Correctness check against a pure-JAX reference with identical numerics.
    ref_xhat, ref_mean, ref_logvar = reference_forward(
        x, eps, params_flat, SEQ_LEN, _act_dtype_for_backend())
    assert x_hat.shape == (BATCH, SEQ_LEN)
    assert mean.shape == (BATCH, LATENT) and log_var.shape == (BATCH, LATENT)
    assert jnp.allclose(x_hat, ref_xhat, atol=2e-2, rtol=2e-2)
    assert jnp.allclose(mean, ref_mean, atol=2e-2, rtol=2e-2)
    assert jnp.allclose(log_var, ref_logvar, atol=2e-2, rtol=2e-2)

    print("KERNEL_OK")
</pallas_src>

<mosaic_0001>
module attributes {stable_mosaic.version = 11 : i64} {
  func.func @vae_kernel(%arg0: i32, %arg1: memref<8x256xbf16, #tpu.memory_space<vmem>>, %arg2: memref<8x128xf32, #tpu.memory_space<vmem>>, %arg3: memref<256x256xbf16, #tpu.memory_space<vmem>>, %arg4: memref<1x256xf32, #tpu.memory_space<vmem>>, %arg5: memref<256x512xbf16, #tpu.memory_space<vmem>>, %arg6: memref<1x512xf32, #tpu.memory_space<vmem>>, %arg7: memref<512x512xbf16, #tpu.memory_space<vmem>>, %arg8: memref<1x512xf32, #tpu.memory_space<vmem>>, %arg9: memref<512x256xbf16, #tpu.memory_space<vmem>>, %arg10: memref<1x256xf32, #tpu.memory_space<vmem>>, %arg11: memref<256x128xbf16, #tpu.memory_space<vmem>>, %arg12: memref<1x128xf32, #tpu.memory_space<vmem>>, %arg13: memref<128x128xbf16, #tpu.memory_space<vmem>>, %arg14: memref<1x128xf32, #tpu.memory_space<vmem>>, %arg15: memref<128x128xbf16, #tpu.memory_space<vmem>>, %arg16: memref<1x128xf32, #tpu.memory_space<vmem>>, %arg17: memref<128x256xbf16, #tpu.memory_space<vmem>>, %arg18: memref<1x256xf32, #tpu.memory_space<vmem>>, %arg19: memref<256x512xbf16, #tpu.memory_space<vmem>>, %arg20: memref<1x512xf32, #tpu.memory_space<vmem>>, %arg21: memref<512x256xbf16, #tpu.memory_space<vmem>>, %arg22: memref<1x256xf32, #tpu.memory_space<vmem>>, %arg23: memref<256x256xbf16, #tpu.memory_space<vmem>>, %arg24: memref<1x256xf32, #tpu.memory_space<vmem>>, %arg25: memref<8x256xf32, #tpu.memory_space<vmem>>, %arg26: memref<8x128xf32, #tpu.memory_space<vmem>>) attributes {dimension_semantics = [#tpu.dimension_semantics<parallel>], iteration_bounds = array<i64: 1>, scalar_prefetch = 0 : i64, scratch_operands = 0 : i64, tpu.core_type = #tpu.core_type<tc>, window_params = [{transform_indices = @transform_0, window_bounds = array<i64: 8, 256>}, {transform_indices = @transform_1, window_bounds = array<i64: 8, 128>}, {pipeline_mode = #tpu.pipeline_mode<synchronous>, transform_indices = @transform_2, window_bounds = array<i64: 256, 256>}, {pipeline_mode = #tpu.pipeline_mode<synchronous>, transform_indices = @transform_3, window_bounds = array<i64: 1, 256>}, {pipeline_mode = #tpu.pipeline_mode<synchronous>, transform_indices = @transform_4, window_bounds = array<i64: 256, 512>}, {pipeline_mode = #tpu.pipeline_mode<synchronous>, transform_indices = @transform_5, window_bounds = array<i64: 1, 512>}, {pipeline_mode = #tpu.pipeline_mode<synchronous>, transform_indices = @transform_6, window_bounds = array<i64: 512, 512>}, {pipeline_mode = #tpu.pipeline_mode<synchronous>, transform_indices = @transform_7, window_bounds = array<i64: 1, 512>}, {pipeline_mode = #tpu.pipeline_mode<synchronous>, transform_indices = @transform_8, window_bounds = array<i64: 512, 256>}, {pipeline_mode = #tpu.pipeline_mode<synchronous>, transform_indices = @transform_9, window_bounds = array<i64: 1, 256>}, {pipeline_mode = #tpu.pipeline_mode<synchronous>, transform_indices = @transform_10, window_bounds = array<i64: 256, 128>}, {pipeline_mode = #tpu.pipeline_mode<synchronous>, transform_indices = @transform_11, window_bounds = array<i64: 1, 128>}, {pipeline_mode = #tpu.pipeline_mode<synchronous>, transform_indices = @transform_12, window_bounds = array<i64: 128, 128>}, {pipeline_mode = #tpu.pipeline_mode<synchronous>, transform_indices = @transform_13, window_bounds = array<i64: 1, 128>}, {pipeline_mode = #tpu.pipeline_mode<synchronous>, transform_indices = @transform_14, window_bounds = array<i64: 128, 128>}, {pipeline_mode = #tpu.pipeline_mode<synchronous>, transform_indices = @transform_15, window_bounds = array<i64: 1, 128>}, {pipeline_mode = #tpu.pipeline_mode<synchronous>, transform_indices = @transform_16, window_bounds = array<i64: 128, 256>}, {pipeline_mode = #tpu.pipeline_mode<synchronous>, transform_indices = @transform_17, window_bounds = array<i64: 1, 256>}, {pipeline_mode = #tpu.pipeline_mode<synchronous>, transform_indices = @transform_18, window_bounds = array<i64: 256, 512>}, {pipeline_mode = #tpu.pipeline_mode<synchronous>, transform_indices = @transform_19, window_bounds = array<i64: 1, 512>}, {pipeline_mode = #tpu.pipeline_mode<synchronous>, transform_indices = @transform_20, window_bounds = array<i64: 512, 256>}, {pipeline_mode = #tpu.pipeline_mode<synchronous>, transform_indices = @transform_21, window_bounds = array<i64: 1, 256>}, {pipeline_mode = #tpu.pipeline_mode<synchronous>, transform_indices = @transform_22, window_bounds = array<i64: 256, 256>}, {pipeline_mode = #tpu.pipeline_mode<synchronous>, transform_indices = @transform_23, window_bounds = array<i64: 1, 256>}, {transform_indices = @transform_24, window_bounds = array<i64: 8, 256>}, {transform_indices = @transform_25, window_bounds = array<i64: 8, 128>}]} {
    %c0 = arith.constant 0 : index
    %c0_0 = arith.constant 0 : index
    %0 = vector.load %arg1[%c0, %c0_0] : memref<8x256xbf16, #tpu.memory_space<vmem>>, vector<8x256xbf16>
    %c0_1 = arith.constant 0 : index
    %c0_2 = arith.constant 0 : index
    %1 = vector.load %arg3[%c0_1, %c0_2] : memref<256x256xbf16, #tpu.memory_space<vmem>>, vector<256x256xbf16>
    %cst = arith.constant dense<0.000000e+00> : vector<8x256xf32>
    %2 = tpu.matmul %0, %1, %cst {dimension_numbers = #tpu.dot_dimension_numbers<[1], [0], [0], [1], [0, 0, 1, 1], [], []>} : vector<8x256xbf16>, vector<256x256xbf16>, vector<8x256xf32> -> vector<8x256xf32>
    %c0_3 = arith.constant 0 : index
    %c0_4 = arith.constant 0 : index
    %3 = vector.load %arg4[%c0_3, %c0_4] : memref<1x256xf32, #tpu.memory_space<vmem>>, vector<1x256xf32>
    %4 = vector.broadcast %3 : vector<1x256xf32> to vector<8x256xf32>
    %5 = arith.addf %2, %4 : vector<8x256xf32>
    %cst_5 = arith.constant 2.000000e-01 : f32
    %6 = vector.broadcast %cst_5 : f32 to vector<8x256xf32>
    %7 = arith.mulf %6, %5 : vector<8x256xf32>
    %8 = arith.maximumf %5, %7 : vector<8x256xf32>
    %9 = arith.truncf %8 : vector<8x256xf32> to vector<8x256xbf16>
    %c0_6 = arith.constant 0 : index
    %c0_7 = arith.constant 0 : index
    %10 = vector.load %arg5[%c0_6, %c0_7] : memref<256x512xbf16, #tpu.memory_space<vmem>>, vector<256x512xbf16>
    %cst_8 = arith.constant dense<0.000000e+00> : vector<8x512xf32>
    %11 = tpu.matmul %9, %10, %cst_8 {dimension_numbers = #tpu.dot_dimension_numbers<[1], [0], [0], [1], [0, 0, 1, 1], [], []>} : vector<8x256xbf16>, vector<256x512xbf16>, vector<8x512xf32> -> vector<8x512xf32>
    %c0_9 = arith.constant 0 : index
    %c0_10 = arith.constant 0 : index
    %12 = vector.load %arg6[%c0_9, %c0_10] : memref<1x512xf32, #tpu.memory_space<vmem>>, vector<1x512xf32>
    %13 = vector.broadcast %12 : vector<1x512xf32> to vector<8x512xf32>
    %14 = arith.addf %11, %13 : vector<8x512xf32>
    %cst_11 = arith.constant 2.000000e-01 : f32
    %15 = vector.broadcast %cst_11 : f32 to vector<8x512xf32>
    %16 = arith.mulf %15, %14 : vector<8x512xf32>
    %17 = arith.maximumf %14, %16 : vector<8x512xf32>
    %18 = arith.truncf %17 : vector<8x512xf32> to vector<8x512xbf16>
    %c0_12 = arith.constant 0 : index
    %c0_13 = arith.constant 0 : index
    %19 = vector.load %arg7[%c0_12, %c0_13] : memref<512x512xbf16, #tpu.memory_space<vmem>>, vector<512x512xbf16>
    %cst_14 = arith.constant dense<0.000000e+00> : vector<8x512xf32>
    %20 = tpu.matmul %18, %19, %cst_14 {dimension_numbers = #tpu.dot_dimension_numbers<[1], [0], [0], [1], [0, 0, 1, 1], [], []>} : vector<8x512xbf16>, vector<512x512xbf16>, vector<8x512xf32> -> vector<8x512xf32>
    %c0_15 = arith.constant 0 : index
    %c0_16 = arith.constant 0 : index
    %21 = vector.load %arg8[%c0_15, %c0_16] : memref<1x512xf32, #tpu.memory_space<vmem>>, vector<1x512xf32>
    %22 = vector.broadcast %21 : vector<1x512xf32> to vector<8x512xf32>
    %23 = arith.addf %20, %22 : vector<8x512xf32>
    %cst_17 = arith.constant 2.000000e-01 : f32
    %24 = vector.broadcast %cst_17 : f32 to vector<8x512xf32>
    %25 = arith.mulf %24, %23 : vector<8x512xf32>
    %26 = arith.maximumf %23, %25 : vector<8x512xf32>
    %27 = arith.truncf %26 : vector<8x512xf32> to vector<8x512xbf16>
    %c0_18 = arith.constant 0 : index
    %c0_19 = arith.constant 0 : index
    %28 = vector.load %arg9[%c0_18, %c0_19] : memref<512x256xbf16, #tpu.memory_space<vmem>>, vector<512x256xbf16>
    %cst_20 = arith.constant dense<0.000000e+00> : vector<8x256xf32>
    %29 = tpu.matmul %27, %28, %cst_20 {dimension_numbers = #tpu.dot_dimension_numbers<[1], [0], [0], [1], [0, 0, 1, 1], [], []>} : vector<8x512xbf16>, vector<512x256xbf16>, vector<8x256xf32> -> vector<8x256xf32>
    %c0_21 = arith.constant 0 : index
    %c0_22 = arith.constant 0 : index
    %30 = vector.load %arg10[%c0_21, %c0_22] : memref<1x256xf32, #tpu.memory_space<vmem>>, vector<1x256xf32>
    %31 = vector.broadcast %30 : vector<1x256xf32> to vector<8x256xf32>
    %32 = arith.addf %29, %31 : vector<8x256xf32>
    %cst_23 = arith.constant 2.000000e-01 : f32
    %33 = vector.broadcast %cst_23 : f32 to vector<8x256xf32>
    %34 = arith.mulf %33, %32 : vector<8x256xf32>
    %35 = arith.maximumf %32, %34 : vector<8x256xf32>
    %36 = arith.truncf %35 : vector<8x256xf32> to vector<8x256xbf16>
    %c0_24 = arith.constant 0 : index
    %c0_25 = arith.constant 0 : index
    %37 = vector.load %arg11[%c0_24, %c0_25] : memref<256x128xbf16, #tpu.memory_space<vmem>>, vector<256x128xbf16>
    %cst_26 = arith.constant dense<0.000000e+00> : vector<8x128xf32>
    %38 = tpu.matmul %36, %37, %cst_26 {dimension_numbers = #tpu.dot_dimension_numbers<[1], [0], [0], [1], [0, 0, 1, 1], [], []>} : vector<8x256xbf16>, vector<256x128xbf16>, vector<8x128xf32> -> vector<8x128xf32>
    %c0_27 = arith.constant 0 : index
    %c0_28 = arith.constant 0 : index
    %39 = vector.load %arg12[%c0_27, %c0_28] : memref<1x128xf32, #tpu.memory_space<vmem>>, vector<1x128xf32>
    %40 = vector.broadcast %39 : vector<1x128xf32> to vector<8x128xf32>
    %41 = arith.addf %38, %40 : vector<8x128xf32>
    %cst_29 = arith.constant 2.000000e-01 : f32
    %42 = vector.broadcast %cst_29 : f32 to vector<8x128xf32>
    %43 = arith.mulf %42, %41 : vector<8x128xf32>
    %44 = arith.maximumf %41, %43 : vector<8x128xf32>
    %45 = arith.truncf %44 : vector<8x128xf32> to vector<8x128xbf16>
    %c0_30 = arith.constant 0 : index
    %c0_31 = arith.constant 0 : index
    %46 = vector.load %arg13[%c0_30, %c0_31] : memref<128x128xbf16, #tpu.memory_space<vmem>>, vector<128x128xbf16>
    %cst_32 = arith.constant dense<0.000000e+00> : vector<8x128xf32>
    %47 = tpu.matmul %45, %46, %cst_32 {dimension_numbers = #tpu.dot_dimension_numbers<[1], [0], [0], [1], [0, 0, 1, 1], [], []>} : vector<8x128xbf16>, vector<128x128xbf16>, vector<8x128xf32> -> vector<8x128xf32>
    %c0_33 = arith.constant 0 : index
    %c0_34 = arith.constant 0 : index
    %48 = vector.load %arg14[%c0_33, %c0_34] : memref<1x128xf32, #tpu.memory_space<vmem>>, vector<1x128xf32>
    %49 = vector.broadcast %48 : vector<1x128xf32> to vector<8x128xf32>
    %50 = arith.addf %47, %49 : vector<8x128xf32>
    %c0_35 = arith.constant 0 : index
    %c0_36 = arith.constant 0 : index
    %51 = vector.load %arg26[%c0_35, %c0_36] : memref<8x128xf32, #tpu.memory_space<vmem>>, vector<8x128xf32>
    tpu.vector_store %arg26[%c0_35, %c0_36], %50 {strides = array<i32>} : memref<8x128xf32, #tpu.memory_space<vmem>>, vector<8x128xf32>,
    %c0_37 = arith.constant 0 : index
    %c0_38 = arith.constant 0 : index
    %52 = vector.load %arg2[%c0_37, %c0_38] : memref<8x128xf32, #tpu.memory_space<vmem>>, vector<8x128xf32>
    %53 = arith.mulf %50, %52 : vector<8x128xf32>
    %54 = arith.truncf %53 : vector<8x128xf32> to vector<8x128xbf16>
    %c0_39 = arith.constant 0 : index
    %c0_40 = arith.constant 0 : index
    %55 = vector.load %arg15[%c0_39, %c0_40] : memref<128x128xbf16, #tpu.memory_space<vmem>>, vector<128x128xbf16>
    %cst_41 = arith.constant dense<0.000000e+00> : vector<8x128xf32>
    %56 = tpu.matmul %54, %55, %cst_41 {dimension_numbers = #tpu.dot_dimension_numbers<[1], [0], [0], [1], [0, 0, 1, 1], [], []>} : vector<8x128xbf16>, vector<128x128xbf16>, vector<8x128xf32> -> vector<8x128xf32>
    %c0_42 = arith.constant 0 : index
    %c0_43 = arith.constant 0 : index
    %57 = vector.load %arg16[%c0_42, %c0_43] : memref<1x128xf32, #tpu.memory_space<vmem>>, vector<1x128xf32>
    %58 = vector.broadcast %57 : vector<1x128xf32> to vector<8x128xf32>
    %59 = arith.addf %56, %58 : vector<8x128xf32>
    %cst_44 = arith.constant 2.000000e-01 : f32
    %60 = vector.broadcast %cst_44 : f32 to vector<8x128xf32>
    %61 = arith.mulf %60, %59 : vector<8x128xf32>
    %62 = arith.maximumf %59, %61 : vector<8x128xf32>
    %63 = arith.truncf %62 : vector<8x128xf32> to vector<8x128xbf16>
    %c0_45 = arith.constant 0 : index
    %c0_46 = arith.constant 0 : index
    %64 = vector.load %arg17[%c0_45, %c0_46] : memref<128x256xbf16, #tpu.memory_space<vmem>>, vector<128x256xbf16>
    %cst_47 = arith.constant dense<0.000000e+00> : vector<8x256xf32>
    %65 = tpu.matmul %63, %64, %cst_47 {dimension_numbers = #tpu.dot_dimension_numbers<[1], [0], [0], [1], [0, 0, 1, 1], [], []>} : vector<8x128xbf16>, vector<128x256xbf16>, vector<8x256xf32> -> vector<8x256xf32>
    %c0_48 = arith.constant 0 : index
    %c0_49 = arith.constant 0 : index
    %66 = vector.load %arg18[%c0_48, %c0_49] : memref<1x256xf32, #tpu.memory_space<vmem>>, vector<1x256xf32>
    %67 = vector.broadcast %66 : vector<1x256xf32> to vector<8x256xf32>
    %68 = arith.addf %65, %67 : vector<8x256xf32>
    %cst_50 = arith.constant 2.000000e-01 : f32
    %69 = vector.broadcast %cst_50 : f32 to vector<8x256xf32>
    %70 = arith.mulf %69, %68 : vector<8x256xf32>
    %71 = arith.maximumf %68, %70 : vector<8x256xf32>
    %72 = arith.truncf %71 : vector<8x256xf32> to vector<8x256xbf16>
    %c0_51 = arith.constant 0 : index
    %c0_52 = arith.constant 0 : index
    %73 = vector.load %arg19[%c0_51, %c0_52] : memref<256x512xbf16, #tpu.memory_space<vmem>>, vector<256x512xbf16>
    %cst_53 = arith.constant dense<0.000000e+00> : vector<8x512xf32>
    %74 = tpu.matmul %72, %73, %cst_53 {dimension_numbers = #tpu.dot_dimension_numbers<[1], [0], [0], [1], [0, 0, 1, 1], [], []>} : vector<8x256xbf16>, vector<256x512xbf16>, vector<8x512xf32> -> vector<8x512xf32>
    %c0_54 = arith.constant 0 : index
    %c0_55 = arith.constant 0 : index
    %75 = vector.load %arg20[%c0_54, %c0_55] : memref<1x512xf32, #tpu.memory_space<vmem>>, vector<1x512xf32>
    %76 = vector.broadcast %75 : vector<1x512xf32> to vector<8x512xf32>
    %77 = arith.addf %74, %76 : vector<8x512xf32>
    %cst_56 = arith.constant 2.000000e-01 : f32
    %78 = vector.broadcast %cst_56 : f32 to vector<8x512xf32>
    %79 = arith.mulf %78, %77 : vector<8x512xf32>
    %80 = arith.maximumf %77, %79 : vector<8x512xf32>
    %81 = arith.truncf %80 : vector<8x512xf32> to vector<8x512xbf16>
    %c0_57 = arith.constant 0 : index
    %c0_58 = arith.constant 0 : index
    %82 = vector.load %arg21[%c0_57, %c0_58] : memref<512x256xbf16, #tpu.memory_space<vmem>>, vector<512x256xbf16>
    %cst_59 = arith.constant dense<0.000000e+00> : vector<8x256xf32>
    %83 = tpu.matmul %81, %82, %cst_59 {dimension_numbers = #tpu.dot_dimension_numbers<[1], [0], [0], [1], [0, 0, 1, 1], [], []>} : vector<8x512xbf16>, vector<512x256xbf16>, vector<8x256xf32> -> vector<8x256xf32>
    %c0_60 = arith.constant 0 : index
    %c0_61 = arith.constant 0 : index
    %84 = vector.load %arg22[%c0_60, %c0_61] : memref<1x256xf32, #tpu.memory_space<vmem>>, vector<1x256xf32>
    %85 = vector.broadcast %84 : vector<1x256xf32> to vector<8x256xf32>
    %86 = arith.addf %83, %85 : vector<8x256xf32>
    %cst_62 = arith.constant 2.000000e-01 : f32
    %87 = vector.broadcast %cst_62 : f32 to vector<8x256xf32>
    %88 = arith.mulf %87, %86 : vector<8x256xf32>
    %89 = arith.maximumf %86, %88 : vector<8x256xf32>
    %90 = arith.truncf %89 : vector<8x256xf32> to vector<8x256xbf16>
    %c0_63 = arith.constant 0 : index
    %c0_64 = arith.constant 0 : index
    %91 = vector.load %arg23[%c0_63, %c0_64] : memref<256x256xbf16, #tpu.memory_space<vmem>>, vector<256x256xbf16>
    %cst_65 = arith.constant dense<0.000000e+00> : vector<8x256xf32>
    %92 = tpu.matmul %90, %91, %cst_65 {dimension_numbers = #tpu.dot_dimension_numbers<[1], [0], [0], [1], [0, 0, 1, 1], [], []>} : vector<8x256xbf16>, vector<256x256xbf16>, vector<8x256xf32> -> vector<8x256xf32>
    %c0_66 = arith.constant 0 : index
    %c0_67 = arith.constant 0 : index
    %93 = vector.load %arg24[%c0_66, %c0_67] : memref<1x256xf32, #tpu.memory_space<vmem>>, vector<1x256xf32>
    %94 = vector.broadcast %93 : vector<1x256xf32> to vector<8x256xf32>
    %95 = arith.addf %92, %94 : vector<8x256xf32>
    %c0_68 = arith.constant 0 : index
    %c0_69 = arith.constant 0 : index
    %96 = vector.load %arg25[%c0_68, %c0_69] : memref<8x256xf32, #tpu.memory_space<vmem>>, vector<8x256xf32>
    tpu.vector_store %arg25[%c0_68, %c0_69], %95 {strides = array<i32>} : memref<8x256xf32, #tpu.memory_space<vmem>>, vector<8x256xf32>,
    return
  }
  func.func @transform_0(%arg0: i32) -> (i32, i32) {
    %c0_i32 = arith.constant 0 : i32
    %c0_i32_0 = arith.constant 0 : i32
    return %arg0, %c0_i32 : i32, i32
  }
  func.func @transform_1(%arg0: i32) -> (i32, i32) {
    %c0_i32 = arith.constant 0 : i32
    %c0_i32_0 = arith.constant 0 : i32
    return %arg0, %c0_i32 : i32, i32
  }
  func.func @transform_2(%arg0: i32) -> (i32, i32) {
    %c0_i32 = arith.constant 0 : i32
    %c0_i32_0 = arith.constant 0 : i32
    %c0_i32_1 = arith.constant 0 : i32
    return %c0_i32, %c0_i32_0 : i32, i32
  }
  func.func @transform_3(%arg0: i32) -> (i32, i32) {
    %c0_i32 = arith.constant 0 : i32
    %c0_i32_0 = arith.constant 0 : i32
    %c0_i32_1 = arith.constant 0 : i32
    return %c0_i32, %c0_i32_0 : i32, i32
  }
  func.func @transform_4(%arg0: i32) -> (i32, i32) {
    %c0_i32 = arith.constant 0 : i32
    %c0_i32_0 = arith.constant 0 : i32
    %c0_i32_1 = arith.constant 0 : i32
    return %c0_i32, %c0_i32_0 : i32, i32
  }
  func.func @transform_5(%arg0: i32) -> (i32, i32) {
    %c0_i32 = arith.constant 0 : i32
    %c0_i32_0 = arith.constant 0 : i32
    %c0_i32_1 = arith.constant 0 : i32
    return %c0_i32, %c0_i32_0 : i32, i32
  }
  func.func @transform_6(%arg0: i32) -> (i32, i32) {
    %c0_i32 = arith.constant 0 : i32
    %c0_i32_0 = arith.constant 0 : i32
    %c0_i32_1 = arith.constant 0 : i32
    return %c0_i32, %c0_i32_0 : i32, i32
  }
  func.func @transform_7(%arg0: i32) -> (i32, i32) {
    %c0_i32 = arith.constant 0 : i32
    %c0_i32_0 = arith.constant 0 : i32
    %c0_i32_1 = arith.constant 0 : i32
    return %c0_i32, %c0_i32_0 : i32, i32
  }
  func.func @transform_8(%arg0: i32) -> (i32, i32) {
    %c0_i32 = arith.constant 0 : i32
    %c0_i32_0 = arith.constant 0 : i32
    %c0_i32_1 = arith.constant 0 : i32
    return %c0_i32, %c0_i32_0 : i32, i32
  }
  func.func @transform_9(%arg0: i32) -> (i32, i32) {
    %c0_i32 = arith.constant 0 : i32
    %c0_i32_0 = arith.constant 0 : i32
    %c0_i32_1 = arith.constant 0 : i32
    return %c0_i32, %c0_i32_0 : i32, i32
  }
  func.func @transform_10(%arg0: i32) -> (i32, i32) {
    %c0_i32 = arith.constant 0 : i32
    %c0_i32_0 = arith.constant 0 : i32
    %c0_i32_1 = arith.constant 0 : i32
    return %c0_i32, %c0_i32_0 : i32, i32
  }
  func.func @transform_11(%arg0: i32) -> (i32, i32) {
    %c0_i32 = arith.constant 0 : i32
    %c0_i32_0 = arith.constant 0 : i32
    %c0_i32_1 = arith.constant 0 : i32
    return %c0_i32, %c0_i32_0 : i32, i32
  }
  func.func @transform_12(%arg0: i32) -> (i32, i32) {
    %c0_i32 = arith.constant 0 : i32
    %c0_i32_0 = arith.constant 0 : i32
    %c0_i32_1 = arith.constant 0 : i32
    return %c0_i32, %c0_i32_0 : i32, i32
  }
  func.func @transform_13(%arg0: i32) -> (i32, i32) {
    %c0_i32 = arith.constant 0 : i32
    %c0_i32_0 = arith.constant 0 : i32
    %c0_i32_1 = arith.constant 0 : i32
    return %c0_i32, %c0_i32_0 : i32, i32
  }
  func.func @transform_14(%arg0: i32) -> (i32, i32) {
    %c0_i32 = arith.constant 0 : i32
    %c0_i32_0 = arith.constant 0 : i32
    %c0_i32_1 = arith.constant 0 : i32
    return %c0_i32, %c0_i32_0 : i32, i32
  }
  func.func @transform_15(%arg0: i32) -> (i32, i32) {
    %c0_i32 = arith.constant 0 : i32
    %c0_i32_0 = arith.constant 0 : i32
    %c0_i32_1 = arith.constant 0 : i32
    return %c0_i32, %c0_i32_0 : i32, i32
  }
  func.func @transform_16(%arg0: i32) -> (i32, i32) {
    %c0_i32 = arith.constant 0 : i32
    %c0_i32_0 = arith.constant 0 : i32
    %c0_i32_1 = arith.constant 0 : i32
    return %c0_i32, %c0_i32_0 : i32, i32
  }
  func.func @transform_17(%arg0: i32) -> (i32, i32) {
    %c0_i32 = arith.constant 0 : i32
    %c0_i32_0 = arith.constant 0 : i32
    %c0_i32_1 = arith.constant 0 : i32
    return %c0_i32, %c0_i32_0 : i32, i32
  }
  func.func @transform_18(%arg0: i32) -> (i32, i32) {
    %c0_i32 = arith.constant 0 : i32
    %c0_i32_0 = arith.constant 0 : i32
    %c0_i32_1 = arith.constant 0 : i32
    return %c0_i32, %c0_i32_0 : i32, i32
  }
  func.func @transform_19(%arg0: i32) -> (i32, i32) {
    %c0_i32 = arith.constant 0 : i32
    %c0_i32_0 = arith.constant 0 : i32
    %c0_i32_1 = arith.constant 0 : i32
    return %c0_i32, %c0_i32_0 : i32, i32
  }
  func.func @transform_20(%arg0: i32) -> (i32, i32) {
    %c0_i32 = arith.constant 0 : i32
    %c0_i32_0 = arith.constant 0 : i32
    %c0_i32_1 = arith.constant 0 : i32
    return %c0_i32, %c0_i32_0 : i32, i32
  }
  func.func @transform_21(%arg0: i32) -> (i32, i32) {
    %c0_i32 = arith.constant 0 : i32
    %c0_i32_0 = arith.constant 0 : i32
    %c0_i32_1 = arith.constant 0 : i32
    return %c0_i32, %c0_i32_0 : i32, i32
  }
  func.func @transform_22(%arg0: i32) -> (i32, i32) {
    %c0_i32 = arith.constant 0 : i32
    %c0_i32_0 = arith.constant 0 : i32
    %c0_i32_1 = arith.constant 0 : i32
    return %c0_i32, %c0_i32_0 : i32, i32
  }
  func.func @transform_23(%arg0: i32) -> (i32, i32) {
    %c0_i32 = arith.constant 0 : i32
    %c0_i32_0 = arith.constant 0 : i32
    %c0_i32_1 = arith.constant 0 : i32
    return %c0_i32, %c0_i32_0 : i32, i32
  }
  func.func @transform_24(%arg0: i32) -> (i32, i32) {
    %c0_i32 = arith.constant 0 : i32
    %c0_i32_0 = arith.constant 0 : i32
    return %arg0, %c0_i32 : i32, i32
  }
  func.func @transform_25(%arg0: i32) -> (i32, i32) {
    %c0_i32 = arith.constant 0 : i32
    %c0_i32_0 = arith.constant 0 : i32
    return %arg0, %c0_i32 : i32, i32
  }
}

module attributes {stable_mosaic.version = 11 : i64} {
  func.func @vae_kernel(%arg0: i32, %arg1: memref<8x256xbf16, #tpu.memory_space<vmem>>, %arg2: memref<8x128xf32, #tpu.memory_space<vmem>>, %arg3: memref<256x256xbf16, #tpu.memory_space<vmem>>, %arg4: memref<1x256xf32, #tpu.memory_space<vmem>>, %arg5: memref<256x512xbf16, #tpu.memory_space<vmem>>, %arg6: memref<1x512xf32, #tpu.memory_space<vmem>>, %arg7: memref<512x512xbf16, #tpu.memory_space<vmem>>, %arg8: memref<1x512xf32, #tpu.memory_space<vmem>>, %arg9: memref<512x256xbf16, #tpu.memory_space<vmem>>, %arg10: memref<1x256xf32, #tpu.memory_space<vmem>>, %arg11: memref<256x128xbf16, #tpu.memory_space<vmem>>, %arg12: memref<1x128xf32, #tpu.memory_space<vmem>>, %arg13: memref<128x128xbf16, #tpu.memory_space<vmem>>, %arg14: memref<1x128xf32, #tpu.memory_space<vmem>>, %arg15: memref<128x128xbf16, #tpu.memory_space<vmem>>, %arg16: memref<1x128xf32, #tpu.memory_space<vmem>>, %arg17: memref<128x256xbf16, #tpu.memory_space<vmem>>, %arg18: memref<1x256xf32, #tpu.memory_space<vmem>>, %arg19: memref<256x512xbf16, #tpu.memory_space<vmem>>, %arg20: memref<1x512xf32, #tpu.memory_space<vmem>>, %arg21: memref<512x256xbf16, #tpu.memory_space<vmem>>, %arg22: memref<1x256xf32, #tpu.memory_space<vmem>>, %arg23: memref<256x256xbf16, #tpu.memory_space<vmem>>, %arg24: memref<1x256xf32, #tpu.memory_space<vmem>>, %arg25: memref<8x256xf32, #tpu.memory_space<vmem>>, %arg26: memref<8x128xf32, #tpu.memory_space<vmem>>) attributes {dimension_semantics = [#tpu.dimension_semantics<parallel>], iteration_bounds = array<i64: 1>, scalar_prefetch = 0 : i64, scratch_operands = 0 : i64, tpu.core_type = #tpu.core_type<tc>, window_params = [{transform_indices = @transform_0, window_bounds = array<i64: 8, 256>}, {transform_indices = @transform_1, window_bounds = array<i64: 8, 128>}, {pipeline_mode = #tpu.pipeline_mode<synchronous>, transform_indices = @transform_2, window_bounds = array<i64: 256, 256>}, {pipeline_mode = #tpu.pipeline_mode<synchronous>, transform_indices = @transform_3, window_bounds = array<i64: 1, 256>}, {pipeline_mode = #tpu.pipeline_mode<synchronous>, transform_indices = @transform_4, window_bounds = array<i64: 256, 512>}, {pipeline_mode = #tpu.pipeline_mode<synchronous>, transform_indices = @transform_5, window_bounds = array<i64: 1, 512>}, {pipeline_mode = #tpu.pipeline_mode<synchronous>, transform_indices = @transform_6, window_bounds = array<i64: 512, 512>}, {pipeline_mode = #tpu.pipeline_mode<synchronous>, transform_indices = @transform_7, window_bounds = array<i64: 1, 512>}, {pipeline_mode = #tpu.pipeline_mode<synchronous>, transform_indices = @transform_8, window_bounds = array<i64: 512, 256>}, {pipeline_mode = #tpu.pipeline_mode<synchronous>, transform_indices = @transform_9, window_bounds = array<i64: 1, 256>}, {pipeline_mode = #tpu.pipeline_mode<synchronous>, transform_indices = @transform_10, window_bounds = array<i64: 256, 128>}, {pipeline_mode = #tpu.pipeline_mode<synchronous>, transform_indices = @transform_11, window_bounds = array<i64: 1, 128>}, {pipeline_mode = #tpu.pipeline_mode<synchronous>, transform_indices = @transform_12, window_bounds = array<i64: 128, 128>}, {pipeline_mode = #tpu.pipeline_mode<synchronous>, transform_indices = @transform_13, window_bounds = array<i64: 1, 128>}, {pipeline_mode = #tpu.pipeline_mode<synchronous>, transform_indices = @transform_14, window_bounds = array<i64: 128, 128>}, {pipeline_mode = #tpu.pipeline_mode<synchronous>, transform_indices = @transform_15, window_bounds = array<i64: 1, 128>}, {pipeline_mode = #tpu.pipeline_mode<synchronous>, transform_indices = @transform_16, window_bounds = array<i64: 128, 256>}, {pipeline_mode = #tpu.pipeline_mode<synchronous>, transform_indices = @transform_17, window_bounds = array<i64: 1, 256>}, {pipeline_mode = #tpu.pipeline_mode<synchronous>, transform_indices = @transform_18, window_bounds = array<i64: 256, 512>}, {pipeline_mode = #tpu.pipeline_mode<synchronous>, transform_indices = @transform_19, window_bounds = array<i64: 1, 512>}, {pipeline_mode = #tpu.pipeline_mode<synchronous>, transform_indices = @transform_20, window_bounds = array<i64: 512, 256>}, {pipeline_mode = #tpu.pipeline_mode<synchronous>, transform_indices = @transform_21, window_bounds = array<i64: 1, 256>}, {pipeline_mode = #tpu.pipeline_mode<synchronous>, transform_indices = @transform_22, window_bounds = array<i64: 256, 256>}, {pipeline_mode = #tpu.pipeline_mode<synchronous>, transform_indices = @transform_23, window_bounds = array<i64: 1, 256>}, {transform_indices = @transform_24, window_bounds = array<i64: 8, 256>}, {transform_indices = @transform_25, window_bounds = array<i64: 8, 128>}]} {
    %c0 = arith.constant 0 : index
    %c0_0 = arith.constant 0 : index
    %0 = vector.load %arg1[%c0, %c0_0] : memref<8x256xbf16, #tpu.memory_space<vmem>>, vector<8x256xbf16>
    %c0_1 = arith.constant 0 : index
    %c0_2 = arith.constant 0 : index
    %1 = vector.load %arg3[%c0_1, %c0_2] : memref<256x256xbf16, #tpu.memory_space<vmem>>, vector<256x256xbf16>
    %cst = arith.constant dense<0.000000e+00> : vector<8x256xf32>
    %2 = tpu.matmul %0, %1, %cst {dimension_numbers = #tpu.dot_dimension_numbers<[1], [0], [0], [1], [0, 0, 1, 1], [], []>} : vector<8x256xbf16>, vector<256x256xbf16>, vector<8x256xf32> -> vector<8x256xf32>
    %c0_3 = arith.constant 0 : index
    %c0_4 = arith.constant 0 : index
    %3 = vector.load %arg4[%c0_3, %c0_4] : memref<1x256xf32, #tpu.memory_space<vmem>>, vector<1x256xf32>
    %4 = vector.broadcast %3 : vector<1x256xf32> to vector<8x256xf32>
    %5 = arith.addf %2, %4 : vector<8x256xf32>
    %cst_5 = arith.constant 2.000000e-01 : f32
    %6 = vector.broadcast %cst_5 : f32 to vector<8x256xf32>
    %7 = arith.mulf %6, %5 : vector<8x256xf32>
    %8 = arith.maximumf %5, %7 : vector<8x256xf32>
    %9 = arith.truncf %8 : vector<8x256xf32> to vector<8x256xbf16>
    %c0_6 = arith.constant 0 : index
    %c0_7 = arith.constant 0 : index
    %10 = vector.load %arg5[%c0_6, %c0_7] : memref<256x512xbf16, #tpu.memory_space<vmem>>, vector<256x512xbf16>
    %cst_8 = arith.constant dense<0.000000e+00> : vector<8x512xf32>
    %11 = tpu.matmul %9, %10, %cst_8 {dimension_numbers = #tpu.dot_dimension_numbers<[1], [0], [0], [1], [0, 0, 1, 1], [], []>} : vector<8x256xbf16>, vector<256x512xbf16>, vector<8x512xf32> -> vector<8x512xf32>
    %c0_9 = arith.constant 0 : index
    %c0_10 = arith.constant 0 : index
    %12 = vector.load %arg6[%c0_9, %c0_10] : memref<1x512xf32, #tpu.memory_space<vmem>>, vector<1x512xf32>
    %13 = vector.broadcast %12 : vector<1x512xf32> to vector<8x512xf32>
    %14 = arith.addf %11, %13 : vector<8x512xf32>
    %cst_11 = arith.constant 2.000000e-01 : f32
    %15 = vector.broadcast %cst_11 : f32 to vector<8x512xf32>
    %16 = arith.mulf %15, %14 : vector<8x512xf32>
    %17 = arith.maximumf %14, %16 : vector<8x512xf32>
    %18 = arith.truncf %17 : vector<8x512xf32> to vector<8x512xbf16>
    %c0_12 = arith.constant 0 : index
    %c0_13 = arith.constant 0 : index
    %19 = vector.load %arg7[%c0_12, %c0_13] : memref<512x512xbf16, #tpu.memory_space<vmem>>, vector<512x512xbf16>
    %cst_14 = arith.constant dense<0.000000e+00> : vector<8x512xf32>
    %20 = tpu.matmul %18, %19, %cst_14 {dimension_numbers = #tpu.dot_dimension_numbers<[1], [0], [0], [1], [0, 0, 1, 1], [], []>} : vector<8x512xbf16>, vector<512x512xbf16>, vector<8x512xf32> -> vector<8x512xf32>
    %c0_15 = arith.constant 0 : index
    %c0_16 = arith.constant 0 : index
    %21 = vector.load %arg8[%c0_15, %c0_16] : memref<1x512xf32, #tpu.memory_space<vmem>>, vector<1x512xf32>
    %22 = vector.broadcast %21 : vector<1x512xf32> to vector<8x512xf32>
    %23 = arith.addf %20, %22 : vector<8x512xf32>
    %cst_17 = arith.constant 2.000000e-01 : f32
    %24 = vector.broadcast %cst_17 : f32 to vector<8x512xf32>
    %25 = arith.mulf %24, %23 : vector<8x512xf32>
    %26 = arith.maximumf %23, %25 : vector<8x512xf32>
    %27 = arith.truncf %26 : vector<8x512xf32> to vector<8x512xbf16>
    %c0_18 = arith.constant 0 : index
    %c0_19 = arith.constant 0 : index
    %28 = vector.load %arg9[%c0_18, %c0_19] : memref<512x256xbf16, #tpu.memory_space<vmem>>, vector<512x256xbf16>
    %cst_20 = arith.constant dense<0.000000e+00> : vector<8x256xf32>
    %29 = tpu.matmul %27, %28, %cst_20 {dimension_numbers = #tpu.dot_dimension_numbers<[1], [0], [0], [1], [0, 0, 1, 1], [], []>} : vector<8x512xbf16>, vector<512x256xbf16>, vector<8x256xf32> -> vector<8x256xf32>
    %c0_21 = arith.constant 0 : index
    %c0_22 = arith.constant 0 : index
    %30 = vector.load %arg10[%c0_21, %c0_22] : memref<1x256xf32, #tpu.memory_space<vmem>>, vector<1x256xf32>
    %31 = vector.broadcast %30 : vector<1x256xf32> to vector<8x256xf32>
    %32 = arith.addf %29, %31 : vector<8x256xf32>
    %cst_23 = arith.constant 2.000000e-01 : f32
    %33 = vector.broadcast %cst_23 : f32 to vector<8x256xf32>
    %34 = arith.mulf %33, %32 : vector<8x256xf32>
    %35 = arith.maximumf %32, %34 : vector<8x256xf32>
    %36 = arith.truncf %35 : vector<8x256xf32> to vector<8x256xbf16>
    %c0_24 = arith.constant 0 : index
    %c0_25 = arith.constant 0 : index
    %37 = vector.load %arg11[%c0_24, %c0_25] : memref<256x128xbf16, #tpu.memory_space<vmem>>, vector<256x128xbf16>
    %cst_26 = arith.constant dense<0.000000e+00> : vector<8x128xf32>
    %38 = tpu.matmul %36, %37, %cst_26 {dimension_numbers = #tpu.dot_dimension_numbers<[1], [0], [0], [1], [0, 0, 1, 1], [], []>} : vector<8x256xbf16>, vector<256x128xbf16>, vector<8x128xf32> -> vector<8x128xf32>
    %c0_27 = arith.constant 0 : index
    %c0_28 = arith.constant 0 : index
    %39 = vector.load %arg12[%c0_27, %c0_28] : memref<1x128xf32, #tpu.memory_space<vmem>>, vector<1x128xf32>
    %40 = vector.broadcast %39 : vector<1x128xf32> to vector<8x128xf32>
    %41 = arith.addf %38, %40 : vector<8x128xf32>
    %cst_29 = arith.constant 2.000000e-01 : f32
    %42 = vector.broadcast %cst_29 : f32 to vector<8x128xf32>
    %43 = arith.mulf %42, %41 : vector<8x128xf32>
    %44 = arith.maximumf %41, %43 : vector<8x128xf32>
    %45 = arith.truncf %44 : vector<8x128xf32> to vector<8x128xbf16>
    %c0_30 = arith.constant 0 : index
    %c0_31 = arith.constant 0 : index
    %46 = vector.load %arg13[%c0_30, %c0_31] : memref<128x128xbf16, #tpu.memory_space<vmem>>, vector<128x128xbf16>
    %cst_32 = arith.constant dense<0.000000e+00> : vector<8x128xf32>
    %47 = tpu.matmul %45, %46, %cst_32 {dimension_numbers = #tpu.dot_dimension_numbers<[1], [0], [0], [1], [0, 0, 1, 1], [], []>} : vector<8x128xbf16>, vector<128x128xbf16>, vector<8x128xf32> -> vector<8x128xf32>
    %c0_33 = arith.constant 0 : index
    %c0_34 = arith.constant 0 : index
    %48 = vector.load %arg14[%c0_33, %c0_34] : memref<1x128xf32, #tpu.memory_space<vmem>>, vector<1x128xf32>
    %49 = vector.broadcast %48 : vector<1x128xf32> to vector<8x128xf32>
    %50 = arith.addf %47, %49 : vector<8x128xf32>
    %c0_35 = arith.constant 0 : index
    %c0_36 = arith.constant 0 : index
    %51 = vector.load %arg26[%c0_35, %c0_36] : memref<8x128xf32, #tpu.memory_space<vmem>>, vector<8x128xf32>
    tpu.vector_store %arg26[%c0_35, %c0_36], %50 {strides = array<i32>} : memref<8x128xf32, #tpu.memory_space<vmem>>, vector<8x128xf32>,
    %c0_37 = arith.constant 0 : index
    %c0_38 = arith.constant 0 : index
    %52 = vector.load %arg2[%c0_37, %c0_38] : memref<8x128xf32, #tpu.memory_space<vmem>>, vector<8x128xf32>
    %53 = arith.mulf %50, %52 : vector<8x128xf32>
    %54 = arith.truncf %53 : vector<8x128xf32> to vector<8x128xbf16>
    %c0_39 = arith.constant 0 : index
    %c0_40 = arith.constant 0 : index
    %55 = vector.load %arg15[%c0_39, %c0_40] : memref<128x128xbf16, #tpu.memory_space<vmem>>, vector<128x128xbf16>
    %cst_41 = arith.constant dense<0.000000e+00> : vector<8x128xf32>
    %56 = tpu.matmul %54, %55, %cst_41 {dimension_numbers = #tpu.dot_dimension_numbers<[1], [0], [0], [1], [0, 0, 1, 1], [], []>} : vector<8x128xbf16>, vector<128x128xbf16>, vector<8x128xf32> -> vector<8x128xf32>
    %c0_42 = arith.constant 0 : index
    %c0_43 = arith.constant 0 : index
    %57 = vector.load %arg16[%c0_42, %c0_43] : memref<1x128xf32, #tpu.memory_space<vmem>>, vector<1x128xf32>
    %58 = vector.broadcast %57 : vector<1x128xf32> to vector<8x128xf32>
    %59 = arith.addf %56, %58 : vector<8x128xf32>
    %cst_44 = arith.constant 2.000000e-01 : f32
    %60 = vector.broadcast %cst_44 : f32 to vector<8x128xf32>
    %61 = arith.mulf %60, %59 : vector<8x128xf32>
    %62 = arith.maximumf %59, %61 : vector<8x128xf32>
    %63 = arith.truncf %62 : vector<8x128xf32> to vector<8x128xbf16>
    %c0_45 = arith.constant 0 : index
    %c0_46 = arith.constant 0 : index
    %64 = vector.load %arg17[%c0_45, %c0_46] : memref<128x256xbf16, #tpu.memory_space<vmem>>, vector<128x256xbf16>
    %cst_47 = arith.constant dense<0.000000e+00> : vector<8x256xf32>
    %65 = tpu.matmul %63, %64, %cst_47 {dimension_numbers = #tpu.dot_dimension_numbers<[1], [0], [0], [1], [0, 0, 1, 1], [], []>} : vector<8x128xbf16>, vector<128x256xbf16>, vector<8x256xf32> -> vector<8x256xf32>
    %c0_48 = arith.constant 0 : index
    %c0_49 = arith.constant 0 : index
    %66 = vector.load %arg18[%c0_48, %c0_49] : memref<1x256xf32, #tpu.memory_space<vmem>>, vector<1x256xf32>
    %67 = vector.broadcast %66 : vector<1x256xf32> to vector<8x256xf32>
    %68 = arith.addf %65, %67 : vector<8x256xf32>
    %cst_50 = arith.constant 2.000000e-01 : f32
    %69 = vector.broadcast %cst_50 : f32 to vector<8x256xf32>
    %70 = arith.mulf %69, %68 : vector<8x256xf32>
    %71 = arith.maximumf %68, %70 : vector<8x256xf32>
    %72 = arith.truncf %71 : vector<8x256xf32> to vector<8x256xbf16>
    %c0_51 = arith.constant 0 : index
    %c0_52 = arith.constant 0 : index
    %73 = vector.load %arg19[%c0_51, %c0_52] : memref<256x512xbf16, #tpu.memory_space<vmem>>, vector<256x512xbf16>
    %cst_53 = arith.constant dense<0.000000e+00> : vector<8x512xf32>
    %74 = tpu.matmul %72, %73, %cst_53 {dimension_numbers = #tpu.dot_dimension_numbers<[1], [0], [0], [1], [0, 0, 1, 1], [], []>} : vector<8x256xbf16>, vector<256x512xbf16>, vector<8x512xf32> -> vector<8x512xf32>
    %c0_54 = arith.constant 0 : index
    %c0_55 = arith.constant 0 : index
    %75 = vector.load %arg20[%c0_54, %c0_55] : memref<1x512xf32, #tpu.memory_space<vmem>>, vector<1x512xf32>
    %76 = vector.broadcast %75 : vector<1x512xf32> to vector<8x512xf32>
    %77 = arith.addf %74, %76 : vector<8x512xf32>
    %cst_56 = arith.constant 2.000000e-01 : f32
    %78 = vector.broadcast %cst_56 : f32 to vector<8x512xf32>
    %79 = arith.mulf %78, %77 : vector<8x512xf32>
    %80 = arith.maximumf %77, %79 : vector<8x512xf32>
    %81 = arith.truncf %80 : vector<8x512xf32> to vector<8x512xbf16>
    %c0_57 = arith.constant 0 : index
    %c0_58 = arith.constant 0 : index
    %82 = vector.load %arg21[%c0_57, %c0_58] : memref<512x256xbf16, #tpu.memory_space<vmem>>, vector<512x256xbf16>
    %cst_59 = arith.constant dense<0.000000e+00> : vector<8x256xf32>
    %83 = tpu.matmul %81, %82, %cst_59 {dimension_numbers = #tpu.dot_dimension_numbers<[1], [0], [0], [1], [0, 0, 1, 1], [], []>} : vector<8x512xbf16>, vector<512x256xbf16>, vector<8x256xf32> -> vector<8x256xf32>
    %c0_60 = arith.constant 0 : index
    %c0_61 = arith.constant 0 : index
    %84 = vector.load %arg22[%c0_60, %c0_61] : memref<1x256xf32, #tpu.memory_space<vmem>>, vector<1x256xf32>
    %85 = vector.broadcast %84 : vector<1x256xf32> to vector<8x256xf32>
    %86 = arith.addf %83, %85 : vector<8x256xf32>
    %cst_62 = arith.constant 2.000000e-01 : f32
    %87 = vector.broadcast %cst_62 : f32 to vector<8x256xf32>
    %88 = arith.mulf %87, %86 : vector<8x256xf32>
    %89 = arith.maximumf %86, %88 : vector<8x256xf32>
    %90 = arith.truncf %89 : vector<8x256xf32> to vector<8x256xbf16>
    %c0_63 = arith.constant 0 : index
    %c0_64 = arith.constant 0 : index
    %91 = vector.load %arg23[%c0_63, %c0_64] : memref<256x256xbf16, #tpu.memory_space<vmem>>, vector<256x256xbf16>
    %cst_65 = arith.constant dense<0.000000e+00> : vector<8x256xf32>
    %92 = tpu.matmul %90, %91, %cst_65 {dimension_numbers = #tpu.dot_dimension_numbers<[1], [0], [0], [1], [0, 0, 1, 1], [], []>} : vector<8x256xbf16>, vector<256x256xbf16>, vector<8x256xf32> -> vector<8x256xf32>
    %c0_66 = arith.constant 0 : index
    %c0_67 = arith.constant 0 : index
    %93 = vector.load %arg24[%c0_66, %c0_67] : memref<1x256xf32, #tpu.memory_space<vmem>>, vector<1x256xf32>
    %94 = vector.broadcast %93 : vector<1x256xf32> to vector<8x256xf32>
    %95 = arith.addf %92, %94 : vector<8x256xf32>
    %c0_68 = arith.constant 0 : index
    %c0_69 = arith.constant 0 : index
    %96 = vector.load %arg25[%c0_68, %c0_69] : memref<8x256xf32, #tpu.memory_space<vmem>>, vector<8x256xf32>
    tpu.vector_store %arg25[%c0_68, %c0_69], %95 {strides = array<i32>} : memref<8x256xf32, #tpu.memory_space<vmem>>, vector<8x256xf32>,
    return
  }
  func.func @transform_0(%arg0: i32) -> (i32, i32) {
    %c0_i32 = arith.constant 0 : i32
    %c0_i32_0 = arith.constant 0 : i32
    return %arg0, %c0_i32 : i32, i32
  }
  func.func @transform_1(%arg0: i32) -> (i32, i32) {
    %c0_i32 = arith.constant 0 : i32
    %c0_i32_0 = arith.constant 0 : i32
    return %arg0, %c0_i32 : i32, i32
  }
  func.func @transform_2(%arg0: i32) -> (i32, i32) {
    %c0_i32 = arith.constant 0 : i32
    %c0_i32_0 = arith.constant 0 : i32
    %c0_i32_1 = arith.constant 0 : i32
    return %c0_i32, %c0_i32_0 : i32, i32
  }
  func.func @transform_3(%arg0: i32) -> (i32, i32) {
    %c0_i32 = arith.constant 0 : i32
    %c0_i32_0 = arith.constant 0 : i32
    %c0_i32_1 = arith.constant 0 : i32
    return %c0_i32, %c0_i32_0 : i32, i32
  }
  func.func @transform_4(%arg0: i32) -> (i32, i32) {
    %c0_i32 = arith.constant 0 : i32
    %c0_i32_0 = arith.constant 0 : i32
    %c0_i32_1 = arith.constant 0 : i32
    return %c0_i32, %c0_i32_0 : i32, i32
  }
  func.func @transform_5(%arg0: i32) -> (i32, i32) {
    %c0_i32 = arith.constant 0 : i32
    %c0_i32_0 = arith.constant 0 : i32
    %c0_i32_1 = arith.constant 0 : i32
    return %c0_i32, %c0_i32_0 : i32, i32
  }
  func.func @transform_6(%arg0: i32) -> (i32, i32) {
    %c0_i32 = arith.constant 0 : i32
    %c0_i32_0 = arith.constant 0 : i32
    %c0_i32_1 = arith.constant 0 : i32
    return %c0_i32, %c0_i32_0 : i32, i32
  }
  func.func @transform_7(%arg0: i32) -> (i32, i32) {
    %c0_i32 = arith.constant 0 : i32
    %c0_i32_0 = arith.constant 0 : i32
    %c0_i32_1 = arith.constant 0 : i32
    return %c0_i32, %c0_i32_0 : i32, i32
  }
  func.func @transform_8(%arg0: i32) -> (i32, i32) {
    %c0_i32 = arith.constant 0 : i32
    %c0_i32_0 = arith.constant 0 : i32
    %c0_i32_1 = arith.constant 0 : i32
    return %c0_i32, %c0_i32_0 : i32, i32
  }
  func.func @transform_9(%arg0: i32) -> (i32, i32) {
    %c0_i32 = arith.constant 0 : i32
    %c0_i32_0 = arith.constant 0 : i32
    %c0_i32_1 = arith.constant 0 : i32
    return %c0_i32, %c0_i32_0 : i32, i32
  }
  func.func @transform_10(%arg0: i32) -> (i32, i32) {
    %c0_i32 = arith.constant 0 : i32
    %c0_i32_0 = arith.constant 0 : i32
    %c0_i32_1 = arith.constant 0 : i32
    return %c0_i32, %c0_i32_0 : i32, i32
  }
  func.func @transform_11(%arg0: i32) -> (i32, i32) {
    %c0_i32 = arith.constant 0 : i32
    %c0_i32_0 = arith.constant 0 : i32
    %c0_i32_1 = arith.constant 0 : i32
    return %c0_i32, %c0_i32_0 : i32, i32
  }
  func.func @transform_12(%arg0: i32) -> (i32, i32) {
    %c0_i32 = arith.constant 0 : i32
    %c0_i32_0 = arith.constant 0 : i32
    %c0_i32_1 = arith.constant 0 : i32
    return %c0_i32, %c0_i32_0 : i32, i32
  }
  func.func @transform_13(%arg0: i32) -> (i32, i32) {
    %c0_i32 = arith.constant 0 : i32
    %c0_i32_0 = arith.constant 0 : i32
    %c0_i32_1 = arith.constant 0 : i32
    return %c0_i32, %c0_i32_0 : i32, i32
  }
  func.func @transform_14(%arg0: i32) -> (i32, i32) {
    %c0_i32 = arith.constant 0 : i32
    %c0_i32_0 = arith.constant 0 : i32
    %c0_i32_1 = arith.constant 0 : i32
    return %c0_i32, %c0_i32_0 : i32, i32
  }
  func.func @transform_15(%arg0: i32) -> (i32, i32) {
    %c0_i32 = arith.constant 0 : i32
    %c0_i32_0 = arith.constant 0 : i32
    %c0_i32_1 = arith.constant 0 : i32
    return %c0_i32, %c0_i32_0 : i32, i32
  }
  func.func @transform_16(%arg0: i32) -> (i32, i32) {
    %c0_i32 = arith.constant 0 : i32
    %c0_i32_0 = arith.constant 0 : i32
    %c0_i32_1 = arith.constant 0 : i32
    return %c0_i32, %c0_i32_0 : i32, i32
  }
  func.func @transform_17(%arg0: i32) -> (i32, i32) {
    %c0_i32 = arith.constant 0 : i32
    %c0_i32_0 = arith.constant 0 : i32
    %c0_i32_1 = arith.constant 0 : i32
    return %c0_i32, %c0_i32_0 : i32, i32
  }
  func.func @transform_18(%arg0: i32) -> (i32, i32) {
    %c0_i32 = arith.constant 0 : i32
    %c0_i32_0 = arith.constant 0 : i32
    %c0_i32_1 = arith.constant 0 : i32
    return %c0_i32, %c0_i32_0 : i32, i32
  }
  func.func @transform_19(%arg0: i32) -> (i32, i32) {
    %c0_i32 = arith.constant 0 : i32
    %c0_i32_0 = arith.constant 0 : i32
    %c0_i32_1 = arith.constant 0 : i32
    return %c0_i32, %c0_i32_0 : i32, i32
  }
  func.func @transform_20(%arg0: i32) -> (i32, i32) {
    %c0_i32 = arith.constant 0 : i32
    %c0_i32_0 = arith.constant 0 : i32
    %c0_i32_1 = arith.constant 0 : i32
    return %c0_i32, %c0_i32_0 : i32, i32
  }
  func.func @transform_21(%arg0: i32) -> (i32, i32) {
    %c0_i32 = arith.constant 0 : i32
    %c0_i32_0 = arith.constant 0 : i32
    %c0_i32_1 = arith.constant 0 : i32
    return %c0_i32, %c0_i32_0 : i32, i32
  }
  func.func @transform_22(%arg0: i32) -> (i32, i32) {
    %c0_i32 = arith.constant 0 : i32
    %c0_i32_0 = arith.constant 0 : i32
    %c0_i32_1 = arith.constant 0 : i32
    return %c0_i32, %c0_i32_0 : i32, i32
  }
  func.func @transform_23(%arg0: i32) -> (i32, i32) {
    %c0_i32 = arith.constant 0 : i32
    %c0_i32_0 = arith.constant 0 : i32
    %c0_i32_1 = arith.constant 0 : i32
    return %c0_i32, %c0_i32_0 : i32, i32
  }
  func.func @transform_24(%arg0: i32) -> (i32, i32) {
    %c0_i32 = arith.constant 0 : i32
    %c0_i32_0 = arith.constant 0 : i32
    return %arg0, %c0_i32 : i32, i32
  }
  func.func @transform_25(%arg0: i32) -> (i32, i32) {
    %c0_i32 = arith.constant 0 : i32
    %c0_i32_0 = arith.constant 0 : i32
    return %arg0, %c0_i32 : i32, i32
  }
}

</mosaic_0001>

<bundles_post_ra>
// kernel: _vae_forward.1
= control target key start
LH: loop header
LB: loop body
LE: loop exit
PB: predicated region body
PF: predicated region fallthrough
CT: control target
= control target key end

     0   :  { %s6157_s0 = inlined_call_operand.vmem [shape: bf16[8,256], index: 0, kind: input, shape index: {}]   ;;  %s6158_s1 = inlined_call_operand.vmem [shape: f32[8,128], index: 1, kind: input, shape index: {}]   ;;  %s6159_s2 = inlined_call_operand.hbm [shape: bf16[256,256], index: 2, kind: input, shape index: {}]   ;;  %s6160_s3 = inlined_call_operand.vmem [shape: f32[1,256], index: 3, kind: input, shape index: {}]   ;;  %s6161_s4 = inlined_call_operand.hbm [shape: bf16[256,512], index: 4, kind: input, shape index: {}]   ;;  %s6162_s5 = inlined_call_operand.vmem [shape: f32[1,512], index: 5, kind: input, shape index: {}]   ;;  %s6163_s6 = inlined_call_operand.hbm [shape: bf16[512,512], index: 6, kind: input, shape index: {}]   ;;  %s6164_s7 = inlined_call_operand.vmem [shape: f32[1,512], index: 7, kind: input, shape index: {}]   ;;  %s6165_s8 = inlined_call_operand.hbm [shape: bf16[512,256], index: 8, kind: input, shape index: {}]   ;;  %s6166_s9 = inlined_call_operand.vmem [shape: f32[1,256], index: 9, kind: input, shape index: {}]   ;;  %s6167_s10 = inlined_call_operand.hbm [shape: bf16[256,128], index: 10, kind: input, shape index: {}]   ;;  %s6168_s11 = inlined_call_operand.vmem [shape: f32[1,128], index: 11, kind: input, shape index: {}]   ;;  %s6169_s12 = inlined_call_operand.vmem [shape: bf16[128,128], index: 12, kind: input, shape index: {}]   ;;  %s6170_s13 = inlined_call_operand.vmem [shape: f32[1,128], index: 13, kind: input, shape index: {}]   ;;  %s6171_s14 = inlined_call_operand.hbm [shape: bf16[128,128], index: 14, kind: input, shape index: {}]   ;;  %s6172_s15 = inlined_call_operand.vmem [shape: f32[1,128], index: 15, kind: input, shape index: {}]   ;;  %s6173_s16 = inlined_call_operand.hbm [shape: bf16[128,256], index: 16, kind: input, shape index: {}]   ;;  %s6174_s17 = inlined_call_operand.vmem [shape: f32[1,256], index: 17, kind: input, shape index: {}]   ;;  %s6175_s18 = inlined_call_operand.hbm [shape: bf16[256,512], index: 18, kind: input, shape index: {}]   ;;  %s6176_s19 = inlined_call_operand.vmem [shape: f32[1,512], index: 19, kind: input, shape index: {}]   ;;  %s6177_s20 = inlined_call_operand.hbm [shape: bf16[512,256], index: 20, kind: input, shape index: {}]   ;;  %s6178_s21 = inlined_call_operand.vmem [shape: f32[1,256], index: 21, kind: input, shape index: {}]   ;;  %s6179_s22 = inlined_call_operand.hbm [shape: bf16[256,256], index: 22, kind: input, shape index: {}]   ;;  %s6180_s23 = inlined_call_operand.vmem [shape: f32[1,256], index: 23, kind: input, shape index: {}]   ;;  %s6181_s24 = inlined_call_operand.hbm [shape: f32[8,256], index: 24, kind: output, shape index: {0}]   ;;  %s6182_s25 = inlined_call_operand.vmem [shape: f32[8,128], index: 25, kind: output, shape index: {1}]  }
   0x1   :  { %6189 = sst [smem:[#allocation27_spill]] %s6157_s0 }
   0x2   :  { %6190 = sst [smem:[#allocation28_spill]] %s6158_s1 }
   0x3   :  { %6191 = sst [smem:[#allocation29_spill]] %s6159_s2 }
   0x4   :  { %6192 = sst [smem:[#allocation30_spill]] %s6160_s3 }
   0x5   :  { %6193 = sst [smem:[#allocation31_spill]] %s6161_s4 }
   0x6   :  { %6194 = sst [smem:[#allocation32_spill]] %s6162_s5 }
   0x7   :  { %6195 = sst [smem:[#allocation33_spill]] %s6163_s6 }
   0x8   :  { %6196 = sst [smem:[#allocation34_spill]] %s6164_s7 }
   0x9   :  { %6197 = sst [smem:[#allocation35_spill]] %s6165_s8 }
   0xa   :  { %6198 = sst [smem:[#allocation36_spill]] %s6166_s9 }
   0xb   :  { %31 = vsyncpa [#allocation3], 0 }
   0xc   :  { %32 = vsyncpa [#allocation6], 0 }
   0xd   :  { %33 = vsyncpa [#allocation9], 0 }
   0xe   :  { %34 = vsyncpa [#allocation12], 0 }
   0xf   :  { %35 = vsyncpa [#allocation15], 0 }
  0x10   :  { %36 = vsyncpa [#allocation18], 0 }
  0x11   :  { %37 = vsyncpa [#allocation4], 0  ;;  %s5808_s29 = smov [#allocation5]  }
  0x12   :  { %s61_s2 = sshll.u32 %s5808_s29, 4  ;;  %s62_s2 = int_to_ptr.vmem [resolvable:$true] %s61_s2 }
  0x13   :  { %s5582_s6 = scalar_lea.vmem %s62_s2, 8192  ;;  %p5587_p1 = scmp.lt.s32.totalorder %s62_s2, %s62_s2 }
  0x14   :  { %p5583_p0 = scmp.ne.s32.totalorder %s62_s2, %s5582_s6  ;;  %p5588_p2 = scmp.lt.s32.totalorder %s5582_s6, %s5582_s6 }
  0x16   :  { %p5589_p3 = por %p5588_p2, %p5587_p1 }
  0x18   :  { %p5590_p4 = pnand %p5589_p3, %p5583_p0 }
  0x1a   :  { %5593 = shalt.err (!%p5590_p4)
}
  0x1b   :  { %s5809_s30 = smov 256   ;;  %s5810_s7 = smov 16  }
  0x1c   :  { %s6199_s1 = sld [smem:[#allocation31_spill]]  ;;  %s5811_s8 = smov [#allocation8]  }
  0x1d   :  { %s89_s27 = sshll.u32 %s5811_s8, 4  ;;  %s90_s27 = int_to_ptr.vmem [resolvable:$true] %s89_s27 }
  0x1e   :  { %s5602_s4 = scalar_lea.vmem %s90_s27, 8192  ;;  %p5607_p6 = scmp.lt.s32.totalorder %s90_s27, %s90_s27 }
  0x1f   :  { %p5603_p5 = scmp.ne.s32.totalorder %s90_s27, %s5602_s4  ;;  %p5608_p7 = scmp.lt.s32.totalorder %s5602_s4, %s5602_s4 }
  0x21   :  { %p5609_p8 = por %p5608_p7, %p5607_p6 }
  0x22   :  { %67 = dma.hbm_to_vmem [thread:$0]  %s6199_s1, 8192, %s62_s2, [#allocation6], %s5809_s30, %s5809_s30, %s5810_s7  }
  0x23   :  { %p5610_p9 = pnand %p5609_p8, %p5603_p5 }
  0x25   :  { %5613 = shalt.err (!%p5610_p9)
}
  0x26   :  { %s6183_s28 = smov 128   ;;  %s6185_s9 = smov 8  }
  0x27   :  { %s6200_s29 = sld [smem:[#allocation35_spill]]  ;;  %s5814_s2 = smov [#allocation11]  }
  0x28   :  { %s121_s6 = sshll.u32 %s5814_s2, 4  ;;  %s5815_s3 = smov [#allocation14]   ;;  %s122_s6 = int_to_ptr.vmem [resolvable:$true] %s121_s6 }
  0x29   :  { %s149_s26 = sshll.u32 %s5815_s3, 4  ;;  %s5622_s1 = scalar_lea.vmem %s122_s6, 1024  ;;  %s150_s26 = int_to_ptr.vmem [resolvable:$true] %s149_s26 }
  0x2a   :  { %p5623_p10 = scmp.ne.s32.totalorder %s122_s6, %s5622_s1  ;;  %p5627_p11 = scmp.lt.s32.totalorder %s122_s6, %s122_s6 }
  0x2b   :  { %p5628_p12 = scmp.lt.s32.totalorder %s5622_s1, %s5622_s1 }
  0x2d   :  { %95 = dma.hbm_to_vmem [thread:$0]  %s6200_s29, 8192, %s90_s27, [#allocation9], %s6183_s28, %s6183_s28, %s6185_s9  }
  0x2e   :  { %p5629_p13 = por %p5628_p12, %p5627_p11 }
  0x30   :  { %p5630_p0 = pnand %p5629_p13, %p5623_p10 }
  0x32   :  { %5633 = shalt.err (!%p5630_p0)
}
  0x33   :  { %s6187_s8 = smov 64   ;;  %s6188_s4 = smov 4  }
  0x34   :  { %127 = dma.hbm_to_vmem [thread:$0]  %s6171_s14, 1024, %s122_s6, [#allocation12], %s6187_s8, %s6187_s8, %s6188_s4  }
  0x35   :  { %s5642_s0 = scalar_lea.vmem %s150_s26, 8192  ;;  %p5647_p2 = scmp.lt.s32.totalorder %s150_s26, %s150_s26 }
  0x36   :  { %p5643_p1 = scmp.ne.s32.totalorder %s150_s26, %s5642_s0  ;;  %p5648_p3 = scmp.lt.s32.totalorder %s5642_s0, %s5642_s0 }
  0x38   :  { %p5649_p4 = por %p5648_p3, %p5647_p2 }
  0x3a   :  { %p5650_p5 = pnand %p5649_p4, %p5643_p1 }
  0x3c   :  { %5653 = shalt.err (!%p5650_p5)
}
  0x3d   :  { %155 = dma.hbm_to_vmem [thread:$0]  %s6175_s18, 8192, %s150_s26, [#allocation15], %s5809_s30, %s5809_s30, %s5810_s7  }
  0x3e   :  { %s5818_s3 = smov [#allocation2]   ;;  %s5819_s28 = smov [#allocation7]  }
  0x3f   :  { %s47_s1 = sshll.u32 %s5818_s3, 4  ;;  %s75_s9 = sshll.u32 %s5819_s28, 4  ;;  %s48_s1 = int_to_ptr.vmem [resolvable:$true] %s47_s1  ;;  %s76_s9 = int_to_ptr.vmem [resolvable:$true] %s75_s9 }
  0x40   :  { %s5662_s14 = scalar_lea.vmem %s48_s1, 4096  ;;  %p5667_p7 = scmp.lt.s32.totalorder %s48_s1, %s48_s1 }
  0x41   :  { %p5663_p6 = scmp.ne.s32.totalorder %s48_s1, %s5662_s14  ;;  %p5668_p8 = scmp.lt.s32.totalorder %s5662_s14, %s5662_s14 }
  0x43   :  { %p5669_p9 = por %p5668_p8, %p5667_p7 }
  0x45   :  { %p5670_p10 = pnand %p5669_p9, %p5663_p6 }
  0x47   :  { %5673 = shalt.err (!%p5670_p10)
}
  0x48   :  { %s6201_s6 = smov 8   ;;  %s6202_s5 = smov 128  }
  0x49   :  { %s6203_s29 = sld [smem:[#allocation29_spill]]  ;;  %s5682_s18 = scalar_lea.vmem %s76_s9, 16384 }
  0x4a   :  { %p5683_p11 = scmp.ne.s32.totalorder %s76_s9, %s5682_s18  ;;  %p5687_p12 = scmp.lt.s32.totalorder %s76_s9, %s76_s9 }
  0x4b   :  { %p5688_p13 = scmp.lt.s32.totalorder %s5682_s18, %s5682_s18 }
  0x4d   :  { %p5689_p0 = por %p5688_p13, %p5687_p12 }
  0x4f   :  { %53 = dma.hbm_to_vmem [thread:$0]  %s6203_s29, 4096, %s48_s1, [#allocation3], %s6202_s5, %s6202_s5, %s6201_s6  }
  0x50   :  { %p5690_p1 = pnand %p5689_p0, %p5683_p11 }
  0x52   :  { %5693 = shalt.err (!%p5690_p1)
}
  0x53   :  { %s6204_s2 = sld [smem:[#allocation33_spill]]  ;;  %s5820_s3 = smov [#allocation10]  }
  0x54   :  { %s103_s14 = sshll.u32 %s5820_s3, 4  ;;  %s5821_s8 = smov [#allocation13]   ;;  %s104_s14 = int_to_ptr.vmem [resolvable:$true] %s103_s14 }
  0x55   :  { %s135_s4 = sshll.u32 %s5821_s8, 4  ;;  %s5702_s1 = scalar_lea.vmem %s104_s14, 2048  ;;  %s136_s4 = int_to_ptr.vmem [resolvable:$true] %s135_s4 }
  0x56   :  { %p5703_p2 = scmp.ne.s32.totalorder %s104_s14, %s5702_s1  ;;  %p5707_p3 = scmp.lt.s32.totalorder %s104_s14, %s104_s14 }
  0x57   :  { %p5708_p4 = scmp.lt.s32.totalorder %s5702_s1, %s5702_s1 }
  0x59   :  { %81 = dma.hbm_to_vmem [thread:$0]  %s6204_s2, 16384, %s76_s9, [#allocation6], %s5809_s30, %s5809_s30, %s5810_s7  }
  0x5a   :  { %p5709_p5 = por %p5708_p4, %p5707_p3 }
  0x5c   :  { %p5710_p6 = pnand %p5709_p5, %p5703_p2 }
  0x5e   :  { %5713 = shalt.err (!%p5710_p6)
}
  0x5f   :  { %s6205_s27 = smov 4   ;;  %s6206_s0 = smov 64  }
  0x60   :  { %109 = dma.hbm_to_vmem [thread:$0]  %s6167_s10, 2048, %s104_s14, [#allocation9], %s6206_s0, %s6206_s0, %s6205_s27  }
  0x61   :  { %s5722_s30 = scalar_lea.vmem %s136_s4, 2048  ;;  %p5727_p8 = scmp.lt.s32.totalorder %s136_s4, %s136_s4 }
  0x62   :  { %p5723_p7 = scmp.ne.s32.totalorder %s136_s4, %s5722_s30  ;;  %p5728_p9 = scmp.lt.s32.totalorder %s5722_s30, %s5722_s30 }
  0x64   :  { %p5729_p10 = por %p5728_p9, %p5727_p8 }
  0x66   :  { %p5730_p11 = pnand %p5729_p10, %p5723_p7 }
  0x68   :  { %5733 = shalt.err (!%p5730_p11)
}
  0x69   :  { %141 = dma.hbm_to_vmem [thread:$0]  %s6173_s16, 2048, %s136_s4, [#allocation12], %s6202_s5, %s6202_s5, %s6201_s6  }
  0x6a   :  { %s5822_s8 = smov [#allocation16]   ;;  %s5823_s26 = smov [#allocation17]  }
  0x6b   :  { %s163_s28 = sshll.u32 %s5822_s8, 4  ;;  %s177_s2 = sshll.u32 %s5823_s26, 4  ;;  %s164_s28 = int_to_ptr.vmem [resolvable:$true] %s163_s28  ;;  %s178_s2 = int_to_ptr.vmem [resolvable:$true] %s177_s2 }
  0x6c   :  { %s5742_s10 = scalar_lea.vmem %s164_s28, 8192  ;;  %p5747_p13 = scmp.lt.s32.totalorder %s164_s28, %s164_s28 }
  0x6d   :  { %p5743_p12 = scmp.ne.s32.totalorder %s164_s28, %s5742_s10  ;;  %p5748_p0 = scmp.lt.s32.totalorder %s5742_s10, %s5742_s10 }
  0x6f   :  { %p5749_p1 = por %p5748_p0, %p5747_p13 }
  0x71   :  { %p5750_p2 = pnand %p5749_p1, %p5743_p12 }
  0x73   :  { %5753 = shalt.err (!%p5750_p2)
}
  0x74   :  { %169 = dma.hbm_to_vmem [thread:$0]  %s6177_s20, 8192, %s164_s28, [#allocation15], %s6202_s5, %s6202_s5, %s6201_s6  }
  0x75   :  { %s5762_s16 = scalar_lea.vmem %s178_s2, 4096  ;;  %p5767_p4 = scmp.lt.s32.totalorder %s178_s2, %s178_s2 }
  0x76   :  { %p5763_p3 = scmp.ne.s32.totalorder %s178_s2, %s5762_s16  ;;  %p5768_p5 = scmp.lt.s32.totalorder %s5762_s16, %s5762_s16 }
  0x78   :  { %p5769_p6 = por %p5768_p5, %p5767_p4 }
  0x7a   :  { %p5770_p7 = pnand %p5769_p6, %p5763_p3 }
  0x7c   :  { %5773 = shalt.err (!%p5770_p7)
}
  0x7d   :  { %183 = dma.hbm_to_vmem [thread:$0]  %s6179_s22, 4096, %s178_s2, [#allocation18], %s6202_s5, %s6202_s5, %s6201_s6  }
  0x7e   :  { %5794 = dma.done.wait [#allocation3], 4096  }
  0x7f   :  { %5795 = vsyncadd [#allocation3], 4294963200 }
  0x80   :  { %5796 = dma.done.wait [#allocation6], 24576  }
  0x81   :  { %5797 = vsyncadd [#allocation6], 4294942720 }
  0x82   :  { %5798 = dma.done.wait [#allocation9], 10240  }
  0x83   :  { %5799 = vsyncadd [#allocation9], 4294957056 }
  0x84   :  { %5800 = dma.done.wait [#allocation12], 3072  }
  0x85   :  { %5801 = vsyncadd [#allocation12], 4294964224 }
  0x86   :  { %5802 = dma.done.wait [#allocation15], 16384  }
  0x87   :  { %5803 = vsyncadd [#allocation15], 4294950912 }
  0x88   :  { %5804 = dma.done.wait [#allocation18], 4096  }
  0x89   :  { %5805 = vsyncadd [#allocation18], 4294963200  ;;  %v4844_v0 = vld [vmem:[#allocation2 + $0x74] ss:$8 sps:$4 sm:$0xff]   ;;  %v4846_v1 = vld [vmem:[#allocation2 + $0x70] ss:$8 sps:$4 sm:$0xff]  }
  0x8a   :  { %429 = vmatprep.subr.bf16.mxu0 %v4844_v0  ;;  %v4847_v2 = vld [vmem:[#allocation2 + $0x64] ss:$8 sps:$4 sm:$0xff]   ;;  %v4849_v3 = vld [vmem:[#allocation2 + $0x60] ss:$8 sps:$4 sm:$0xff]   ;;  %v4850_v4 = vld [vmem:[#allocation2 + $0x54] ss:$8 sps:$4 sm:$0xff]  }
  0x8b   :  { %430 = vmatpush1.bf16.msra.mxu0 %v4846_v1  ;;  %v4852_v5 = vld [vmem:[#allocation2 + $0x50] ss:$8 sps:$4 sm:$0xff]   ;;  %v4853_v6 = vld [vmem:[#allocation2 + $0x44] ss:$8 sps:$4 sm:$0xff]   ;;  %v4855_v7 = vld [vmem:[#allocation2 + $0x40] ss:$8 sps:$4 sm:$0xff]  }
  0x8c   :  { %431 = vmatprep.subr.bf16.mxu0 %v4847_v2  ;;  %v4856_v8 = vld [vmem:[#allocation2 + $0x34] ss:$8 sps:$4 sm:$0xff]   ;;  %v4858_v9 = vld [vmem:[#allocation2 + $0x30] ss:$8 sps:$4 sm:$0xff]   ;;  %v4859_v10 = vld [vmem:[#allocation2 + $0x24] ss:$8 sps:$4 sm:$0xff]  }
  0x8d   :  { %v4861_v11 = vld [vmem:[#allocation2 + $0x20] ss:$8 sps:$4 sm:$0xff]   ;;  %v4862_v12 = vld [vmem:[#allocation2 + $0x14] ss:$8 sps:$4 sm:$0xff]   ;;  %s6207_s6 = sld [smem:[#allocation27_spill]]  ;;  %vm5825_vm0 = vmmov 0  }
  0x8e   :  { %v4894_v15 = vld [vmem:[#allocation5 + $0xe4] ss:$16 sps:$4 sm:$0xff]   ;;  %v4864_v16 = vld [vmem:[#allocation2 + $0x10] ss:$8 sps:$4 sm:$0xff]   ;;  %v4867_v20 = vld [vmem:[#allocation2] ss:$8 sps:$4 sm:$0xff]  }
  0x8f   :  { %432 = vmatpush1.bf16.msra.mxu0 %v4849_v3  ;;  %v4865_v17 = vld [vmem:[#allocation2 + $0x4] ss:$8 sps:$4 sm:$0xff]   ;;  %v4899_v18 = vld [vmem:[#allocation5 + $0xe0] ss:$16 sps:$4 sm:$0xff]   ;;  %882 = vmatprep.subr.bf16.mxu1 %v4894_v15  ;;  %v4868_v23 = vld [vmem:[#allocation2 + $0xf4] ss:$8 sps:$4 sm:$0xff]  }
  0x90   :  { %433 = vmatprep.subr.bf16.mxu0 %v4850_v4  ;;  %v4900_v19 = vld [vmem:[#allocation5 + $0xc4] ss:$16 sps:$4 sm:$0xff]   ;;  %883 = vmatpush1.bf16.msra.mxu1 %v4899_v18  ;;  %v4905_v21 = vld [vmem:[#allocation5 + $0xc0] ss:$16 sps:$4 sm:$0xff]   ;;  %v4898_v55 = vld [vmem:[#allocation5 + $0xec] ss:$16 sps:$4 sm:$0xff]  }
  0x91   :  { %884 = vmatprep.subr.bf16.mxu1 %v4900_v19  ;;  %v4906_v22 = vld [vmem:[#allocation5 + $0xa4] ss:$16 sps:$4 sm:$0xff]   ;;  %v4911_v24 = vld [vmem:[#allocation5 + $0xa0] ss:$16 sps:$4 sm:$0xff]   ;;  %v4896_v57 = vld [vmem:[#allocation5 + $0xe8] ss:$16 sps:$4 sm:$0xff]  }
  0x92   :  { %v4870_v25 = vld [vmem:[#allocation2 + $0xf0] ss:$8 sps:$4 sm:$0xff]   ;;  %v4912_v26 = vld [vmem:[#allocation5 + $0x84] ss:$16 sps:$4 sm:$0xff]   ;;  %v4873_v28 = vld [vmem:[#allocation2 + $0xe0] ss:$8 sps:$4 sm:$0xff]  }
  0x93   :  { %434 = vmatpush1.bf16.msra.mxu0 %v4852_v5  ;;  %v6021_v13 = vld [vmem:[%s6207_s6] sm:$0xff]  ;;  %v4874_v31 = vld [vmem:[#allocation2 + $0xd4] ss:$8 sps:$4 sm:$0xff]   ;;  %v4876_v33 = vld [vmem:[#allocation2 + $0xd0] ss:$8 sps:$4 sm:$0xff]   ;;  %s6208_s0 = sld [smem:[#allocation30_spill]] }
  0x94   :  { %435 = vmatprep.subr.bf16.mxu0 %v4853_v6  ;;  %v4244_v14 = vcombine.high %v6021_v13, %v6021_v13  ;;  %885 = vmatpush1.bf16.msra.mxu1 %v4905_v21  ;;  %v4871_v27 = vld [vmem:[#allocation2 + $0xe4] ss:$8 sps:$4 sm:$0xff]   ;;  %v4917_v29 = vld [vmem:[#allocation5 + $0x80] ss:$16 sps:$4 sm:$0xff]   ;;  %v4880_v39 = vld [vmem:[#allocation2 + $0xb4] ss:$8 sps:$4 sm:$0xff]   ;;  %v4243_v59 = vcombine.low %v6021_v13, %v6021_v13 }
  0x95   :  { %886 = vmatprep.subr.bf16.mxu1 %v4906_v22  ;;  %v4918_v30 = vld [vmem:[#allocation5 + $0x64] ss:$16 sps:$4 sm:$0xff]   ;;  %v4923_v32 = vld [vmem:[#allocation5 + $0x60] ss:$16 sps:$4 sm:$0xff]   ;;  %v4904_v60 = vld [vmem:[#allocation5 + $0xcc] ss:$16 sps:$4 sm:$0xff]  }
  0x96   :  { %461 = vmatprep.mubr.bf16.mxu0 %v4244_v14  ;;  %v4924_v34 = vld [vmem:[#allocation5 + $0x44] ss:$16 sps:$4 sm:$0xff]   ;;  %v4879_v36 = vld [vmem:[#allocation2 + $0xc0] ss:$8 sps:$4 sm:$0xff]   ;;  %v4882_v41 = vld [vmem:[#allocation2 + $0xb0] ss:$8 sps:$4 sm:$0xff]  }
  0x97   :  { %436 = vmatpush1.bf16.msra.mxu0 %v4855_v7  ;;  %v4877_v35 = vld [vmem:[#allocation2 + $0xc4] ss:$8 sps:$4 sm:$0xff]   ;;  %v4929_v37 = vld [vmem:[#allocation5 + $0x40] ss:$16 sps:$4 sm:$0xff]   ;;  %v4886_v47 = vld [vmem:[#allocation2 + $0x94] ss:$8 sps:$4 sm:$0xff]  }
  0x98   :  { %437 = vmatprep.subr.bf16.mxu0 %v4856_v8  ;;  %887 = vmatpush1.bf16.msra.mxu1 %v4911_v24  ;;  %v4930_v38 = vld [vmem:[#allocation5 + $0x24] ss:$16 sps:$4 sm:$0xff]   ;;  %v4935_v40 = vld [vmem:[#allocation5 + $0x20] ss:$16 sps:$4 sm:$0xff]   ;;  %v4902_v62 = vld [vmem:[#allocation5 + $0xc8] ss:$16 sps:$4 sm:$0xff]  }
  0x99   :  { %888 = vmatprep.subr.bf16.mxu1 %v4912_v26  ;;  %v4936_v42 = vld [vmem:[#allocation5 + $0x4] ss:$16 sps:$4 sm:$0xff]   ;;  %v4885_v44 = vld [vmem:[#allocation2 + $0xa0] ss:$8 sps:$4 sm:$0xff]   ;;  %v4888_v49 = vld [vmem:[#allocation2 + $0x90] ss:$8 sps:$4 sm:$0xff]  }
  0x9a   :  { %v4883_v43 = vld [vmem:[#allocation2 + $0xa4] ss:$8 sps:$4 sm:$0xff]   ;;  %v4941_v45 = vld [vmem:[#allocation5] ss:$16 sps:$4 sm:$0xff]   ;;  %v4908_v2 = vld [vmem:[#allocation5 + $0xa8] ss:$16 sps:$4 sm:$0xff]  }
  0x9b   :  { %438 = vmatpush1.bf16.msra.mxu0 %v4858_v9  ;;  %v4942_v46 = vld [vmem:[#allocation5 + $0x1e4] ss:$16 sps:$4 sm:$0xff]   ;;  %v4947_v48 = vld [vmem:[#allocation5 + $0x1e0] ss:$16 sps:$4 sm:$0xff]   ;;  %v4910_v0 = vld [vmem:[#allocation5 + $0xac] ss:$16 sps:$4 sm:$0xff]  }
  0x9c   :  { %439 = vmatprep.subr.bf16.mxu0 %v4859_v10  ;;  %889 = vmatpush1.bf16.msra.mxu1 %v4917_v29  ;;  %v4948_v50 = vld [vmem:[#allocation5 + $0x1c4] ss:$16 sps:$4 sm:$0xff]   ;;  %v4953_v52 = vld [vmem:[#allocation5 + $0x1c0] ss:$16 sps:$4 sm:$0xff]   ;;  %v4916_v3 = vld [vmem:[#allocation5 + $0x8c] ss:$16 sps:$4 sm:$0xff]  }
  0x9d   :  { %890 = vmatprep.subr.bf16.mxu1 %v4918_v30  ;;  %v4889_v51 = vld [vmem:[#allocation2 + $0x84] ss:$8 sps:$4 sm:$0xff]   ;;  %v4891_v53 = vld [vmem:[#allocation2 + $0x80] ss:$8 sps:$4 sm:$0xff]   ;;  %s6209_s30 = sld [smem:[#allocation32_spill]]  ;;  %s5827_s20 = smov [#allocation19]  }
  0x9e   :  { %v4954_v54 = vld [vmem:[#allocation5 + $0x1a4] ss:$16 sps:$4 sm:$0xff]   ;;  %v4959_v56 = vld [vmem:[#allocation5 + $0x1a0] ss:$16 sps:$4 sm:$0xff]   ;;  %v4914_v4 = vld [vmem:[#allocation5 + $0x88] ss:$16 sps:$4 sm:$0xff]  }
  0x9f   :  { %440 = vmatpush1.bf16.msra.mxu0 %v4861_v11  ;;  %v4960_v58 = vld [vmem:[#allocation5 + $0x184] ss:$16 sps:$4 sm:$0xff]   ;;  %v4965_v61 = vld [vmem:[#allocation5 + $0x180] ss:$16 sps:$4 sm:$0xff]   ;;  %v4922_v5 = vld [vmem:[#allocation5 + $0x6c] ss:$16 sps:$4 sm:$0xff]  }
  0xa0   :  { %441 = vmatprep.subr.bf16.mxu0 %v4862_v12  ;;  %891 = vmatpush1.bf16.msra.mxu1 %v4923_v32  ;;  %v4966_v63 = vld [vmem:[#allocation5 + $0x164] ss:$16 sps:$4 sm:$0xff]   ;;  %v4971_v1 = vld [vmem:[#allocation5 + $0x160] ss:$16 sps:$4 sm:$0xff]   ;;  %v4920_v6 = vld [vmem:[#allocation5 + $0x68] ss:$16 sps:$4 sm:$0xff]  }
  0xa1   :  { %892 = vmatprep.subr.bf16.mxu1 %v4924_v34  ;;  %v4928_v7 = vld [vmem:[#allocation5 + $0x4c] ss:$16 sps:$4 sm:$0xff]   ;;  %v4926_v8 = vld [vmem:[#allocation5 + $0x48] ss:$16 sps:$4 sm:$0xff]   ;;  %v4977_v26 = vld [vmem:[#allocation5 + $0x140] ss:$16 sps:$4 sm:$0xff]  }
  0xa2   :  { %v4934_v9 = vld [vmem:[#allocation5 + $0x2c] ss:$16 sps:$4 sm:$0xff]   ;;  %v4932_v10 = vld [vmem:[#allocation5 + $0x28] ss:$16 sps:$4 sm:$0xff]   ;;  %v4983_v30 = vld [vmem:[#allocation5 + $0x120] ss:$16 sps:$4 sm:$0xff]  }
  0xa3   :  { %442 = vmatpush1.bf16.msra.mxu0 %v4864_v16  ;;  %v4940_v11 = vld [vmem:[#allocation5 + $0xc] ss:$16 sps:$4 sm:$0xff]   ;;  %v4938_v12 = vld [vmem:[#allocation5 + $0x8] ss:$16 sps:$4 sm:$0xff]   ;;  %v4989_v34 = vld [vmem:[#allocation5 + $0x100] ss:$16 sps:$4 sm:$0xff]  }
  0xa4   :  { %443 = vmatprep.subr.bf16.mxu0 %v4865_v17  ;;  %893 = vmatpush1.bf16.msra.mxu1 %v4929_v37  ;;  %v4946_v13 = vld [vmem:[#allocation5 + $0x1ec] ss:$16 sps:$4 sm:$0xff]   ;;  %v4944_v14 = vld [vmem:[#allocation5 + $0x1e8] ss:$16 sps:$4 sm:$0xff]   ;;  %v252_v37 = vlaneseq  ;;  %s6210_s8 = sld [smem:[#allocation34_spill]]  ;;  %s4225_s22 = sshll.u32 %s5827_s20, 4  ;;  %s4226_s22 = int_to_ptr.vmem [resolvable:$true] %s4225_s22 }
  0xa5   :  { %894 = vmatprep.subr.bf16.mxu1 %v4930_v38  ;;  %v4952_v15 = vld [vmem:[#allocation5 + $0x1cc] ss:$16 sps:$4 sm:$0xff]   ;;  %v4950_v16 = vld [vmem:[#allocation5 + $0x1c8] ss:$16 sps:$4 sm:$0xff]   ;;  %s6211_s2 = sld [smem:[#allocation36_spill]]  ;;  %s5774_s6 = scalar_lea.vmem %s4226_s22, 256 }
  0xa6   :  { %v4958_v17 = vld [vmem:[#allocation5 + $0x1ac] ss:$16 sps:$4 sm:$0xff]   ;;  %v4956_v18 = vld [vmem:[#allocation5 + $0x1a8] ss:$16 sps:$4 sm:$0xff]   ;;  %v6027_v38 = vshrl.u32 %v252_v37, 7  ;;  %p5775_p8 = scmp.ne.s32.totalorder %s4226_s22, %s5774_s6  ;;  %p5779_p9 = scmp.lt.s32.totalorder %s4226_s22, %s4226_s22 }
  0xa7   :  { %444 = vmatpush1.bf16.msra.mxu0 %v4867_v20  ;;  %v4964_v19 = vld [vmem:[#allocation5 + $0x18c] ss:$16 sps:$4 sm:$0xff]   ;;  %v4962_v20 = vld [vmem:[#allocation5 + $0x188] ss:$16 sps:$4 sm:$0xff]   ;;  %v5059_v37 = vld [vmem:[#allocation7 + $0x380] ss:$16 sps:$4 sm:$0xff]   ;;  %p5780_p10 = scmp.lt.s32.totalorder %s5774_s6, %s5774_s6 }
  0xa8   :  { %445 = vmatprep.subr.bf16.mxu0 %v4868_v23  ;;  %895 = vmatpush1.bf16.msra.mxu1 %v4935_v40  ;;  %v4970_v21 = vld [vmem:[#allocation5 + $0x16c] ss:$16 sps:$4 sm:$0xff]   ;;  %v4968_v22 = vld [vmem:[#allocation5 + $0x168] ss:$16 sps:$4 sm:$0xff]   ;;  %v4972_v23 = vld [vmem:[#allocation5 + $0x144] ss:$16 sps:$4 sm:$0xff]  }
  0xa9   :  { %896 = vmatprep.subr.bf16.mxu1 %v4936_v42  ;;  %v4976_v24 = vld [vmem:[#allocation5 + $0x14c] ss:$16 sps:$4 sm:$0xff]   ;;  %v4980_v29 = vld [vmem:[#allocation5 + $0x128] ss:$16 sps:$4 sm:$0xff]   ;;  %v250_v40 = vld [vmem:[%s6208_s0] sm:$0x3]  ;;  %p5781_p11 = por %p5780_p10, %p5779_p9 }
  0xaa   :  { %v4988_v32 = vld [vmem:[#allocation5 + $0x10c] ss:$16 sps:$4 sm:$0xff]  }
  0xab   :  { %446 = vmatpush2.bf16.msra.mxu0 %v4870_v25  ;;  %v4974_v25 = vld [vmem:[#allocation5 + $0x148] ss:$16 sps:$4 sm:$0xff]   ;;  %p5782_p12 = pnand %p5781_p11, %p5775_p8 }
  0xac   :  { %447 = vmatprep.subr.bf16.mxu0 %v4871_v27  ;;  %897 = vmatpush1.bf16.msra.mxu1 %v4941_v45  ;;  %v4978_v27 = vld [vmem:[#allocation5 + $0x124] ss:$16 sps:$4 sm:$0xff]  }
  0xad   :  { %898 = vmatprep.subr.bf16.mxu1 %v4942_v46 }
  0xaf   :  { %448 = vmatpush2.bf16.msra.mxu0 %v4873_v28  ;;  %v4982_v28 = vld [vmem:[#allocation5 + $0x12c] ss:$16 sps:$4 sm:$0xff]  }
  0xb0   :  { %449 = vmatprep.subr.bf16.mxu0 %v4874_v31  ;;  %899 = vmatpush2.bf16.msra.mxu1 %v4947_v48  ;;  %v4984_v31 = vld [vmem:[#allocation5 + $0x104] ss:$16 sps:$4 sm:$0xff]  }
  0xb1   :  { %900 = vmatprep.subr.bf16.mxu1 %v4948_v50 }
  0xb3   :  { %450 = vmatpush2.bf16.msra.mxu0 %v4876_v33  ;;  %v4986_v33 = vld [vmem:[#allocation5 + $0x108] ss:$16 sps:$4 sm:$0xff]  }
  0xb4   :  { %451 = vmatprep.subr.bf16.mxu0 %v4877_v35  ;;  %901 = vmatpush2.bf16.msra.mxu1 %v4953_v52  ;;  %v4992_v35 = vld [vmem:[#allocation7 + $0xe4] ss:$16 sps:$4 sm:$0xff]  }
  0xb5   :  { %902 = vmatprep.subr.bf16.mxu1 %v4954_v54 }
  0xb7   :  { %452 = vmatpush2.bf16.msra.mxu0 %v4879_v36  ;;  %v4995_v36 = vld [vmem:[#allocation7 + $0x2e4] ss:$16 sps:$4 sm:$0xff]  }
  0xb8   :  { %453 = vmatprep.subr.bf16.mxu0 %v4880_v39  ;;  %903 = vmatpush2.bf16.msra.mxu1 %v4959_v56  ;;  %v6030_v39 = vsub.s32 0, %v6027_v38  ;;  %v4993_v56 = vld [vmem:[#allocation7 + $0x2e0] ss:$16 sps:$4 sm:$0xff]  }
  0xb9   :  { %904 = vmatprep.subr.bf16.mxu1 %v4960_v58  ;;  %v4998_v58 = vld [vmem:[#allocation7 + $0xc4] ss:$16 sps:$4 sm:$0xff]  }
  0xba   :  { %v255_v42 = vrot.slane %v250_v40, %v6030_v39 }
  0xbb   :  { %454 = vmatpush2.bf16.msra.mxu0 %v4882_v41  ;;  %v6036_v41 = vsub.s32 1, %v6027_v38 }
  0xbc   :  { %455 = vmatprep.subr.bf16.mxu0 %v4883_v43  ;;  %905 = vmatpush2.bf16.msra.mxu1 %v4965_v61  ;;  %v4999_v61 = vld [vmem:[#allocation7 + $0x2c0] ss:$16 sps:$4 sm:$0xff]  }
  0xbd   :  { %906 = vmatprep.subr.bf16.mxu1 %v4966_v63  ;;  %v259_v43 = vrot.slane %v250_v40, %v6036_v41  ;;  %v5007_v63 = vld [vmem:[#allocation7 + $0x2a4] ss:$16 sps:$4 sm:$0xff]  }
  0xbe   :  { %v5064_v40 = vld [vmem:[#allocation7 + $0x164] ss:$16 sps:$4 sm:$0xff]  }
  0xbf   :  { %456 = vmatpush2.bf16.msra.mxu0 %v4885_v44 }
  0xc0   :  { %457 = vmatprep.subr.bf16.mxu0 %v4886_v47  ;;  %907 = vmatpush2.bf16.msra.mxu1 %v4971_v1  ;;  %v5005_v1 = vld [vmem:[#allocation7 + $0x2a0] ss:$16 sps:$4 sm:$0xff]  }
  0xc1   :  { %908 = vmatprep.subr.bf16.mxu1 %v4972_v23  ;;  %v5043_v23 = vld [vmem:[#allocation7 + $0x3e4] ss:$16 sps:$4 sm:$0xff]  }
  0xc3   :  { %458 = vmatpush2.bf16.msra.mxu0 %v4888_v49 }
  0xc4   :  { %459 = vmatprep.subr.bf16.mxu0 %v4889_v51  ;;  %909 = vmatpush2.bf16.msra.mxu1 %v4977_v26  ;;  %v5046_v26 = vld [vmem:[#allocation7 + $0x1c4] ss:$16 sps:$4 sm:$0xff]  }
  0xc5   :  { %910 = vmatprep.subr.bf16.mxu1 %v4978_v27  ;;  %v5049_v27 = vld [vmem:[#allocation7 + $0x3c4] ss:$16 sps:$4 sm:$0xff]  }
  0xc7   :  { %460 = vmatpush2.bf16.msra.mxu0 %v4891_v53 }
  0xc8   :  { %923 = vmatprep.subr.bf16.mxu0 %v4898_v55  ;;  %911 = vmatpush2.bf16.msra.mxu1 %v4983_v30  ;;  %v4990_v55 = vld [vmem:[#allocation7 + $0xe0] ss:$16 sps:$4 sm:$0xff]   ;;  %v5052_v30 = vld [vmem:[#allocation7 + $0x1a4] ss:$16 sps:$4 sm:$0xff]  }
  0xc9   :  { %912 = vmatprep.subr.bf16.mxu1 %v4984_v31  ;;  %v5055_v31 = vld [vmem:[#allocation7 + $0x3a4] ss:$16 sps:$4 sm:$0xff]  }
  0xca   :  { %462 = vmatmul.mubr.bf16.vlgmr.msra.gmra.mxu0 %v4243_v59  ;;  %v5001_v59 = vld [vmem:[#allocation7 + $0x2c4] ss:$16 sps:$4 sm:$0xff]  }
  0xcb   :  { %924 = vmatpush1.bf16.msra.mxu0 %v4896_v57 }
  0xcc   :  { %925 = vmatprep.subr.bf16.mxu0 %v4904_v60  ;;  %913 = vmatpush2.bf16.msra.mxu1 %v4989_v34  ;;  %v4996_v60 = vld [vmem:[#allocation7 + $0xc0] ss:$16 sps:$4 sm:$0xff]   ;;  %v5058_v34 = vld [vmem:[#allocation7 + $0x184] ss:$16 sps:$4 sm:$0xff]  }
  0xcd   :  { %1766 = vmatprep.subr.bf16.mxu1 %v4992_v35  ;;  %v5061_v35 = vld [vmem:[#allocation7 + $0x384] ss:$16 sps:$4 sm:$0xff]  }
  0xcf   :  { %926 = vmatpush1.bf16.msra.mxu0 %v4902_v62  ;;  %v5004_v62 = vld [vmem:[#allocation7 + $0xa4] ss:$16 sps:$4 sm:$0xff]  }
  0xd0   :  { %927 = vmatprep.subr.bf16.mxu0 %v4910_v0  ;;  %v5002_v0 = vld [vmem:[#allocation7 + $0xa0] ss:$16 sps:$4 sm:$0xff]  }
  0xd3   :  { %928 = vmatpush1.bf16.msra.mxu0 %v4908_v2  ;;  %v5010_v2 = vld [vmem:[#allocation7 + $0x84] ss:$16 sps:$4 sm:$0xff]  }
  0xd4   :  { %929 = vmatprep.subr.bf16.mxu0 %v4916_v3  ;;  %v5013_v3 = vld [vmem:[#allocation7 + $0x284] ss:$16 sps:$4 sm:$0xff]  }
  0xd7   :  { %930 = vmatpush1.bf16.msra.mxu0 %v4914_v4  ;;  %v5008_v4 = vld [vmem:[#allocation7 + $0x80] ss:$16 sps:$4 sm:$0xff]  }
  0xd8   :  { %931 = vmatprep.subr.bf16.mxu0 %v4922_v5  ;;  %v5011_v5 = vld [vmem:[#allocation7 + $0x280] ss:$16 sps:$4 sm:$0xff]  }
  0xdb   :  { %932 = vmatpush1.bf16.msra.mxu0 %v4920_v6  ;;  %v5016_v6 = vld [vmem:[#allocation7 + $0x64] ss:$16 sps:$4 sm:$0xff]  }
  0xdc   :  { %933 = vmatprep.subr.bf16.mxu0 %v4928_v7  ;;  %v5019_v7 = vld [vmem:[#allocation7 + $0x264] ss:$16 sps:$4 sm:$0xff]  }
  0xdf   :  { %934 = vmatpush1.bf16.msra.mxu0 %v4926_v8  ;;  %v5014_v8 = vld [vmem:[#allocation7 + $0x60] ss:$16 sps:$4 sm:$0xff]  }
  0xe0   :  { %935 = vmatprep.subr.bf16.mxu0 %v4934_v9  ;;  %v5017_v9 = vld [vmem:[#allocation7 + $0x260] ss:$16 sps:$4 sm:$0xff]  }
  0xe3   :  { %936 = vmatpush1.bf16.msra.mxu0 %v4932_v10  ;;  %v5022_v10 = vld [vmem:[#allocation7 + $0x44] ss:$16 sps:$4 sm:$0xff]  }
  0xe4   :  { %937 = vmatprep.subr.bf16.mxu0 %v4940_v11  ;;  %v5025_v11 = vld [vmem:[#allocation7 + $0x244] ss:$16 sps:$4 sm:$0xff]  }
  0xe7   :  { %938 = vmatpush1.bf16.msra.mxu0 %v4938_v12  ;;  %v5020_v12 = vld [vmem:[#allocation7 + $0x40] ss:$16 sps:$4 sm:$0xff]  }
  0xe8   :  { %939 = vmatprep.subr.bf16.mxu0 %v4946_v13  ;;  %v5023_v13 = vld [vmem:[#allocation7 + $0x240] ss:$16 sps:$4 sm:$0xff]  }
  0xeb   :  { %940 = vmatpush2.bf16.msra.mxu0 %v4944_v14  ;;  %v5028_v14 = vld [vmem:[#allocation7 + $0x24] ss:$16 sps:$4 sm:$0xff]  }
  0xec   :  { %941 = vmatprep.subr.bf16.mxu0 %v4952_v15  ;;  %v5031_v15 = vld [vmem:[#allocation7 + $0x224] ss:$16 sps:$4 sm:$0xff]  }
  0xef   :  { %942 = vmatpush2.bf16.msra.mxu0 %v4950_v16  ;;  %v5026_v16 = vld [vmem:[#allocation7 + $0x20] ss:$16 sps:$4 sm:$0xff]  }
  0xf0   :  { %943 = vmatprep.subr.bf16.mxu0 %v4958_v17  ;;  %v5029_v17 = vld [vmem:[#allocation7 + $0x220] ss:$16 sps:$4 sm:$0xff]  }
  0xf3   :  { %944 = vmatpush2.bf16.msra.mxu0 %v4956_v18  ;;  %v5034_v18 = vld [vmem:[#allocation7 + $0x4] ss:$16 sps:$4 sm:$0xff]  }
  0xf4   :  { %945 = vmatprep.subr.bf16.mxu0 %v4964_v19  ;;  %v5037_v19 = vld [vmem:[#allocation7 + $0x204] ss:$16 sps:$4 sm:$0xff]  }
  0xf7   :  { %946 = vmatpush2.bf16.msra.mxu0 %v4962_v20  ;;  %v5032_v20 = vld [vmem:[#allocation7] ss:$16 sps:$4 sm:$0xff]  }
  0xf8   :  { %947 = vmatprep.subr.bf16.mxu0 %v4970_v21  ;;  %v5035_v21 = vld [vmem:[#allocation7 + $0x200] ss:$16 sps:$4 sm:$0xff]  }
  0xfb   :  { %948 = vmatpush2.bf16.msra.mxu0 %v4968_v22  ;;  %v5040_v22 = vld [vmem:[#allocation7 + $0x1e4] ss:$16 sps:$4 sm:$0xff]  }
  0xfc   :  { %949 = vmatprep.subr.bf16.mxu0 %v4976_v24  ;;  %v5038_v24 = vld [vmem:[#allocation7 + $0x1e0] ss:$16 sps:$4 sm:$0xff]  }
  0xff   :  { %950 = vmatpush2.bf16.msra.mxu0 %v4974_v25  ;;  %v5041_v25 = vld [vmem:[#allocation7 + $0x3e0] ss:$16 sps:$4 sm:$0xff]  }
 0x100   :  { %951 = vmatprep.subr.bf16.mxu0 %v4982_v28  ;;  %v5044_v28 = vld [vmem:[#allocation7 + $0x1c0] ss:$16 sps:$4 sm:$0xff]  }
 0x103   :  { %952 = vmatpush2.bf16.msra.mxu0 %v4980_v29  ;;  %v5047_v29 = vld [vmem:[#allocation7 + $0x3c0] ss:$16 sps:$4 sm:$0xff]  }
 0x104   :  { %953 = vmatprep.subr.bf16.mxu0 %v4988_v32  ;;  %v5050_v32 = vld [vmem:[#allocation7 + $0x1a0] ss:$16 sps:$4 sm:$0xff]  }
 0x107   :  { %954 = vmatpush2.bf16.msra.mxu0 %v4986_v33  ;;  %v5053_v33 = vld [vmem:[#allocation7 + $0x3a0] ss:$16 sps:$4 sm:$0xff]  }
 0x108   :  { %1807 = vmatprep.subr.bf16.mxu0 %v4995_v36  ;;  %v5056_v36 = vld [vmem:[#allocation7 + $0x180] ss:$16 sps:$4 sm:$0xff]  }
 0x18a   :  { %v463_v44 = vpop.f32.mrf.mxu0 }
 0x18b   :  { %v464_v45 = vadd.f32 %v463_v44, %v255_v42  ;;  %v5067_v42 = vld [vmem:[#allocation7 + $0x364] ss:$16 sps:$4 sm:$0xff]   ;;  %v5065_v44 = vld [vmem:[#allocation7 + $0x360] ss:$16 sps:$4 sm:$0xff]  }
 0x18c   :  { %v465_v46 = vpop.f32.mrf.mxu0 }
 0x18d   :  { %v470_v47 = vmul.f32 0.2, %v464_v45  ;;  %v466_v48 = vadd.f32 %v465_v46, %v259_v43  ;;  %v5062_v43 = vld [vmem:[#allocation7 + $0x160] ss:$16 sps:$4 sm:$0xff]   ;;  %v5073_v46 = vld [vmem:[#allocation7 + $0x344] ss:$16 sps:$4 sm:$0xff]  }
 0x18e   :  { %v467_v49 = vpop.f32.mrf.mxu0 }
 0x18f   :  { %v471_v50 = vmul.f32 0.2, %v466_v48  ;;  %v472_v51 = vmax.f32 %v464_v45, %v470_v47  ;;  %v5070_v45 = vld [vmem:[#allocation7 + $0x144] ss:$16 sps:$4 sm:$0xff]   ;;  %v5068_v47 = vld [vmem:[#allocation7 + $0x140] ss:$16 sps:$4 sm:$0xff]  }
 0x190   :  { %v468_v52 = vpop.f32.mrf.mxu0  ;;  %v5076_v49 = vld [vmem:[#allocation7 + $0x124] ss:$16 sps:$4 sm:$0xff]  }
 0x191   :  { %v473_v53 = vmax.f32 %v466_v48, %v471_v50  ;;  %v474_v57 = vpack.c.bf16 %v472_v51, %v472_v51  ;;  %v5071_v48 = vld [vmem:[#allocation7 + $0x340] ss:$16 sps:$4 sm:$0xff]   ;;  %v5079_v50 = vld [vmem:[#allocation7 + $0x324] ss:$16 sps:$4 sm:$0xff]  }
 0x192   :  { %v5074_v51 = vld [vmem:[#allocation7 + $0x120] ss:$16 sps:$4 sm:$0xff]  }
 0x193   :  { %v475_v54 = vpack.c.bf16 %v473_v53, %v473_v53  ;;  %v5077_v52 = vld [vmem:[#allocation7 + $0x320] ss:$16 sps:$4 sm:$0xff]   ;;  %v5082_v53 = vld [vmem:[#allocation7 + $0x104] ss:$16 sps:$4 sm:$0xff]  }
 0x195   :  { %914 = vmatprep.mubr.bf16.mxu1 %v475_v54  ;;  %955 = vmatprep.mubr.bf16.mxu0 %v475_v54  ;;  %v5085_v54 = vld [vmem:[#allocation7 + $0x304] ss:$16 sps:$4 sm:$0xff]  }
 0x196   :  { %915 = vmatmul.mubr.bf16.vlgmr.msra.gmra.mxu1 %v474_v57  ;;  %956 = vmatmul.mubr.bf16.vlgmr.msra.gmra.mxu0 %v474_v57  ;;  %v5088_v57 = vld [vmem:[#allocation7 + $0xec] ss:$16 sps:$4 sm:$0xff]  }
 0x197   :  { %1767 = vmatpush1.bf16.msra.mxu1 %v4990_v55  ;;  %1808 = vmatpush1.bf16.msra.mxu0 %v4993_v56  ;;  %v5080_v55 = vld [vmem:[#allocation7 + $0x100] ss:$16 sps:$4 sm:$0xff]  }
 0x198   :  { %1768 = vmatprep.subr.bf16.mxu1 %v4998_v58  ;;  %1809 = vmatprep.subr.bf16.mxu0 %v5001_v59  ;;  %v5083_v56 = vld [vmem:[#allocation7 + $0x300] ss:$16 sps:$4 sm:$0xff]   ;;  %v5091_v58 = vld [vmem:[#allocation7 + $0x2ec] ss:$16 sps:$4 sm:$0xff]   ;;  %v6041_v59 = vsub.s32 2, %v6027_v38 }
 0x19b   :  { %1769 = vmatpush1.bf16.msra.mxu1 %v4996_v60  ;;  %1810 = vmatpush1.bf16.msra.mxu0 %v4999_v61  ;;  %v540_v60 = vld [vmem:[%s6209_s30] sm:$0xf]  ;;  %v6047_v61 = vsub.s32 3, %v6027_v38 }
 0x19c   :  { %1770 = vmatprep.subr.bf16.mxu1 %v5004_v62  ;;  %1811 = vmatprep.subr.bf16.mxu0 %v5007_v63  ;;  %v545_v62 = vrot.slane %v540_v60, %v6030_v39  ;;  %v553_v63 = vrot.slane %v540_v60, %v6041_v59 }
 0x19f   :  { %1771 = vmatpush1.bf16.msra.mxu1 %v5002_v0  ;;  %1812 = vmatpush1.bf16.msra.mxu0 %v5005_v1  ;;  %v549_v0 = vrot.slane %v540_v60, %v6036_v41  ;;  %v557_v1 = vrot.slane %v540_v60, %v6047_v61  ;;  %v5139_v60 = vld [vmem:[#allocation7 + $0x3ec] ss:$16 sps:$4 sm:$0xff]  }
 0x1a0   :  { %1772 = vmatprep.subr.bf16.mxu1 %v5010_v2  ;;  %1813 = vmatprep.subr.bf16.mxu0 %v5013_v3 }
 0x1a3   :  { %1773 = vmatpush1.bf16.msra.mxu1 %v5008_v4  ;;  %1814 = vmatpush1.bf16.msra.mxu0 %v5011_v5 }
 0x1a4   :  { %1774 = vmatprep.subr.bf16.mxu1 %v5016_v6  ;;  %1815 = vmatprep.subr.bf16.mxu0 %v5019_v7 }
 0x1a7   :  { %1775 = vmatpush1.bf16.msra.mxu1 %v5014_v8  ;;  %1816 = vmatpush1.bf16.msra.mxu0 %v5017_v9 }
 0x1a8   :  { %1776 = vmatprep.subr.bf16.mxu1 %v5022_v10  ;;  %1817 = vmatprep.subr.bf16.mxu0 %v5025_v11 }
 0x1ab   :  { %1777 = vmatpush1.bf16.msra.mxu1 %v5020_v12  ;;  %1818 = vmatpush1.bf16.msra.mxu0 %v5023_v13 }
 0x1ac   :  { %1778 = vmatprep.subr.bf16.mxu1 %v5028_v14  ;;  %1819 = vmatprep.subr.bf16.mxu0 %v5031_v15 }
 0x1af   :  { %1779 = vmatpush1.bf16.msra.mxu1 %v5026_v16  ;;  %1820 = vmatpush1.bf16.msra.mxu0 %v5029_v17 }
 0x1b0   :  { %1780 = vmatprep.subr.bf16.mxu1 %v5034_v18  ;;  %1821 = vmatprep.subr.bf16.mxu0 %v5037_v19 }
 0x1b3   :  { %1781 = vmatpush1.bf16.msra.mxu1 %v5032_v20  ;;  %1822 = vmatpush1.bf16.msra.mxu0 %v5035_v21 }
 0x1b4   :  { %1782 = vmatprep.subr.bf16.mxu1 %v5040_v22  ;;  %1823 = vmatprep.subr.bf16.mxu0 %v5043_v23  ;;  %v5086_v23 = vld [vmem:[#allocation7 + $0xe8] ss:$16 sps:$4 sm:$0xff]  }
 0x1b7   :  { %1783 = vmatpush2.bf16.msra.mxu1 %v5038_v24  ;;  %1824 = vmatpush2.bf16.msra.mxu0 %v5041_v25  ;;  %v5089_v24 = vld [vmem:[#allocation7 + $0x2e8] ss:$16 sps:$4 sm:$0xff]  }
 0x1b8   :  { %1784 = vmatprep.subr.bf16.mxu1 %v5046_v26  ;;  %1825 = vmatprep.subr.bf16.mxu0 %v5049_v27  ;;  %v5094_v27 = vld [vmem:[#allocation7 + $0xcc] ss:$16 sps:$4 sm:$0xff]  }
 0x1bb   :  { %1785 = vmatpush2.bf16.msra.mxu1 %v5044_v28  ;;  %1826 = vmatpush2.bf16.msra.mxu0 %v5047_v29  ;;  %v5097_v28 = vld [vmem:[#allocation7 + $0x2cc] ss:$16 sps:$4 sm:$0xff]   ;;  %v5092_v29 = vld [vmem:[#allocation7 + $0xc8] ss:$16 sps:$4 sm:$0xff]  }
 0x1bc   :  { %1786 = vmatprep.subr.bf16.mxu1 %v5052_v30  ;;  %1827 = vmatprep.subr.bf16.mxu0 %v5055_v31  ;;  %v5095_v30 = vld [vmem:[#allocation7 + $0x2c8] ss:$16 sps:$4 sm:$0xff]   ;;  %v5100_v31 = vld [vmem:[#allocation7 + $0xac] ss:$16 sps:$4 sm:$0xff]  }
 0x1bf   :  { %1787 = vmatpush2.bf16.msra.mxu1 %v5050_v32  ;;  %1828 = vmatpush2.bf16.msra.mxu0 %v5053_v33  ;;  %v5103_v32 = vld [vmem:[#allocation7 + $0x2ac] ss:$16 sps:$4 sm:$0xff]   ;;  %v5098_v33 = vld [vmem:[#allocation7 + $0xa8] ss:$16 sps:$4 sm:$0xff]  }
 0x1c0   :  { %1788 = vmatprep.subr.bf16.mxu1 %v5058_v34  ;;  %1829 = vmatprep.subr.bf16.mxu0 %v5061_v35  ;;  %v5101_v34 = vld [vmem:[#allocation7 + $0x2a8] ss:$16 sps:$4 sm:$0xff]   ;;  %v5106_v35 = vld [vmem:[#allocation7 + $0x8c] ss:$16 sps:$4 sm:$0xff]  }
 0x1c3   :  { %1789 = vmatpush2.bf16.msra.mxu1 %v5056_v36  ;;  %1830 = vmatpush2.bf16.msra.mxu0 %v5059_v37  ;;  %v5109_v36 = vld [vmem:[#allocation7 + $0x28c] ss:$16 sps:$4 sm:$0xff]   ;;  %v5104_v37 = vld [vmem:[#allocation7 + $0x88] ss:$16 sps:$4 sm:$0xff]  }
 0x1c4   :  { %1790 = vmatprep.subr.bf16.mxu1 %v5064_v40  ;;  %1831 = vmatprep.subr.bf16.mxu0 %v5067_v42  ;;  %v5107_v40 = vld [vmem:[#allocation7 + $0x288] ss:$16 sps:$4 sm:$0xff]   ;;  %v5112_v42 = vld [vmem:[#allocation7 + $0x6c] ss:$16 sps:$4 sm:$0xff]  }
 0x1c7   :  { %1791 = vmatpush2.bf16.msra.mxu1 %v5062_v43  ;;  %1832 = vmatpush2.bf16.msra.mxu0 %v5065_v44  ;;  %v5115_v43 = vld [vmem:[#allocation7 + $0x26c] ss:$16 sps:$4 sm:$0xff]   ;;  %v5110_v44 = vld [vmem:[#allocation7 + $0x68] ss:$16 sps:$4 sm:$0xff]  }
 0x1c8   :  { %1792 = vmatprep.subr.bf16.mxu1 %v5070_v45  ;;  %1833 = vmatprep.subr.bf16.mxu0 %v5073_v46  ;;  %v5113_v45 = vld [vmem:[#allocation7 + $0x268] ss:$16 sps:$4 sm:$0xff]   ;;  %v5118_v46 = vld [vmem:[#allocation7 + $0x4c] ss:$16 sps:$4 sm:$0xff]  }
 0x1cb   :  { %1793 = vmatpush2.bf16.msra.mxu1 %v5068_v47  ;;  %1834 = vmatpush2.bf16.msra.mxu0 %v5071_v48  ;;  %v5121_v47 = vld [vmem:[#allocation7 + $0x24c] ss:$16 sps:$4 sm:$0xff]   ;;  %v5116_v48 = vld [vmem:[#allocation7 + $0x48] ss:$16 sps:$4 sm:$0xff]  }
 0x1cc   :  { %1794 = vmatprep.subr.bf16.mxu1 %v5076_v49  ;;  %1835 = vmatprep.subr.bf16.mxu0 %v5079_v50  ;;  %v5119_v49 = vld [vmem:[#allocation7 + $0x248] ss:$16 sps:$4 sm:$0xff]   ;;  %v5124_v50 = vld [vmem:[#allocation7 + $0x2c] ss:$16 sps:$4 sm:$0xff]  }
 0x1cf   :  { %1795 = vmatpush2.bf16.msra.mxu1 %v5074_v51  ;;  %1836 = vmatpush2.bf16.msra.mxu0 %v5077_v52  ;;  %v5127_v51 = vld [vmem:[#allocation7 + $0x22c] ss:$16 sps:$4 sm:$0xff]   ;;  %v5122_v52 = vld [vmem:[#allocation7 + $0x28] ss:$16 sps:$4 sm:$0xff]  }
 0x1d0   :  { %1796 = vmatprep.subr.bf16.mxu1 %v5082_v53  ;;  %1837 = vmatprep.subr.bf16.mxu0 %v5085_v54  ;;  %v5125_v53 = vld [vmem:[#allocation7 + $0x228] ss:$16 sps:$4 sm:$0xff]   ;;  %v5130_v54 = vld [vmem:[#allocation7 + $0xc] ss:$16 sps:$4 sm:$0xff]  }
 0x1d3   :  { %1797 = vmatpush2.bf16.msra.mxu1 %v5080_v55  ;;  %1838 = vmatpush2.bf16.msra.mxu0 %v5083_v56  ;;  %v5133_v55 = vld [vmem:[#allocation7 + $0x20c] ss:$16 sps:$4 sm:$0xff]   ;;  %v5128_v56 = vld [vmem:[#allocation7 + $0x8] ss:$16 sps:$4 sm:$0xff]  }
 0x1d4   :  { %1848 = vmatprep.subr.bf16.mxu1 %v5088_v57  ;;  %1889 = vmatprep.subr.bf16.mxu0 %v5091_v58  ;;  %v5131_v57 = vld [vmem:[#allocation7 + $0x208] ss:$16 sps:$4 sm:$0xff]   ;;  %v5136_v58 = vld [vmem:[#allocation7 + $0x1ec] ss:$16 sps:$4 sm:$0xff]  }
 0x256   :  { %v916_v2 = vpop.f32.mrf.mxu1  ;;  %v957_v3 = vpop.f32.mrf.mxu0 }
 0x257   :  { %v917_v4 = vadd.f32 %v916_v2, %v545_v62  ;;  %v958_v5 = vadd.f32 %v957_v3, %v553_v63  ;;  %v5134_v62 = vld [vmem:[#allocation7 + $0x1e8] ss:$16 sps:$4 sm:$0xff]  }
 0x258   :  { %v918_v6 = vpop.f32.mrf.mxu1  ;;  %v959_v7 = vpop.f32.mrf.mxu0  ;;  %v5137_v63 = vld [vmem:[#allocation7 + $0x3e8] ss:$16 sps:$4 sm:$0xff]  }
 0x259   :  { %v964_v8 = vmul.f32 0.2, %v917_v4  ;;  %v966_v9 = vmul.f32 0.2, %v958_v5  ;;  %v919_v10 = vadd.f32 %v918_v6, %v549_v0  ;;  %v960_v11 = vadd.f32 %v959_v7, %v557_v1  ;;  %v5142_v0 = vld [vmem:[#allocation7 + $0x1cc] ss:$16 sps:$4 sm:$0xff]  }
 0x25a   :  { %v920_v38 = vpop.f32.mrf.mxu1  ;;  %v961_v12 = vpop.f32.mrf.mxu0  ;;  %v5145_v1 = vld [vmem:[#allocation7 + $0x3cc] ss:$16 sps:$4 sm:$0xff]   ;;  %v5140_v2 = vld [vmem:[#allocation7 + $0x1c8] ss:$16 sps:$4 sm:$0xff]  }
 0x25b   :  { %v965_v13 = vmul.f32 0.2, %v919_v10  ;;  %v967_v14 = vmul.f32 0.2, %v960_v11  ;;  %v968_v15 = vmax.f32 %v917_v4, %v964_v8  ;;  %v970_v16 = vmax.f32 %v958_v5, %v966_v9  ;;  %v5143_v3 = vld [vmem:[#allocation7 + $0x3c8] ss:$16 sps:$4 sm:$0xff]  }
 0x25c   :  { %v921_v17 = vpop.f32.mrf.mxu1  ;;  %v962_v18 = vpop.f32.mrf.mxu0  ;;  %v5148_v4 = vld [vmem:[#allocation7 + $0x1ac] ss:$16 sps:$4 sm:$0xff]   ;;  %v5146_v6 = vld [vmem:[#allocation7 + $0x1a8] ss:$16 sps:$4 sm:$0xff]  }
 0x25d   :  { %v969_v19 = vmax.f32 %v919_v10, %v965_v13  ;;  %v971_v20 = vmax.f32 %v960_v11, %v967_v14  ;;  %v6053_v25 = vpack.c.bf16 %v968_v15, %v968_v15  ;;  %v6055_v26 = vpack.c.bf16 %v970_v16, %v970_v16  ;;  %v5151_v5 = vld [vmem:[#allocation7 + $0x3ac] ss:$16 sps:$4 sm:$0xff]   ;;  %v5149_v7 = vld [vmem:[#allocation7 + $0x3a8] ss:$16 sps:$4 sm:$0xff]  }
 0x25e   :  { %v5154_v8 = vld [vmem:[#allocation7 + $0x18c] ss:$16 sps:$4 sm:$0xff]   ;;  %v5152_v10 = vld [vmem:[#allocation7 + $0x188] ss:$16 sps:$4 sm:$0xff]  }
 0x25f   :  { %v973_v21 = vpack.c.bf16 %v969_v19, %v969_v19  ;;  %v975_v22 = vpack.c.bf16 %v971_v20, %v971_v20  ;;  %v5157_v9 = vld [vmem:[#allocation7 + $0x38c] ss:$16 sps:$4 sm:$0xff]   ;;  %v5155_v11 = vld [vmem:[#allocation7 + $0x388] ss:$16 sps:$4 sm:$0xff]  }
 0x260   :  { %v5160_v38 = vld [vmem:[#allocation7 + $0x16c] ss:$16 sps:$4 sm:$0xff]   ;;  %v5158_v13 = vld [vmem:[#allocation7 + $0x168] ss:$16 sps:$4 sm:$0xff]  }
 0x261   :  { %1798 = vmatprep.mubr.bf16.mxu1 %v973_v21  ;;  %1839 = vmatprep.mubr.bf16.mxu0 %v975_v22  ;;  %v5163_v12 = vld [vmem:[#allocation7 + $0x36c] ss:$16 sps:$4 sm:$0xff]   ;;  %v5161_v14 = vld [vmem:[#allocation7 + $0x368] ss:$16 sps:$4 sm:$0xff]  }
 0x262   :  { %1799 = vmatmul.mubr.bf16.vlgmr.msra.gmra.mxu1 %v6053_v25  ;;  %1840 = vmatmul.mubr.bf16.vlgmr.msra.gmra.mxu0 %v6055_v26  ;;  %v5166_v15 = vld [vmem:[#allocation7 + $0x14c] ss:$16 sps:$4 sm:$0xff]   ;;  %v5164_v17 = vld [vmem:[#allocation7 + $0x148] ss:$16 sps:$4 sm:$0xff]  }
 0x263   :  { %1849 = vmatpush1.bf16.msra.mxu1 %v5086_v23  ;;  %1890 = vmatpush1.bf16.msra.mxu0 %v5089_v24  ;;  %v5169_v16 = vld [vmem:[#allocation7 + $0x34c] ss:$16 sps:$4 sm:$0xff]   ;;  %v5167_v18 = vld [vmem:[#allocation7 + $0x348] ss:$16 sps:$4 sm:$0xff]  }
 0x264   :  { %1880 = vmatprep.mubr.bf16.mxu1 %v973_v21  ;;  %1921 = vmatprep.mubr.bf16.mxu0 %v975_v22  ;;  %v5172_v19 = vld [vmem:[#allocation7 + $0x12c] ss:$16 sps:$4 sm:$0xff]   ;;  %v5170_v21 = vld [vmem:[#allocation7 + $0x128] ss:$16 sps:$4 sm:$0xff]  }
 0x265   :  { %1850 = vmatprep.subr.bf16.mxu1 %v5094_v27  ;;  %1891 = vmatprep.subr.bf16.mxu0 %v5097_v28  ;;  %v5175_v20 = vld [vmem:[#allocation7 + $0x32c] ss:$16 sps:$4 sm:$0xff]   ;;  %v5173_v22 = vld [vmem:[#allocation7 + $0x328] ss:$16 sps:$4 sm:$0xff]  }
 0x266   :  { %v5178_v23 = vld [vmem:[#allocation7 + $0x10c] ss:$16 sps:$4 sm:$0xff]   ;;  %v5176_v27 = vld [vmem:[#allocation7 + $0x108] ss:$16 sps:$4 sm:$0xff]  }
 0x267   :  { %1851 = vmatpush1.bf16.msra.mxu1 %v5092_v29  ;;  %1892 = vmatpush1.bf16.msra.mxu0 %v5095_v30  ;;  %v5181_v24 = vld [vmem:[#allocation7 + $0x30c] ss:$16 sps:$4 sm:$0xff]   ;;  %v5179_v28 = vld [vmem:[#allocation7 + $0x308] ss:$16 sps:$4 sm:$0xff]  }
 0x268   :  { %1852 = vmatprep.subr.bf16.mxu1 %v5100_v31  ;;  %1893 = vmatprep.subr.bf16.mxu0 %v5103_v32  ;;  %v5184_v29 = vld [vmem:[#allocation8 + $0x74] ss:$8 sps:$4 sm:$0xff]   ;;  %v5182_v30 = vld [vmem:[#allocation8 + $0x70] ss:$8 sps:$4 sm:$0xff]   ;;  %v5187_v31 = vld [vmem:[#allocation8 + $0x64] ss:$8 sps:$4 sm:$0xff]  }
 0x269   :  { %v5185_v32 = vld [vmem:[#allocation8 + $0x60] ss:$8 sps:$4 sm:$0xff]  }
 0x26b   :  { %1853 = vmatpush1.bf16.msra.mxu1 %v5098_v33  ;;  %1894 = vmatpush1.bf16.msra.mxu0 %v5101_v34  ;;  %v5190_v33 = vld [vmem:[#allocation8 + $0x54] ss:$8 sps:$4 sm:$0xff]   ;;  %v5188_v34 = vld [vmem:[#allocation8 + $0x50] ss:$8 sps:$4 sm:$0xff]  }
 0x26c   :  { %1854 = vmatprep.subr.bf16.mxu1 %v5106_v35  ;;  %1895 = vmatprep.subr.bf16.mxu0 %v5109_v36  ;;  %v5193_v35 = vld [vmem:[#allocation8 + $0x44] ss:$8 sps:$4 sm:$0xff]   ;;  %v5191_v36 = vld [vmem:[#allocation8 + $0x40] ss:$8 sps:$4 sm:$0xff]  }
 0x26f   :  { %1855 = vmatpush1.bf16.msra.mxu1 %v5104_v37  ;;  %1896 = vmatpush1.bf16.msra.mxu0 %v5107_v40  ;;  %v5196_v37 = vld [vmem:[#allocation8 + $0x34] ss:$8 sps:$4 sm:$0xff]  }
 0x270   :  { %1856 = vmatprep.subr.bf16.mxu1 %v5112_v42  ;;  %1897 = vmatprep.subr.bf16.mxu0 %v5115_v43  ;;  %v5232_v40 = vld [vmem:[#allocation8 + $0x174] ss:$8 sps:$4 sm:$0xff]   ;;  %v5194_v42 = vld [vmem:[#allocation8 + $0x30] ss:$8 sps:$4 sm:$0xff]  }
 0x271   :  { %v5230_v43 = vld [vmem:[#allocation8 + $0x170] ss:$8 sps:$4 sm:$0xff]  }
 0x273   :  { %1857 = vmatpush1.bf16.msra.mxu1 %v5110_v44  ;;  %1898 = vmatpush1.bf16.msra.mxu0 %v5113_v45  ;;  %v5233_v44 = vld [vmem:[#allocation8 + $0x160] ss:$8 sps:$4 sm:$0xff]   ;;  %v5238_v45 = vld [vmem:[#allocation8 + $0x154] ss:$8 sps:$4 sm:$0xff]  }
 0x274   :  { %1858 = vmatprep.subr.bf16.mxu1 %v5118_v46  ;;  %1899 = vmatprep.subr.bf16.mxu0 %v5121_v47  ;;  %v5197_v46 = vld [vmem:[#allocation8 + $0x20] ss:$8 sps:$4 sm:$0xff]   ;;  %v5202_v47 = vld [vmem:[#allocation8 + $0x14] ss:$8 sps:$4 sm:$0xff]  }
 0x277   :  { %1859 = vmatpush1.bf16.msra.mxu1 %v5116_v48  ;;  %1900 = vmatpush1.bf16.msra.mxu0 %v5119_v49  ;;  %v5236_v48 = vld [vmem:[#allocation8 + $0x150] ss:$8 sps:$4 sm:$0xff]   ;;  %v5241_v49 = vld [vmem:[#allocation8 + $0x144] ss:$8 sps:$4 sm:$0xff]  }
 0x278   :  { %1860 = vmatprep.subr.bf16.mxu1 %v5124_v50  ;;  %1901 = vmatprep.subr.bf16.mxu0 %v5127_v51  ;;  %v5200_v50 = vld [vmem:[#allocation8 + $0x10] ss:$8 sps:$4 sm:$0xff]   ;;  %v5205_v51 = vld [vmem:[#allocation8 + $0x4] ss:$8 sps:$4 sm:$0xff]  }
 0x27b   :  { %1861 = vmatpush1.bf16.msra.mxu1 %v5122_v52  ;;  %1902 = vmatpush1.bf16.msra.mxu0 %v5125_v53  ;;  %v5239_v52 = vld [vmem:[#allocation8 + $0x140] ss:$8 sps:$4 sm:$0xff]   ;;  %v5244_v53 = vld [vmem:[#allocation8 + $0x134] ss:$8 sps:$4 sm:$0xff]  }
 0x27c   :  { %1862 = vmatprep.subr.bf16.mxu1 %v5130_v54  ;;  %1903 = vmatprep.subr.bf16.mxu0 %v5133_v55  ;;  %v5203_v54 = vld [vmem:[#allocation8] ss:$8 sps:$4 sm:$0xff]   ;;  %v5208_v55 = vld [vmem:[#allocation8 + $0xf4] ss:$8 sps:$4 sm:$0xff]  }
 0x27f   :  { %1863 = vmatpush1.bf16.msra.mxu1 %v5128_v56  ;;  %1904 = vmatpush1.bf16.msra.mxu0 %v5131_v57  ;;  %v5242_v56 = vld [vmem:[#allocation8 + $0x130] ss:$8 sps:$4 sm:$0xff]   ;;  %v5247_v57 = vld [vmem:[#allocation8 + $0x124] ss:$8 sps:$4 sm:$0xff]  }
 0x280   :  { %1864 = vmatprep.subr.bf16.mxu1 %v5136_v58  ;;  %1905 = vmatprep.subr.bf16.mxu0 %v5139_v60  ;;  %v5206_v58 = vld [vmem:[#allocation8 + $0xf0] ss:$8 sps:$4 sm:$0xff]   ;;  %v5211_v60 = vld [vmem:[#allocation8 + $0xe4] ss:$8 sps:$4 sm:$0xff]  }
 0x283   :  { %1865 = vmatpush2.bf16.msra.mxu1 %v5134_v62  ;;  %1906 = vmatpush2.bf16.msra.mxu0 %v5137_v63  ;;  %v5245_v62 = vld [vmem:[#allocation8 + $0x120] ss:$8 sps:$4 sm:$0xff]   ;;  %v5250_v63 = vld [vmem:[#allocation8 + $0x114] ss:$8 sps:$4 sm:$0xff]  }
 0x284   :  { %1866 = vmatprep.subr.bf16.mxu1 %v5142_v0  ;;  %1907 = vmatprep.subr.bf16.mxu0 %v5145_v1  ;;  %v5209_v0 = vld [vmem:[#allocation8 + $0xe0] ss:$8 sps:$4 sm:$0xff]   ;;  %v5214_v1 = vld [vmem:[#allocation8 + $0xd4] ss:$8 sps:$4 sm:$0xff]  }
 0x287   :  { %1867 = vmatpush2.bf16.msra.mxu1 %v5140_v2  ;;  %1908 = vmatpush2.bf16.msra.mxu0 %v5143_v3  ;;  %v5248_v2 = vld [vmem:[#allocation8 + $0x110] ss:$8 sps:$4 sm:$0xff]   ;;  %v5253_v3 = vld [vmem:[#allocation8 + $0x104] ss:$8 sps:$4 sm:$0xff]  }
 0x288   :  { %1868 = vmatprep.subr.bf16.mxu1 %v5148_v4  ;;  %1909 = vmatprep.subr.bf16.mxu0 %v5151_v5  ;;  %v5212_v4 = vld [vmem:[#allocation8 + $0xd0] ss:$8 sps:$4 sm:$0xff]   ;;  %v5217_v5 = vld [vmem:[#allocation8 + $0xc4] ss:$8 sps:$4 sm:$0xff]  }
 0x28b   :  { %1869 = vmatpush2.bf16.msra.mxu1 %v5146_v6  ;;  %1910 = vmatpush2.bf16.msra.mxu0 %v5149_v7  ;;  %v5251_v6 = vld [vmem:[#allocation8 + $0x100] ss:$8 sps:$4 sm:$0xff]   ;;  %v5256_v7 = vld [vmem:[#allocation8 + $0x1f4] ss:$8 sps:$4 sm:$0xff]  }
 0x28c   :  { %1870 = vmatprep.subr.bf16.mxu1 %v5154_v8  ;;  %1911 = vmatprep.subr.bf16.mxu0 %v5157_v9  ;;  %v5215_v8 = vld [vmem:[#allocation8 + $0xc0] ss:$8 sps:$4 sm:$0xff]   ;;  %v5220_v9 = vld [vmem:[#allocation8 + $0xb4] ss:$8 sps:$4 sm:$0xff]  }
 0x28f   :  { %1871 = vmatpush2.bf16.msra.mxu1 %v5152_v10  ;;  %1912 = vmatpush2.bf16.msra.mxu0 %v5155_v11  ;;  %v5254_v10 = vld [vmem:[#allocation8 + $0x1f0] ss:$8 sps:$4 sm:$0xff]   ;;  %v5259_v11 = vld [vmem:[#allocation8 + $0x1e4] ss:$8 sps:$4 sm:$0xff]  }
 0x290   :  { %1872 = vmatprep.subr.bf16.mxu1 %v5160_v38  ;;  %1913 = vmatprep.subr.bf16.mxu0 %v5163_v12  ;;  %v5218_v38 = vld [vmem:[#allocation8 + $0xb0] ss:$8 sps:$4 sm:$0xff]   ;;  %v5223_v12 = vld [vmem:[#allocation8 + $0xa4] ss:$8 sps:$4 sm:$0xff]  }
 0x293   :  { %1873 = vmatpush2.bf16.msra.mxu1 %v5158_v13  ;;  %1914 = vmatpush2.bf16.msra.mxu0 %v5161_v14  ;;  %v5257_v13 = vld [vmem:[#allocation8 + $0x1e0] ss:$8 sps:$4 sm:$0xff]   ;;  %v5262_v14 = vld [vmem:[#allocation8 + $0x1d4] ss:$8 sps:$4 sm:$0xff]  }
 0x294   :  { %1874 = vmatprep.subr.bf16.mxu1 %v5166_v15  ;;  %1915 = vmatprep.subr.bf16.mxu0 %v5169_v16  ;;  %v5221_v15 = vld [vmem:[#allocation8 + $0xa0] ss:$8 sps:$4 sm:$0xff]   ;;  %v5226_v16 = vld [vmem:[#allocation8 + $0x94] ss:$8 sps:$4 sm:$0xff]  }
 0x297   :  { %1875 = vmatpush2.bf16.msra.mxu1 %v5164_v17  ;;  %1916 = vmatpush2.bf16.msra.mxu0 %v5167_v18  ;;  %v5260_v17 = vld [vmem:[#allocation8 + $0x1d0] ss:$8 sps:$4 sm:$0xff]   ;;  %v5265_v18 = vld [vmem:[#allocation8 + $0x1c4] ss:$8 sps:$4 sm:$0xff]  }
 0x298   :  { %1876 = vmatprep.subr.bf16.mxu1 %v5172_v19  ;;  %1917 = vmatprep.subr.bf16.mxu0 %v5175_v20  ;;  %v5224_v19 = vld [vmem:[#allocation8 + $0x90] ss:$8 sps:$4 sm:$0xff]   ;;  %v5229_v20 = vld [vmem:[#allocation8 + $0x84] ss:$8 sps:$4 sm:$0xff]  }
 0x29b   :  { %1877 = vmatpush2.bf16.msra.mxu1 %v5170_v21  ;;  %1918 = vmatpush2.bf16.msra.mxu0 %v5173_v22  ;;  %v5263_v21 = vld [vmem:[#allocation8 + $0x1c0] ss:$8 sps:$4 sm:$0xff]   ;;  %v5268_v22 = vld [vmem:[#allocation8 + $0x1b4] ss:$8 sps:$4 sm:$0xff]  }
 0x29c   :  { %1878 = vmatprep.subr.bf16.mxu1 %v5178_v23  ;;  %1919 = vmatprep.subr.bf16.mxu0 %v5181_v24  ;;  %v5227_v23 = vld [vmem:[#allocation8 + $0x80] ss:$8 sps:$4 sm:$0xff]   ;;  %v5266_v24 = vld [vmem:[#allocation8 + $0x1b0] ss:$8 sps:$4 sm:$0xff]  }
 0x29f   :  { %1879 = vmatpush2.bf16.msra.mxu1 %v5176_v27  ;;  %1920 = vmatpush2.bf16.msra.mxu0 %v5179_v28  ;;  %v5271_v27 = vld [vmem:[#allocation8 + $0x1a4] ss:$8 sps:$4 sm:$0xff]   ;;  %v5269_v28 = vld [vmem:[#allocation8 + $0x1a0] ss:$8 sps:$4 sm:$0xff]  }
 0x2a0   :  { %2338 = vmatprep.subr.bf16.mxu1 %v5184_v29  ;;  %2379 = vmatprep.subr.bf16.mxu0 %v5232_v40  ;;  %v5274_v29 = vld [vmem:[#allocation8 + $0x194] ss:$8 sps:$4 sm:$0xff]  }
 0x2a2   :  { %1881 = vmatmul.mubr.bf16.vlgmr.msra.gmra.mxu1 %v6053_v25  ;;  %1922 = vmatmul.mubr.bf16.vlgmr.msra.gmra.mxu0 %v6055_v26  ;;  %v5199_v25 = vld [vmem:[#allocation8 + $0x24] ss:$8 sps:$4 sm:$0xff]  }
 0x2a3   :  { %2339 = vmatpush1.bf16.msra.mxu1 %v5182_v30  ;;  %v5235_v26 = vld [vmem:[#allocation8 + $0x164] ss:$8 sps:$4 sm:$0xff]   ;;  %2380 = vmatpush1.bf16.msra.mxu0 %v5230_v43  ;;  %v5272_v30 = vld [vmem:[#allocation8 + $0x190] ss:$8 sps:$4 sm:$0xff]  }
 0x2a4   :  { %2340 = vmatprep.subr.bf16.mxu1 %v5187_v31  ;;  %2381 = vmatprep.subr.bf16.mxu0 %v5235_v26  ;;  %v5277_v31 = vld [vmem:[#allocation8 + $0x184] ss:$8 sps:$4 sm:$0xff]  }
 0x2a7   :  { %2341 = vmatpush1.bf16.msra.mxu1 %v5185_v32  ;;  %2382 = vmatpush1.bf16.msra.mxu0 %v5233_v44  ;;  %v5275_v32 = vld [vmem:[#allocation8 + $0x180] ss:$8 sps:$4 sm:$0xff]  }
 0x2a8   :  { %2342 = vmatprep.subr.bf16.mxu1 %v5190_v33  ;;  %2383 = vmatprep.subr.bf16.mxu0 %v5238_v45  ;;  %v1104_v33 = vld [vmem:[%s6210_s8] sm:$0xf] }
 0x2ab   :  { %2343 = vmatpush1.bf16.msra.mxu1 %v5188_v34  ;;  %2384 = vmatpush1.bf16.msra.mxu0 %v5236_v48  ;;  %v1109_v34 = vrot.slane %v1104_v33, %v6030_v39 }
 0x2ac   :  { %2344 = vmatprep.subr.bf16.mxu1 %v5193_v35  ;;  %2385 = vmatprep.subr.bf16.mxu0 %v5241_v49  ;;  %v1113_v35 = vrot.slane %v1104_v33, %v6036_v41 }
 0x2af   :  { %2345 = vmatpush1.bf16.msra.mxu1 %v5191_v36  ;;  %2386 = vmatpush1.bf16.msra.mxu0 %v5239_v52 }
 0x2b0   :  { %2346 = vmatprep.subr.bf16.mxu1 %v5196_v37  ;;  %2387 = vmatprep.subr.bf16.mxu0 %v5244_v53 }
 0x2b3   :  { %2347 = vmatpush1.bf16.msra.mxu1 %v5194_v42  ;;  %2388 = vmatpush1.bf16.msra.mxu0 %v5242_v56  ;;  %v1121_v56 = vrot.slane %v1104_v33, %v6047_v61 }
 0x2b4   :  { %2348 = vmatprep.subr.bf16.mxu1 %v5199_v25  ;;  %2389 = vmatprep.subr.bf16.mxu0 %v5247_v57 }
 0x2b7   :  { %2349 = vmatpush1.bf16.msra.mxu1 %v5197_v46  ;;  %2390 = vmatpush1.bf16.msra.mxu0 %v5245_v62 }
 0x2b8   :  { %2350 = vmatprep.subr.bf16.mxu1 %v5202_v47  ;;  %2391 = vmatprep.subr.bf16.mxu0 %v5250_v63 }
 0x2bb   :  { %2351 = vmatpush1.bf16.msra.mxu1 %v5200_v50  ;;  %2392 = vmatpush1.bf16.msra.mxu0 %v5248_v2 }
 0x2bc   :  { %2352 = vmatprep.subr.bf16.mxu1 %v5205_v51  ;;  %2393 = vmatprep.subr.bf16.mxu0 %v5253_v3 }
 0x2bf   :  { %2353 = vmatpush1.bf16.msra.mxu1 %v5203_v54  ;;  %2394 = vmatpush1.bf16.msra.mxu0 %v5251_v6 }
 0x2c0   :  { %2354 = vmatprep.subr.bf16.mxu1 %v5208_v55  ;;  %2395 = vmatprep.subr.bf16.mxu0 %v5256_v7  ;;  %v1117_v55 = vrot.slane %v1104_v33, %v6041_v59 }
 0x2c3   :  { %2355 = vmatpush2.bf16.msra.mxu1 %v5206_v58  ;;  %2396 = vmatpush2.bf16.msra.mxu0 %v5254_v10 }
 0x2c4   :  { %2356 = vmatprep.subr.bf16.mxu1 %v5211_v60  ;;  %2397 = vmatprep.subr.bf16.mxu0 %v5259_v11 }
 0x2c7   :  { %2357 = vmatpush2.bf16.msra.mxu1 %v5209_v0  ;;  %2398 = vmatpush2.bf16.msra.mxu0 %v5257_v13  ;;  %v5279_v13 = vld [vmem:[#allocation10 + $0x38] sm:$0xff]  }
 0x2c8   :  { %2358 = vmatprep.subr.bf16.mxu1 %v5214_v1  ;;  %2399 = vmatprep.subr.bf16.mxu0 %v5262_v14  ;;  %v5280_v14 = vld [vmem:[#allocation10 + $0x70] sm:$0xff]  }
 0x2cb   :  { %2359 = vmatpush2.bf16.msra.mxu1 %v5212_v4  ;;  %2400 = vmatpush2.bf16.msra.mxu0 %v5260_v17  ;;  %v5283_v17 = vld [vmem:[#allocation10 + $0x28] sm:$0xff]  }
 0x2cc   :  { %2360 = vmatprep.subr.bf16.mxu1 %v5217_v5  ;;  %2401 = vmatprep.subr.bf16.mxu0 %v5265_v18  ;;  %v5284_v18 = vld [vmem:[#allocation10 + $0x60] sm:$0xff]  }
 0x2cf   :  { %2361 = vmatpush2.bf16.msra.mxu1 %v5215_v8  ;;  %2402 = vmatpush2.bf16.msra.mxu0 %v5263_v21  ;;  %v5287_v21 = vld [vmem:[#allocation10 + $0x18] sm:$0xff]  }
 0x2d0   :  { %2362 = vmatprep.subr.bf16.mxu1 %v5220_v9  ;;  %2403 = vmatprep.subr.bf16.mxu0 %v5268_v22  ;;  %v5288_v22 = vld [vmem:[#allocation10 + $0x50] sm:$0xff]  }
 0x2d3   :  { %2363 = vmatpush2.bf16.msra.mxu1 %v5218_v38  ;;  %2404 = vmatpush2.bf16.msra.mxu0 %v5266_v24  ;;  %v5290_v24 = vld [vmem:[#allocation10 + $0x48] sm:$0xff]  }
 0x2d4   :  { %2364 = vmatprep.subr.bf16.mxu1 %v5223_v12  ;;  %2405 = vmatprep.subr.bf16.mxu0 %v5271_v27  ;;  %v5278_v12 = vld [vmem:[#allocation10 + $0x78] sm:$0xff]   ;;  %v5291_v27 = vld [vmem:[#allocation10 + $0x8] sm:$0xff]  }
 0x2d7   :  { %2365 = vmatpush2.bf16.msra.mxu1 %v5221_v15  ;;  %2406 = vmatpush2.bf16.msra.mxu0 %v5269_v28  ;;  %v5281_v15 = vld [vmem:[#allocation10 + $0x30] sm:$0xff]   ;;  %v5292_v28 = vld [vmem:[#allocation10 + $0x40] sm:$0xff]  }
 0x2d8   :  { %2366 = vmatprep.subr.bf16.mxu1 %v5226_v16  ;;  %2407 = vmatprep.subr.bf16.mxu0 %v5274_v29  ;;  %v5282_v16 = vld [vmem:[#allocation10 + $0x68] sm:$0xff]   ;;  %v5293_v29 = vld [vmem:[#allocation10] sm:$0xff]  }
 0x2db   :  { %2367 = vmatpush2.bf16.msra.mxu1 %v5224_v19  ;;  %2408 = vmatpush2.bf16.msra.mxu0 %v5272_v30  ;;  %v5285_v19 = vld [vmem:[#allocation10 + $0x20] sm:$0xff]   ;;  %v5824_v30 = vmov 0.0  }
 0x2dc   :  { %2368 = vmatprep.subr.bf16.mxu1 %v5229_v20  ;;  %2409 = vmatprep.subr.bf16.mxu0 %v5277_v31  ;;  %v5286_v20 = vld [vmem:[#allocation10 + $0x58] sm:$0xff]  }
 0x2df   :  { %2369 = vmatpush2.bf16.msra.mxu1 %v5227_v23  ;;  %2410 = vmatpush2.bf16.msra.mxu0 %v5275_v32  ;;  %v5289_v23 = vld [vmem:[#allocation10 + $0x10] sm:$0xff]  }
 0x2e0   :  { %4744 = vmatprep.subr.bf16.mxu1 %v5278_v12  ;;  %v5306_v12 = vld [vmem:[#allocation11 + $0x18] sm:$0xff]  }
 0x322   :  { %v1800_v36 = vpop.f32.mrf.mxu1  ;;  %v1841_v37 = vpop.f32.mrf.mxu0 }
 0x323   :  { %v1801_v40 = vadd.f32 %v1800_v36, %v1109_v34 }
 0x324   :  { %v1802_v42 = vpop.f32.mrf.mxu1  ;;  %v1843_v43 = vpop.f32.mrf.mxu0 }
 0x325   :  { %v1842_v25 = vadd.f32 %v1841_v37, %v1801_v40  ;;  %v1803_v26 = vadd.f32 %v1802_v42, %v1113_v35  ;;  %v2006_v35 = vld [vmem:[%s6211_s2] sm:$0x3]  ;;  %s6212_s2 = sld [smem:[#allocation28_spill]] }
 0x326   :  { %v1804_v44 = vpop.f32.mrf.mxu1  ;;  %v1845_v45 = vpop.f32.mrf.mxu0  ;;  %v2011_v36 = vrot.slane %v2006_v35, %v6030_v39  ;;  %v2015_v37 = vrot.slane %v2006_v35, %v6036_v41  ;;  %v5324_v35 = vld [vmem:[#allocation13 + $0x34] ss:$8 sps:$4 sm:$0xff]  }
 0x327   :  { %v1930_v46 = vmul.f32 0.2, %v1842_v25  ;;  %v1844_v47 = vadd.f32 %v1843_v43, %v1803_v26 }
 0x328   :  { %v1805_v48 = vpop.f32.mrf.mxu1  ;;  %v1846_v49 = vpop.f32.mrf.mxu0 }
 0x329   :  { %v1931_v50 = vmul.f32 0.2, %v1844_v47  ;;  %v1934_v51 = vmax.f32 %v1842_v25, %v1930_v46 }
 0x32b   :  { %v1935_v52 = vmax.f32 %v1844_v47, %v1931_v50  ;;  %v1938_v54 = vpack.c.bf16 %v1934_v51, %v1934_v51 }
 0x32d   :  { %v1939_v53 = vpack.c.bf16 %v1935_v52, %v1935_v52  ;;  %v5294_v52 = vld [vmem:[%s6169_s12 + $0x38] sm:$0xff]  }
 0x32f   :  { %2370 = vmatprep.mubr.bf16.mxu1 %v1939_v53 }
 0x330   :  { %2371 = vmatmul.mubr.bf16.vlgmr.msra.gmra.mxu1 %v1938_v54  ;;  %v5295_v54 = vld [vmem:[%s6169_s12 + $0x30] sm:$0xff]  }
 0x331   :  { %4745 = vmatpush3.bf16.msra.mxu1 %v5279_v13  ;;  %v5307_v13 = vld [vmem:[#allocation11 + $0x10] sm:$0xff]  }
 0x332   :  { %4746 = vmatprep.subr.bf16.mxu1 %v5280_v14  ;;  %v5308_v14 = vld [vmem:[#allocation11 + $0x8] sm:$0xff]  }
 0x335   :  { %4747 = vmatpush3.bf16.msra.mxu1 %v5281_v15  ;;  %v5309_v15 = vld [vmem:[#allocation11] sm:$0xff]  }
 0x336   :  { %4748 = vmatprep.subr.bf16.mxu1 %v5282_v16  ;;  %v5312_v16 = vld [vmem:[#allocation13 + $0x74] ss:$8 sps:$4 sm:$0xff]  }
 0x339   :  { %4749 = vmatpush3.bf16.msra.mxu1 %v5283_v17  ;;  %v4550_v17 = vld [vmem:[%s6170_s13] ss:$0 sm:$0xff] }
 0x33a   :  { %4750 = vmatprep.subr.bf16.mxu1 %v5284_v18 }
 0x33d   :  { %4751 = vmatpush3.bf16.msra.mxu1 %v5285_v19  ;;  %v2716_v19 = vld [vmem:[%s6212_s2] sm:$0xff] }
 0x33e   :  { %4752 = vmatprep.subr.bf16.mxu1 %v5286_v20 }
 0x341   :  { %4753 = vmatpush3.bf16.msra.mxu1 %v5287_v21 }
 0x342   :  { %4754 = vmatprep.subr.bf16.mxu1 %v5288_v22 }
 0x345   :  { %4755 = vmatpush3.bf16.msra.mxu1 %v5289_v23 }
 0x346   :  { %4756 = vmatprep.subr.bf16.mxu1 %v5290_v24  ;;  %v5310_v24 = vld [vmem:[#allocation13 + $0x70] ss:$8 sps:$4 sm:$0xff]  }
 0x349   :  { %4757 = vmatpush3.bf16.msra.mxu1 %v5291_v27 }
 0x34a   :  { %4758 = vmatprep.subr.bf16.mxu1 %v5292_v28  ;;  %v5315_v28 = vld [vmem:[#allocation13 + $0x64] ss:$8 sps:$4 sm:$0xff]  }
 0x34d   :  { %4759 = vmatpush3.bf16.msra.mxu1 %v5293_v29 }
 0x34e   :  { %4784 = vmatprep.subr.bf16.mxu1 %v5824_v30 }
 0x362   :  { %v1882_v57 = vpop.f32.mrf.mxu1  ;;  %v1923_v58 = vpop.f32.mrf.mxu0 }
 0x363   :  { %v1883_v60 = vadd.f32 %v1882_v57, %v1117_v55  ;;  %v5296_v55 = vld [vmem:[%s6169_s12 + $0x28] sm:$0xff]   ;;  %v5298_v57 = vld [vmem:[%s6169_s12 + $0x18] sm:$0xff]  }
 0x364   :  { %v1884_v62 = vpop.f32.mrf.mxu1  ;;  %v1925_v63 = vpop.f32.mrf.mxu0 }
 0x365   :  { %v1924_v0 = vadd.f32 %v1923_v58, %v1883_v60  ;;  %v1885_v1 = vadd.f32 %v1884_v62, %v1121_v56  ;;  %v5297_v56 = vld [vmem:[%s6169_s12 + $0x20] sm:$0xff]   ;;  %v5299_v58 = vld [vmem:[%s6169_s12 + $0x10] sm:$0xff]   ;;  %v5300_v60 = vld [vmem:[%s6169_s12 + $0x8] sm:$0xff]  }
 0x366   :  { %v1886_v2 = vpop.f32.mrf.mxu1  ;;  %v1927_v3 = vpop.f32.mrf.mxu0  ;;  %v5301_v62 = vld [vmem:[%s6169_s12] sm:$0xff]  }
 0x367   :  { %v1932_v4 = vmul.f32 0.2, %v1924_v0  ;;  %v1926_v5 = vadd.f32 %v1925_v63, %v1885_v1 }
 0x368   :  { %v1887_v6 = vpop.f32.mrf.mxu1  ;;  %v1928_v7 = vpop.f32.mrf.mxu0 }
 0x369   :  { %v1933_v8 = vmul.f32 0.2, %v1926_v5  ;;  %v1936_v9 = vmax.f32 %v1924_v0, %v1932_v4  ;;  %v4533_v0 = vld [vmem:[%s6168_s11] ss:$0 sm:$0xff] }
 0x36b   :  { %v1937_v10 = vmax.f32 %v1926_v5, %v1933_v8  ;;  %v1940_v38 = vpack.c.bf16 %v1936_v9, %v1936_v9  ;;  %v5302_v8 = vld [vmem:[#allocation11 + $0x38] sm:$0xff]  }
 0x36d   :  { %v1941_v11 = vpack.c.bf16 %v1937_v10, %v1937_v10  ;;  %v5303_v10 = vld [vmem:[#allocation11 + $0x30] sm:$0xff]  }
 0x36f   :  { %2411 = vmatprep.mubr.bf16.mxu0 %v1941_v11  ;;  %v5304_v11 = vld [vmem:[#allocation11 + $0x28] sm:$0xff]  }
 0x370   :  { %2412 = vmatmul.mubr.bf16.vlgmr.msra.gmra.mxu0 %v1940_v38  ;;  %v5305_v38 = vld [vmem:[#allocation11 + $0x20] sm:$0xff]  }
 0x3f0   :  { %v2372_v31 = vpop.f32.mrf.mxu1 }
 0x3f1   :  { %v2373_v40 = vadd.f32 %v2372_v31, %v2011_v36  ;;  %v5318_v31 = vld [vmem:[#allocation13 + $0x54] ss:$8 sps:$4 sm:$0xff]   ;;  %v5322_v36 = vld [vmem:[#allocation13 + $0x30] ss:$8 sps:$4 sm:$0xff]  }
 0x3f2   :  { %v2374_v32 = vpop.f32.mrf.mxu1 }
 0x3f3   :  { %v2375_v43 = vadd.f32 %v2374_v32, %v2015_v37  ;;  %v5316_v32 = vld [vmem:[#allocation13 + $0x50] ss:$8 sps:$4 sm:$0xff]   ;;  %v5327_v37 = vld [vmem:[#allocation13 + $0x24] ss:$8 sps:$4 sm:$0xff]  }
 0x3f4   :  { %v2376_v33 = vpop.f32.mrf.mxu1 }
 0x3f5   :  { %v5321_v33 = vld [vmem:[#allocation13 + $0x44] ss:$8 sps:$4 sm:$0xff]  }
 0x3f6   :  { %v2377_v34 = vpop.f32.mrf.mxu1 }
 0x3f7   :  { %v5319_v34 = vld [vmem:[#allocation13 + $0x40] ss:$8 sps:$4 sm:$0xff]  }
 0x430   :  { %v2413_v42 = vpop.f32.mrf.mxu0 }
 0x431   :  { %v2414_v25 = vadd.f32 %v2413_v42, %v2373_v40  ;;  %v5325_v40 = vld [vmem:[#allocation13 + $0x20] ss:$8 sps:$4 sm:$0xff]   ;;  %v5330_v42 = vld [vmem:[#allocation13 + $0x14] ss:$8 sps:$4 sm:$0xff]  }
 0x432   :  { %v2415_v26 = vpop.f32.mrf.mxu0 }
 0x433   :  { %v2420_v44 = vmul.f32 0.2, %v2414_v25  ;;  %v2416_v45 = vadd.f32 %v2415_v26, %v2375_v43  ;;  %v5328_v43 = vld [vmem:[#allocation13 + $0x10] ss:$8 sps:$4 sm:$0xff]   ;;  %v5331_v26 = vld [vmem:[#allocation13] ss:$8 sps:$4 sm:$0xff]  }
 0x434   :  { %v2417_v46 = vpop.f32.mrf.mxu0 }
 0x435   :  { %v2421_v47 = vmul.f32 0.2, %v2416_v45  ;;  %v2422_v48 = vmax.f32 %v2414_v25, %v2420_v44  ;;  %v5333_v25 = vld [vmem:[#allocation13 + $0x4] ss:$8 sps:$4 sm:$0xff]   ;;  %v5826_v44 = vmov 0  }
 0x436   :  { %v2418_v49 = vpop.f32.mrf.mxu0  ;;  %v5336_v46 = vld [vmem:[#allocation14 + $0xe4] ss:$16 sps:$4 sm:$0xff]  }
 0x437   :  { %v2423_v50 = vmax.f32 %v2416_v45, %v2421_v47  ;;  %v2424_v53 = vpack.c.bf16 %v2422_v48, %v2422_v48  ;;  %v5334_v45 = vld [vmem:[#allocation14 + $0xe0] ss:$16 sps:$4 sm:$0xff]   ;;  %v5339_v47 = vld [vmem:[#allocation14 + $0xec] ss:$16 sps:$4 sm:$0xff]   ;;  %v5342_v48 = vld [vmem:[#allocation14 + $0xc4] ss:$16 sps:$4 sm:$0xff]   ;;  %3394 = vmatprep.subr.bf16.mxu0 %v5336_v46 }
 0x438   :  { %3395 = vmatpush1.bf16.msra.mxu0 %v5334_v45  ;;  %v5340_v49 = vld [vmem:[#allocation14 + $0xc0] ss:$16 sps:$4 sm:$0xff]   ;;  %v5409_v45 = vld [vmem:[#allocation14 + $0x168] ss:$16 sps:$4 sm:$0xff]   ;;  %v5414_v46 = vld [vmem:[#allocation14 + $0x144] ss:$16 sps:$4 sm:$0xff]  }
 0x439   :  { %v2425_v51 = vpack.c.bf16 %v2423_v50, %v2423_v50  ;;  %3396 = vmatprep.subr.bf16.mxu0 %v5342_v48  ;;  %v5348_v50 = vld [vmem:[#allocation14 + $0xa4] ss:$16 sps:$4 sm:$0xff]   ;;  %v5412_v48 = vld [vmem:[#allocation14 + $0x140] ss:$16 sps:$4 sm:$0xff]  }
 0x43b   :  { %2593 = vmatprep.mubr.bf16.mxu1 %v2425_v51  ;;  %v5346_v51 = vld [vmem:[#allocation14 + $0xa0] ss:$16 sps:$4 sm:$0xff]  }
 0x43c   :  { %2594 = vmatmul.mubr.bf16.vlgmr.msra.gmra.mxu1 %v2424_v53  ;;  %3397 = vmatpush1.bf16.msra.mxu0 %v5340_v49  ;;  %v5352_v53 = vld [vmem:[#allocation14 + $0x80] ss:$16 sps:$4 sm:$0xff]   ;;  %v5415_v49 = vld [vmem:[#allocation14 + $0x148] ss:$16 sps:$4 sm:$0xff]  }
 0x43d   :  { %4785 = vmatpush3.bf16.msra.mxu1 %v5294_v52  ;;  %4800 = vmatprep.mubr.msk.bf16.mxu1 %vm5825_vm0, %v5824_v30  ;;  %v5354_v52 = vld [vmem:[#allocation14 + $0x84] ss:$16 sps:$4 sm:$0xff]  }
 0x43e   :  { %4786 = vmatprep.subr.bf16.mxu1 %v5824_v30  ;;  %3398 = vmatprep.subr.bf16.mxu0 %v5348_v50  ;;  %v5420_v50 = vld [vmem:[#allocation14 + $0x124] ss:$16 sps:$4 sm:$0xff]  }
 0x440   :  { %3399 = vmatpush1.bf16.msra.mxu0 %v5346_v51  ;;  %v5423_v51 = vld [vmem:[#allocation14 + $0x12c] ss:$16 sps:$4 sm:$0xff]  }
 0x441   :  { %4787 = vmatpush3.bf16.msra.mxu1 %v5295_v54  ;;  %3400 = vmatprep.subr.bf16.mxu0 %v5354_v52  ;;  %v5360_v54 = vld [vmem:[#allocation14 + $0x64] ss:$16 sps:$4 sm:$0xff]   ;;  %v5418_v52 = vld [vmem:[#allocation14 + $0x120] ss:$16 sps:$4 sm:$0xff]  }
 0x442   :  { %4788 = vmatprep.subr.bf16.mxu1 %v5824_v30 }
 0x444   :  { %3401 = vmatpush1.bf16.msra.mxu0 %v5352_v53  ;;  %v5421_v53 = vld [vmem:[#allocation14 + $0x128] ss:$16 sps:$4 sm:$0xff]  }
 0x445   :  { %4789 = vmatpush3.bf16.msra.mxu1 %v5296_v55  ;;  %v5358_v55 = vld [vmem:[#allocation14 + $0x60] ss:$16 sps:$4 sm:$0xff]   ;;  %3402 = vmatprep.subr.bf16.mxu0 %v5360_v54  ;;  %v5426_v54 = vld [vmem:[#allocation14 + $0x104] ss:$16 sps:$4 sm:$0xff]  }
 0x446   :  { %4790 = vmatprep.subr.bf16.mxu1 %v5824_v30 }
 0x448   :  { %3403 = vmatpush1.bf16.msra.mxu0 %v5358_v55  ;;  %v5429_v55 = vld [vmem:[#allocation14 + $0x10c] ss:$16 sps:$4 sm:$0xff]  }
 0x449   :  { %4791 = vmatpush3.bf16.msra.mxu1 %v5297_v56  ;;  %v5366_v56 = vld [vmem:[#allocation14 + $0x44] ss:$16 sps:$4 sm:$0xff]  }
 0x44a   :  { %4792 = vmatprep.subr.bf16.mxu1 %v5824_v30  ;;  %3404 = vmatprep.subr.bf16.mxu0 %v5366_v56  ;;  %v5424_v56 = vld [vmem:[#allocation14 + $0x100] ss:$16 sps:$4 sm:$0xff]  }
 0x44d   :  { %4793 = vmatpush3.bf16.msra.mxu1 %v5298_v57  ;;  %v5364_v57 = vld [vmem:[#allocation14 + $0x40] ss:$16 sps:$4 sm:$0xff]  }
 0x44e   :  { %4794 = vmatprep.subr.bf16.mxu1 %v5824_v30  ;;  %3405 = vmatpush1.bf16.msra.mxu0 %v5364_v57  ;;  %v5427_v57 = vld [vmem:[#allocation14 + $0x108] ss:$16 sps:$4 sm:$0xff]  }
 0x451   :  { %4795 = vmatpush3.bf16.msra.mxu1 %v5299_v58  ;;  %v5372_v58 = vld [vmem:[#allocation14 + $0x24] ss:$16 sps:$4 sm:$0xff]  }
 0x452   :  { %4796 = vmatprep.subr.bf16.mxu1 %v5824_v30  ;;  %3406 = vmatprep.subr.bf16.mxu0 %v5372_v58  ;;  %v5432_v58 = vld [vmem:[#allocation16 + $0x74] ss:$8 sps:$4 sm:$0xff]  }
 0x455   :  { %4797 = vmatpush3.bf16.msra.mxu1 %v5300_v60  ;;  %v5370_v60 = vld [vmem:[#allocation14 + $0x20] ss:$16 sps:$4 sm:$0xff]  }
 0x456   :  { %4798 = vmatprep.subr.bf16.mxu1 %v5824_v30  ;;  %3407 = vmatpush1.bf16.msra.mxu0 %v5370_v60  ;;  %v5435_v60 = vld [vmem:[#allocation16 + $0x174] ss:$8 sps:$4 sm:$0xff]  }
 0x459   :  { %4799 = vmatpush3.bf16.msra.mxu1 %v5301_v62  ;;  %v5378_v62 = vld [vmem:[#allocation14 + $0x4] ss:$16 sps:$4 sm:$0xff]  }
 0x45a   :  { %4804 = vmatprep.subr.bf16.mxu1 %v5824_v30  ;;  %3408 = vmatprep.subr.bf16.mxu0 %v5378_v62  ;;  %v2849_v62 = vld [vmem:[%s6174_s17] sm:$0x3] }
 0x4fc   :  { %v4760_v63 = vpop.f32.mrf.mxu1 }
 0x4fe   :  { %v4761_v1 = vpop.f32.mrf.mxu1 }
 0x4ff   :  { %v4762_v2 = vadd.f32 %v4761_v1, %v4760_v63  ;;  %v5376_v63 = vld [vmem:[#allocation14] ss:$16 sps:$4 sm:$0xff]  }
 0x500   :  { %v4763_v3 = vpop.f32.mrf.mxu1  ;;  %3409 = vmatpush1.bf16.msra.mxu0 %v5376_v63  ;;  %v5382_v1 = vld [vmem:[#allocation14 + $0x1e0] ss:$16 sps:$4 sm:$0xff]   ;;  %v2854_v63 = vrot.slane %v2849_v62, %v6030_v39 }
 0x501   :  { %v2596_v4 = vadd.f32 %v4762_v2, %v4533_v0  ;;  %v5384_v0 = vld [vmem:[#allocation14 + $0x1e4] ss:$16 sps:$4 sm:$0xff]   ;;  %v5388_v3 = vld [vmem:[#allocation14 + $0x1c0] ss:$16 sps:$4 sm:$0xff]  }
 0x502   :  { %v4764_v5 = vpop.f32.mrf.mxu1  ;;  %3410 = vmatprep.subr.bf16.mxu0 %v5384_v0  ;;  %v5390_v2 = vld [vmem:[#allocation14 + $0x1c4] ss:$16 sps:$4 sm:$0xff]   ;;  %v2858_v0 = vrot.slane %v2849_v62, %v6036_v41  ;;  %v5499_v62 = vld [vmem:[#allocation16 + $0x1c0] ss:$8 sps:$4 sm:$0xff]  }
 0x503   :  { %v2601_v6 = vmul.f32 0.2, %v2596_v4  ;;  %v5394_v5 = vld [vmem:[#allocation14 + $0x1a0] ss:$16 sps:$4 sm:$0xff]  }
 0x504   :  { %3411 = vmatpush2.bf16.msra.mxu0 %v5382_v1 }
 0x505   :  { %v2602_v7 = vmax.f32 %v2596_v4, %v2601_v6  ;;  %3412 = vmatprep.subr.bf16.mxu0 %v5390_v2  ;;  %v5396_v4 = vld [vmem:[#allocation14 + $0x1a4] ss:$16 sps:$4 sm:$0xff]  }
 0x506   :  { %v5402_v6 = vld [vmem:[#allocation14 + $0x184] ss:$16 sps:$4 sm:$0xff]  }
 0x507   :  { %v2603_v9 = vpack.c.bf16 %v2602_v7, %v2602_v7  ;;  %v5400_v7 = vld [vmem:[#allocation14 + $0x180] ss:$16 sps:$4 sm:$0xff]  }
 0x508   :  { %3413 = vmatpush2.bf16.msra.mxu0 %v5388_v3 }
 0x509   :  { %4801 = vmatmul.mubr.bf16.vlgmr.msra.gmra.mxu1 %v2603_v9  ;;  %3414 = vmatprep.subr.bf16.mxu0 %v5396_v4  ;;  %v5406_v9 = vld [vmem:[#allocation14 + $0x160] ss:$16 sps:$4 sm:$0xff]  }
 0x50a   :  { %4805 = vmatpush3.bf16.msra.mxu1 %v5302_v8  ;;  %4820 = vmatprep.mubr.msk.bf16.mxu1 %vm5825_vm0, %v5824_v30  ;;  %v5408_v8 = vld [vmem:[#allocation14 + $0x164] ss:$16 sps:$4 sm:$0xff]  }
 0x50b   :  { %4806 = vmatprep.subr.bf16.mxu1 %v5824_v30 }
 0x50c   :  { %3415 = vmatpush2.bf16.msra.mxu0 %v5394_v5 }
 0x50d   :  { %3416 = vmatprep.subr.bf16.mxu0 %v5402_v6 }
 0x50e   :  { %4807 = vmatpush3.bf16.msra.mxu1 %v5303_v10  ;;  %v4559_v10 = vld [vmem:[%s6172_s15] ss:$0 sm:$0xff] }
 0x50f   :  { %4808 = vmatprep.subr.bf16.mxu1 %v5824_v30 }
 0x510   :  { %3417 = vmatpush2.bf16.msra.mxu0 %v5400_v7 }
 0x511   :  { %3418 = vmatprep.subr.bf16.mxu0 %v5408_v8 }
 0x512   :  { %4809 = vmatpush3.bf16.msra.mxu1 %v5304_v11 }
 0x513   :  { %4810 = vmatprep.subr.bf16.mxu1 %v5824_v30 }
 0x514   :  { %3419 = vmatpush2.bf16.msra.mxu0 %v5406_v9 }
 0x515   :  { %3420 = vmatprep.subr.bf16.mxu0 %v5414_v46  ;;  %v5483_v46 = vld [vmem:[#allocation16 + $0x1f4] ss:$8 sps:$4 sm:$0xff]  }
 0x516   :  { %4811 = vmatpush3.bf16.msra.mxu1 %v5305_v38 }
 0x517   :  { %4812 = vmatprep.subr.bf16.mxu1 %v5824_v30 }
 0x518   :  { %3421 = vmatpush2.bf16.msra.mxu0 %v5412_v48  ;;  %v5481_v48 = vld [vmem:[#allocation16 + $0x1f0] ss:$8 sps:$4 sm:$0xff]  }
 0x519   :  { %3422 = vmatprep.subr.bf16.mxu0 %v5420_v50  ;;  %v5489_v50 = vld [vmem:[#allocation16 + $0x1e4] ss:$8 sps:$4 sm:$0xff]  }
 0x51a   :  { %4813 = vmatpush3.bf16.msra.mxu1 %v5306_v12 }
 0x51b   :  { %4814 = vmatprep.subr.bf16.mxu1 %v5824_v30 }
 0x51c   :  { %3423 = vmatpush2.bf16.msra.mxu0 %v5418_v52  ;;  %v5487_v52 = vld [vmem:[#allocation16 + $0x1e0] ss:$8 sps:$4 sm:$0xff]  }
 0x51d   :  { %3424 = vmatprep.subr.bf16.mxu0 %v5426_v54  ;;  %v5495_v54 = vld [vmem:[#allocation16 + $0x1d4] ss:$8 sps:$4 sm:$0xff]  }
 0x51e   :  { %4815 = vmatpush3.bf16.msra.mxu1 %v5307_v13 }
 0x51f   :  { %4816 = vmatprep.subr.bf16.mxu1 %v5824_v30 }
 0x520   :  { %3425 = vmatpush2.bf16.msra.mxu0 %v5424_v56  ;;  %v5493_v56 = vld [vmem:[#allocation16 + $0x1d0] ss:$8 sps:$4 sm:$0xff]  }
 0x521   :  { %3884 = vmatprep.subr.bf16.mxu0 %v5432_v58  ;;  %v5501_v58 = vld [vmem:[#allocation16 + $0x1c4] ss:$8 sps:$4 sm:$0xff]  }
 0x522   :  { %4817 = vmatpush3.bf16.msra.mxu1 %v5308_v14 }
 0x523   :  { %4818 = vmatprep.subr.bf16.mxu1 %v5824_v30  ;;  %v5313_v30 = vld [vmem:[#allocation13 + $0x60] ss:$8 sps:$4 sm:$0xff]  }
 0x526   :  { %4819 = vmatpush3.bf16.msra.mxu1 %v5309_v15 }
 0x527   :  { %2941 = vmatprep.subr.bf16.mxu1 %v5312_v16 }
 0x5c9   :  { %v2709_v18 = vpop.f32.mrf.mxu1 }
 0x5ca   :  { %v2710_v20 = vadd.f32 %v4550_v17, %v2709_v18  ;;  %v5337_v17 = vld [vmem:[#allocation14 + $0xe8] ss:$16 sps:$4 sm:$0xff]  }
 0x5cb   :  { %v4802_v21 = vpop.f32.mrf.mxu1 }
 0x5cc   :  { %2715 = vst [vmem:[%s6182_s25] sm:$0xff] %v2710_v20  ;;  %v2717_v22 = vmul.f32 %v2716_v19, %v2710_v20  ;;  %v5345_v19 = vld [vmem:[#allocation14 + $0xcc] ss:$16 sps:$4 sm:$0xff]   ;;  %v5343_v20 = vld [vmem:[#allocation14 + $0xc8] ss:$16 sps:$4 sm:$0xff]  }
 0x5cd   :  { %v2712_v23 = vpop.f32.mrf.mxu1  ;;  %v5351_v21 = vld [vmem:[#allocation14 + $0xac] ss:$16 sps:$4 sm:$0xff]  }
 0x5ce   :  { %v2718_v27 = vpack.c.bf16 %v2717_v22, %v2717_v22  ;;  %v5349_v22 = vld [vmem:[#allocation14 + $0xa8] ss:$16 sps:$4 sm:$0xff]   ;;  %v5357_v23 = vld [vmem:[#allocation14 + $0x8c] ss:$16 sps:$4 sm:$0xff]  }
 0x5cf   :  { %v4803_v29 = vpop.f32.mrf.mxu1 }
 0x5d0   :  { %4821 = vmatmul.mubr.bf16.vlgmr.msra.gmra.mxu1 %v2718_v27  ;;  %v5363_v27 = vld [vmem:[#allocation14 + $0x6c] ss:$16 sps:$4 sm:$0xff]  }
 0x5d1   :  { %2942 = vmatpush1.bf16.msra.mxu1 %v5310_v24  ;;  %2973 = vmatprep.mubr.bf16.mxu1 %v5826_v44  ;;  %v5355_v24 = vld [vmem:[#allocation14 + $0x88] ss:$16 sps:$4 sm:$0xff]   ;;  %v5369_v29 = vld [vmem:[#allocation14 + $0x4c] ss:$16 sps:$4 sm:$0xff]  }
 0x5d2   :  { %2943 = vmatprep.subr.bf16.mxu1 %v5315_v28  ;;  %v5361_v28 = vld [vmem:[#allocation14 + $0x68] ss:$16 sps:$4 sm:$0xff]   ;;  %v5411_v44 = vld [vmem:[#allocation14 + $0x16c] ss:$16 sps:$4 sm:$0xff]  }
 0x5d5   :  { %2944 = vmatpush1.bf16.msra.mxu1 %v5313_v30  ;;  %v5367_v30 = vld [vmem:[#allocation14 + $0x48] ss:$16 sps:$4 sm:$0xff]  }
 0x5d6   :  { %2945 = vmatprep.subr.bf16.mxu1 %v5318_v31  ;;  %v5375_v31 = vld [vmem:[#allocation14 + $0x2c] ss:$16 sps:$4 sm:$0xff]  }
 0x5d9   :  { %2946 = vmatpush1.bf16.msra.mxu1 %v5316_v32  ;;  %v5373_v32 = vld [vmem:[#allocation14 + $0x28] ss:$16 sps:$4 sm:$0xff]  }
 0x5da   :  { %2947 = vmatprep.subr.bf16.mxu1 %v5321_v33  ;;  %v5381_v33 = vld [vmem:[#allocation14 + $0xc] ss:$16 sps:$4 sm:$0xff]  }
 0x5dd   :  { %2948 = vmatpush1.bf16.msra.mxu1 %v5319_v34  ;;  %v5379_v34 = vld [vmem:[#allocation14 + $0x8] ss:$16 sps:$4 sm:$0xff]  }
 0x5de   :  { %2949 = vmatprep.subr.bf16.mxu1 %v5324_v35  ;;  %v5387_v35 = vld [vmem:[#allocation14 + $0x1ec] ss:$16 sps:$4 sm:$0xff]  }
 0x5e1   :  { %2950 = vmatpush1.bf16.msra.mxu1 %v5322_v36  ;;  %v5385_v36 = vld [vmem:[#allocation14 + $0x1e8] ss:$16 sps:$4 sm:$0xff]  }
 0x5e2   :  { %2951 = vmatprep.subr.bf16.mxu1 %v5327_v37  ;;  %v5393_v37 = vld [vmem:[#allocation14 + $0x1cc] ss:$16 sps:$4 sm:$0xff]  }
 0x5e5   :  { %2952 = vmatpush1.bf16.msra.mxu1 %v5325_v40  ;;  %v5391_v40 = vld [vmem:[#allocation14 + $0x1c8] ss:$16 sps:$4 sm:$0xff]  }
 0x5e6   :  { %2953 = vmatprep.subr.bf16.mxu1 %v5330_v42  ;;  %v5399_v42 = vld [vmem:[#allocation14 + $0x1ac] ss:$16 sps:$4 sm:$0xff]  }
 0x5e9   :  { %2954 = vmatpush1.bf16.msra.mxu1 %v5328_v43  ;;  %v5397_v43 = vld [vmem:[#allocation14 + $0x1a8] ss:$16 sps:$4 sm:$0xff]  }
 0x5ea   :  { %2955 = vmatprep.subr.bf16.mxu1 %v5333_v25  ;;  %v5405_v25 = vld [vmem:[#allocation14 + $0x18c] ss:$16 sps:$4 sm:$0xff]  }
 0x5ed   :  { %2956 = vmatpush1.bf16.msra.mxu1 %v5331_v26  ;;  %v5403_v26 = vld [vmem:[#allocation14 + $0x188] ss:$16 sps:$4 sm:$0xff]  }
 0x5ee   :  { %3435 = vmatprep.subr.bf16.mxu1 %v5339_v47  ;;  %v5417_v47 = vld [vmem:[#allocation14 + $0x14c] ss:$16 sps:$4 sm:$0xff]  }
 0x690   :  { %v2824_v11 = vpop.f32.mrf.mxu1 }
 0x691   :  { %v2825_v38 = vadd.f32 %v4559_v10, %v2824_v11 }
 0x692   :  { %v4822_v12 = vpop.f32.mrf.mxu1 }
 0x693   :  { %v2830_v13 = vmul.f32 0.2, %v2825_v38  ;;  %v5433_v12 = vld [vmem:[#allocation16 + $0x170] ss:$8 sps:$4 sm:$0xff]  }
 0x694   :  { %v2827_v14 = vpop.f32.mrf.mxu1 }
 0x695   :  { %v2831_v15 = vmax.f32 %v2825_v38, %v2830_v13  ;;  %v5430_v38 = vld [vmem:[#allocation16 + $0x70] ss:$8 sps:$4 sm:$0xff]   ;;  %v5438_v14 = vld [vmem:[#allocation16 + $0x64] ss:$8 sps:$4 sm:$0xff]  }
 0x696   :  { %v4823_v16 = vpop.f32.mrf.mxu1 }
 0x697   :  { %v2832_v18 = vpack.c.bf16 %v2831_v15, %v2831_v15  ;;  %v5441_v15 = vld [vmem:[#allocation16 + $0x164] ss:$8 sps:$4 sm:$0xff]   ;;  %v5436_v16 = vld [vmem:[#allocation16 + $0x60] ss:$8 sps:$4 sm:$0xff]  }
 0x699   :  { %2974 = vmatmul.mubr.bf16.vlgmr.msra.gmra.mxu1 %v2832_v18  ;;  %v5444_v18 = vld [vmem:[#allocation16 + $0x54] ss:$8 sps:$4 sm:$0xff]  }
 0x69a   :  { %3436 = vmatpush1.bf16.msra.mxu1 %v5337_v17  ;;  %v5439_v17 = vld [vmem:[#allocation16 + $0x160] ss:$8 sps:$4 sm:$0xff]  }
 0x69b   :  { %3437 = vmatprep.subr.bf16.mxu1 %v5345_v19  ;;  %v5447_v19 = vld [vmem:[#allocation16 + $0x154] ss:$8 sps:$4 sm:$0xff]  }
 0x69e   :  { %3438 = vmatpush1.bf16.msra.mxu1 %v5343_v20  ;;  %v5442_v20 = vld [vmem:[#allocation16 + $0x50] ss:$8 sps:$4 sm:$0xff]  }
 0x69f   :  { %3439 = vmatprep.subr.bf16.mxu1 %v5351_v21  ;;  %v5445_v21 = vld [vmem:[#allocation16 + $0x150] ss:$8 sps:$4 sm:$0xff]  }
 0x6a2   :  { %3440 = vmatpush1.bf16.msra.mxu1 %v5349_v22  ;;  %v5450_v22 = vld [vmem:[#allocation16 + $0x44] ss:$8 sps:$4 sm:$0xff]  }
 0x6a3   :  { %3441 = vmatprep.subr.bf16.mxu1 %v5357_v23  ;;  %v5453_v23 = vld [vmem:[#allocation16 + $0x144] ss:$8 sps:$4 sm:$0xff]  }
 0x6a6   :  { %3442 = vmatpush1.bf16.msra.mxu1 %v5355_v24  ;;  %v5448_v24 = vld [vmem:[#allocation16 + $0x40] ss:$8 sps:$4 sm:$0xff]  }
 0x6a7   :  { %3443 = vmatprep.subr.bf16.mxu1 %v5363_v27  ;;  %v5451_v27 = vld [vmem:[#allocation16 + $0x140] ss:$8 sps:$4 sm:$0xff]  }
 0x6aa   :  { %3444 = vmatpush1.bf16.msra.mxu1 %v5361_v28  ;;  %v5456_v28 = vld [vmem:[#allocation16 + $0x34] ss:$8 sps:$4 sm:$0xff]  }
 0x6ab   :  { %3445 = vmatprep.subr.bf16.mxu1 %v5369_v29  ;;  %v5459_v29 = vld [vmem:[#allocation16 + $0x134] ss:$8 sps:$4 sm:$0xff]  }
 0x6ae   :  { %3446 = vmatpush1.bf16.msra.mxu1 %v5367_v30  ;;  %v5454_v30 = vld [vmem:[#allocation16 + $0x30] ss:$8 sps:$4 sm:$0xff]  }
 0x6af   :  { %3447 = vmatprep.subr.bf16.mxu1 %v5375_v31  ;;  %v5457_v31 = vld [vmem:[#allocation16 + $0x130] ss:$8 sps:$4 sm:$0xff]  }
 0x6b2   :  { %3448 = vmatpush1.bf16.msra.mxu1 %v5373_v32  ;;  %v5462_v32 = vld [vmem:[#allocation16 + $0x24] ss:$8 sps:$4 sm:$0xff]  }
 0x6b3   :  { %3449 = vmatprep.subr.bf16.mxu1 %v5381_v33  ;;  %v5465_v33 = vld [vmem:[#allocation16 + $0x124] ss:$8 sps:$4 sm:$0xff]  }
 0x6b6   :  { %3450 = vmatpush1.bf16.msra.mxu1 %v5379_v34  ;;  %v5460_v34 = vld [vmem:[#allocation16 + $0x20] ss:$8 sps:$4 sm:$0xff]  }
 0x6b7   :  { %3451 = vmatprep.subr.bf16.mxu1 %v5387_v35  ;;  %v5463_v35 = vld [vmem:[#allocation16 + $0x120] ss:$8 sps:$4 sm:$0xff]  }
 0x6ba   :  { %3452 = vmatpush2.bf16.msra.mxu1 %v5385_v36  ;;  %v5468_v36 = vld [vmem:[#allocation16 + $0x14] ss:$8 sps:$4 sm:$0xff]  }
 0x6bb   :  { %3453 = vmatprep.subr.bf16.mxu1 %v5393_v37  ;;  %v5471_v37 = vld [vmem:[#allocation16 + $0x114] ss:$8 sps:$4 sm:$0xff]  }
 0x6be   :  { %3454 = vmatpush2.bf16.msra.mxu1 %v5391_v40  ;;  %v5466_v40 = vld [vmem:[#allocation16 + $0x10] ss:$8 sps:$4 sm:$0xff]  }
 0x6bf   :  { %3455 = vmatprep.subr.bf16.mxu1 %v5399_v42  ;;  %v5469_v42 = vld [vmem:[#allocation16 + $0x110] ss:$8 sps:$4 sm:$0xff]  }
 0x6c2   :  { %3456 = vmatpush2.bf16.msra.mxu1 %v5397_v43  ;;  %v5474_v43 = vld [vmem:[#allocation16 + $0x4] ss:$8 sps:$4 sm:$0xff]  }
 0x6c3   :  { %3457 = vmatprep.subr.bf16.mxu1 %v5405_v25  ;;  %v5477_v25 = vld [vmem:[#allocation16 + $0x104] ss:$8 sps:$4 sm:$0xff]  }
 0x6c6   :  { %3458 = vmatpush2.bf16.msra.mxu1 %v5403_v26  ;;  %v5472_v26 = vld [vmem:[#allocation16] ss:$8 sps:$4 sm:$0xff]  }
 0x6c7   :  { %3459 = vmatprep.subr.bf16.mxu1 %v5411_v44  ;;  %v5475_v44 = vld [vmem:[#allocation16 + $0x100] ss:$8 sps:$4 sm:$0xff]  }
 0x6ca   :  { %3460 = vmatpush2.bf16.msra.mxu1 %v5409_v45  ;;  %v5480_v45 = vld [vmem:[#allocation16 + $0xf4] ss:$8 sps:$4 sm:$0xff]  }
 0x6cb   :  { %3461 = vmatprep.subr.bf16.mxu1 %v5417_v47  ;;  %v5478_v47 = vld [vmem:[#allocation16 + $0xf0] ss:$8 sps:$4 sm:$0xff]  }
 0x6ce   :  { %3462 = vmatpush2.bf16.msra.mxu1 %v5415_v49  ;;  %v5486_v49 = vld [vmem:[#allocation16 + $0xe4] ss:$8 sps:$4 sm:$0xff]  }
 0x6cf   :  { %3463 = vmatprep.subr.bf16.mxu1 %v5423_v51  ;;  %v5484_v51 = vld [vmem:[#allocation16 + $0xe0] ss:$8 sps:$4 sm:$0xff]  }
 0x6d2   :  { %3464 = vmatpush2.bf16.msra.mxu1 %v5421_v53  ;;  %v5492_v53 = vld [vmem:[#allocation16 + $0xd4] ss:$8 sps:$4 sm:$0xff]  }
 0x6d3   :  { %3465 = vmatprep.subr.bf16.mxu1 %v5429_v55  ;;  %v5490_v55 = vld [vmem:[#allocation16 + $0xd0] ss:$8 sps:$4 sm:$0xff]  }
 0x6d6   :  { %3466 = vmatpush2.bf16.msra.mxu1 %v5427_v57  ;;  %v5498_v57 = vld [vmem:[#allocation16 + $0xc4] ss:$8 sps:$4 sm:$0xff]  }
 0x6d7   :  { %3925 = vmatprep.subr.bf16.mxu1 %v5435_v60  ;;  %v5496_v60 = vld [vmem:[#allocation16 + $0xc0] ss:$8 sps:$4 sm:$0xff]  }
 0x759   :  { %v2975_v1 = vpop.f32.mrf.mxu1 }
 0x75a   :  { %v2976_v2 = vadd.f32 %v2975_v1, %v2854_v63  ;;  %v5504_v63 = vld [vmem:[#allocation16 + $0xb4] ss:$8 sps:$4 sm:$0xff]   ;;  %v5502_v1 = vld [vmem:[#allocation16 + $0xb0] ss:$8 sps:$4 sm:$0xff]  }
 0x75b   :  { %v2977_v3 = vpop.f32.mrf.mxu1 }
 0x75c   :  { %v2982_v4 = vmul.f32 0.2, %v2976_v2  ;;  %v2978_v5 = vadd.f32 %v2977_v3, %v2858_v0  ;;  %v5507_v0 = vld [vmem:[#allocation16 + $0x1b4] ss:$8 sps:$4 sm:$0xff]   ;;  %v5510_v3 = vld [vmem:[#allocation16 + $0xa4] ss:$8 sps:$4 sm:$0xff]  }
 0x75d   :  { %v2979_v6 = vpop.f32.mrf.mxu1 }
 0x75e   :  { %v2983_v7 = vmul.f32 0.2, %v2978_v5  ;;  %v2984_v8 = vmax.f32 %v2976_v2, %v2982_v4  ;;  %v5505_v2 = vld [vmem:[#allocation16 + $0x1b0] ss:$8 sps:$4 sm:$0xff]   ;;  %v5513_v4 = vld [vmem:[#allocation16 + $0x1a4] ss:$8 sps:$4 sm:$0xff]  }
 0x75f   :  { %v2980_v9 = vpop.f32.mrf.mxu1  ;;  %v5511_v6 = vld [vmem:[#allocation16 + $0x1a0] ss:$8 sps:$4 sm:$0xff]  }
 0x760   :  { %v2985_v10 = vmax.f32 %v2978_v5, %v2983_v7  ;;  %v2986_v13 = vpack.c.bf16 %v2984_v8, %v2984_v8  ;;  %v5508_v5 = vld [vmem:[#allocation16 + $0xa0] ss:$8 sps:$4 sm:$0xff]   ;;  %v5516_v7 = vld [vmem:[#allocation16 + $0x94] ss:$8 sps:$4 sm:$0xff]   ;;  %v5514_v9 = vld [vmem:[#allocation16 + $0x90] ss:$8 sps:$4 sm:$0xff]  }
 0x761   :  { %v5519_v8 = vld [vmem:[#allocation16 + $0x194] ss:$8 sps:$4 sm:$0xff]  }
 0x762   :  { %v2987_v11 = vpack.c.bf16 %v2985_v10, %v2985_v10  ;;  %v5517_v10 = vld [vmem:[#allocation16 + $0x190] ss:$8 sps:$4 sm:$0xff]  }
 0x764   :  { %3426 = vmatprep.mubr.bf16.mxu0 %v2987_v11  ;;  %3467 = vmatprep.mubr.bf16.mxu1 %v2987_v11  ;;  %v5522_v11 = vld [vmem:[#allocation16 + $0x84] ss:$8 sps:$4 sm:$0xff]  }
 0x765   :  { %3427 = vmatmul.mubr.bf16.vlgmr.msra.gmra.mxu0 %v2986_v13  ;;  %3468 = vmatmul.mubr.bf16.vlgmr.msra.gmra.mxu1 %v2986_v13  ;;  %v5523_v13 = vld [vmem:[#allocation16 + $0x180] ss:$8 sps:$4 sm:$0xff]  }
 0x766   :  { %3885 = vmatpush1.bf16.msra.mxu0 %v5430_v38  ;;  %3926 = vmatpush1.bf16.msra.mxu1 %v5433_v12  ;;  %v5525_v38 = vld [vmem:[#allocation16 + $0x184] ss:$8 sps:$4 sm:$0xff]   ;;  %v5520_v12 = vld [vmem:[#allocation16 + $0x80] ss:$8 sps:$4 sm:$0xff]  }
 0x767   :  { %3886 = vmatprep.subr.bf16.mxu0 %v5438_v14  ;;  %3927 = vmatprep.subr.bf16.mxu1 %v5441_v15  ;;  %v5528_v14 = vld [vmem:[#allocation17 + $0x74] ss:$8 sps:$4 sm:$0xff]   ;;  %v3052_v15 = vld [vmem:[%s6176_s19] sm:$0xf] }
 0x76a   :  { %3887 = vmatpush1.bf16.msra.mxu0 %v5436_v16  ;;  %3928 = vmatpush1.bf16.msra.mxu1 %v5439_v17  ;;  %v3057_v16 = vrot.slane %v3052_v15, %v6030_v39  ;;  %v3065_v17 = vrot.slane %v3052_v15, %v6041_v59 }
 0x76b   :  { %3888 = vmatprep.subr.bf16.mxu0 %v5444_v18  ;;  %3929 = vmatprep.subr.bf16.mxu1 %v5447_v19  ;;  %v3061_v18 = vrot.slane %v3052_v15, %v6036_v41  ;;  %v3069_v19 = vrot.slane %v3052_v15, %v6047_v61 }
 0x76e   :  { %3889 = vmatpush1.bf16.msra.mxu0 %v5442_v20  ;;  %3930 = vmatpush1.bf16.msra.mxu1 %v5445_v21 }
 0x76f   :  { %3890 = vmatprep.subr.bf16.mxu0 %v5450_v22  ;;  %3931 = vmatprep.subr.bf16.mxu1 %v5453_v23 }
 0x772   :  { %3891 = vmatpush1.bf16.msra.mxu0 %v5448_v24  ;;  %3932 = vmatpush1.bf16.msra.mxu1 %v5451_v27 }
 0x773   :  { %3892 = vmatprep.subr.bf16.mxu0 %v5456_v28  ;;  %3933 = vmatprep.subr.bf16.mxu1 %v5459_v29 }
 0x776   :  { %3893 = vmatpush1.bf16.msra.mxu0 %v5454_v30  ;;  %3934 = vmatpush1.bf16.msra.mxu1 %v5457_v31 }
 0x777   :  { %3894 = vmatprep.subr.bf16.mxu0 %v5462_v32  ;;  %3935 = vmatprep.subr.bf16.mxu1 %v5465_v33 }
 0x77a   :  { %3895 = vmatpush1.bf16.msra.mxu0 %v5460_v34  ;;  %3936 = vmatpush1.bf16.msra.mxu1 %v5463_v35 }
 0x77b   :  { %3896 = vmatprep.subr.bf16.mxu0 %v5468_v36  ;;  %3937 = vmatprep.subr.bf16.mxu1 %v5471_v37 }
 0x77e   :  { %3897 = vmatpush1.bf16.msra.mxu0 %v5466_v40  ;;  %3938 = vmatpush1.bf16.msra.mxu1 %v5469_v42 }
 0x77f   :  { %3898 = vmatprep.subr.bf16.mxu0 %v5474_v43  ;;  %3939 = vmatprep.subr.bf16.mxu1 %v5477_v25 }
 0x782   :  { %3899 = vmatpush1.bf16.msra.mxu0 %v5472_v26  ;;  %3940 = vmatpush1.bf16.msra.mxu1 %v5475_v44  ;;  %v5526_v26 = vld [vmem:[#allocation17 + $0x70] ss:$8 sps:$4 sm:$0xff]  }
 0x783   :  { %3900 = vmatprep.subr.bf16.mxu0 %v5480_v45  ;;  %3941 = vmatprep.subr.bf16.mxu1 %v5483_v46  ;;  %v5531_v46 = vld [vmem:[#allocation17 + $0x64] ss:$8 sps:$4 sm:$0xff]  }
 0x786   :  { %3901 = vmatpush2.bf16.msra.mxu0 %v5478_v47  ;;  %3942 = vmatpush2.bf16.msra.mxu1 %v5481_v48  ;;  %v5529_v47 = vld [vmem:[#allocation17 + $0x60] ss:$8 sps:$4 sm:$0xff]   ;;  %v5534_v48 = vld [vmem:[#allocation17 + $0x54] ss:$8 sps:$4 sm:$0xff]  }
 0x787   :  { %3902 = vmatprep.subr.bf16.mxu0 %v5486_v49  ;;  %3943 = vmatprep.subr.bf16.mxu1 %v5489_v50  ;;  %v5532_v49 = vld [vmem:[#allocation17 + $0x50] ss:$8 sps:$4 sm:$0xff]   ;;  %v5537_v50 = vld [vmem:[#allocation17 + $0x44] ss:$8 sps:$4 sm:$0xff]  }
 0x78a   :  { %3903 = vmatpush2.bf16.msra.mxu0 %v5484_v51  ;;  %3944 = vmatpush2.bf16.msra.mxu1 %v5487_v52  ;;  %v5535_v51 = vld [vmem:[#allocation17 + $0x40] ss:$8 sps:$4 sm:$0xff]   ;;  %v5540_v52 = vld [vmem:[#allocation17 + $0x34] ss:$8 sps:$4 sm:$0xff]  }
 0x78b   :  { %3904 = vmatprep.subr.bf16.mxu0 %v5492_v53  ;;  %3945 = vmatprep.subr.bf16.mxu1 %v5495_v54  ;;  %v5538_v53 = vld [vmem:[#allocation17 + $0x30] ss:$8 sps:$4 sm:$0xff]   ;;  %v5543_v54 = vld [vmem:[#allocation17 + $0x24] ss:$8 sps:$4 sm:$0xff]  }
 0x78e   :  { %3905 = vmatpush2.bf16.msra.mxu0 %v5490_v55  ;;  %3946 = vmatpush2.bf16.msra.mxu1 %v5493_v56  ;;  %v5541_v55 = vld [vmem:[#allocation17 + $0x20] ss:$8 sps:$4 sm:$0xff]   ;;  %v5546_v56 = vld [vmem:[#allocation17 + $0x14] ss:$8 sps:$4 sm:$0xff]  }
 0x78f   :  { %3906 = vmatprep.subr.bf16.mxu0 %v5498_v57  ;;  %3947 = vmatprep.subr.bf16.mxu1 %v5501_v58  ;;  %v5544_v57 = vld [vmem:[#allocation17 + $0x10] ss:$8 sps:$4 sm:$0xff]   ;;  %v5549_v58 = vld [vmem:[#allocation17 + $0x4] ss:$8 sps:$4 sm:$0xff]  }
 0x792   :  { %3907 = vmatpush2.bf16.msra.mxu0 %v5496_v60  ;;  %3948 = vmatpush2.bf16.msra.mxu1 %v5499_v62  ;;  %v5547_v60 = vld [vmem:[#allocation17] ss:$8 sps:$4 sm:$0xff]   ;;  %v5552_v62 = vld [vmem:[#allocation17 + $0xf4] ss:$8 sps:$4 sm:$0xff]  }
 0x793   :  { %3908 = vmatprep.subr.bf16.mxu0 %v5504_v63  ;;  %3949 = vmatprep.subr.bf16.mxu1 %v5507_v0  ;;  %v5550_v63 = vld [vmem:[#allocation17 + $0xf0] ss:$8 sps:$4 sm:$0xff]   ;;  %v5555_v0 = vld [vmem:[#allocation17 + $0xe4] ss:$8 sps:$4 sm:$0xff]  }
 0x796   :  { %3909 = vmatpush2.bf16.msra.mxu0 %v5502_v1  ;;  %3950 = vmatpush2.bf16.msra.mxu1 %v5505_v2  ;;  %v5553_v1 = vld [vmem:[#allocation17 + $0xe0] ss:$8 sps:$4 sm:$0xff]   ;;  %v5558_v2 = vld [vmem:[#allocation17 + $0xd4] ss:$8 sps:$4 sm:$0xff]  }
 0x797   :  { %3910 = vmatprep.subr.bf16.mxu0 %v5510_v3  ;;  %3951 = vmatprep.subr.bf16.mxu1 %v5513_v4  ;;  %v5556_v3 = vld [vmem:[#allocation17 + $0xd0] ss:$8 sps:$4 sm:$0xff]   ;;  %v5561_v4 = vld [vmem:[#allocation17 + $0xc4] ss:$8 sps:$4 sm:$0xff]  }
 0x79a   :  { %3911 = vmatpush2.bf16.msra.mxu0 %v5508_v5  ;;  %3952 = vmatpush2.bf16.msra.mxu1 %v5511_v6  ;;  %v5559_v5 = vld [vmem:[#allocation17 + $0xc0] ss:$8 sps:$4 sm:$0xff]   ;;  %v5564_v6 = vld [vmem:[#allocation17 + $0xb4] ss:$8 sps:$4 sm:$0xff]  }
 0x79b   :  { %3912 = vmatprep.subr.bf16.mxu0 %v5516_v7  ;;  %3953 = vmatprep.subr.bf16.mxu1 %v5519_v8  ;;  %v5562_v7 = vld [vmem:[#allocation17 + $0xb0] ss:$8 sps:$4 sm:$0xff]   ;;  %v5567_v8 = vld [vmem:[#allocation17 + $0xa4] ss:$8 sps:$4 sm:$0xff]  }
 0x79e   :  { %3913 = vmatpush2.bf16.msra.mxu0 %v5514_v9  ;;  %3954 = vmatpush2.bf16.msra.mxu1 %v5517_v10  ;;  %v5565_v9 = vld [vmem:[#allocation17 + $0xa0] ss:$8 sps:$4 sm:$0xff]   ;;  %v5570_v10 = vld [vmem:[#allocation17 + $0x94] ss:$8 sps:$4 sm:$0xff]  }
 0x79f   :  { %3914 = vmatprep.subr.bf16.mxu0 %v5522_v11  ;;  %3955 = vmatprep.subr.bf16.mxu1 %v5525_v38  ;;  %v5568_v11 = vld [vmem:[#allocation17 + $0x90] ss:$8 sps:$4 sm:$0xff]   ;;  %v5573_v38 = vld [vmem:[#allocation17 + $0x84] ss:$8 sps:$4 sm:$0xff]  }
 0x7a2   :  { %3915 = vmatpush2.bf16.msra.mxu0 %v5520_v12  ;;  %3956 = vmatpush2.bf16.msra.mxu1 %v5523_v13  ;;  %v5571_v12 = vld [vmem:[#allocation17 + $0x80] ss:$8 sps:$4 sm:$0xff]  }
 0x7a3   :  { %4176 = vmatprep.subr.bf16.mxu0 %v5528_v14  ;;  %v3552_v13 = vld [vmem:[%s6178_s21] sm:$0x3] }
 0x7a4   :  { %v3557_v14 = vrot.slane %v3552_v13, %v6030_v39  ;;  %v3561_v15 = vrot.slane %v3552_v13, %v6036_v41 }
 0x825   :  { %v3428_v20 = vpop.f32.mrf.mxu0  ;;  %v3469_v21 = vpop.f32.mrf.mxu1 }
 0x826   :  { %v3429_v22 = vadd.f32 %v3428_v20, %v3057_v16  ;;  %v3470_v23 = vadd.f32 %v3469_v21, %v3065_v17 }
 0x827   :  { %v3430_v24 = vpop.f32.mrf.mxu0  ;;  %v3471_v27 = vpop.f32.mrf.mxu1 }
 0x828   :  { %v3476_v28 = vmul.f32 0.2, %v3429_v22  ;;  %v3478_v29 = vmul.f32 0.2, %v3470_v23  ;;  %v3431_v30 = vadd.f32 %v3430_v24, %v3061_v18  ;;  %v3472_v31 = vadd.f32 %v3471_v27, %v3069_v19 }
 0x829   :  { %v3432_v32 = vpop.f32.mrf.mxu0  ;;  %v3473_v33 = vpop.f32.mrf.mxu1 }
 0x82a   :  { %v3477_v34 = vmul.f32 0.2, %v3431_v30  ;;  %v3479_v35 = vmul.f32 0.2, %v3472_v31  ;;  %v3480_v36 = vmax.f32 %v3429_v22, %v3476_v28  ;;  %v3482_v59 = vmax.f32 %v3470_v23, %v3478_v29 }
 0x82b   :  { %v3433_v37 = vpop.f32.mrf.mxu0  ;;  %v3474_v40 = vpop.f32.mrf.mxu1 }
 0x82c   :  { %v3481_v42 = vmax.f32 %v3431_v30, %v3477_v34  ;;  %v3483_v61 = vmax.f32 %v3472_v31, %v3479_v35  ;;  %v3484_v44 = vpack.c.bf16 %v3480_v36, %v3480_v36  ;;  %v3486_v45 = vpack.c.bf16 %v3482_v59, %v3482_v59  ;;  %v4004_v36 = vld [vmem:[%s6180_s23] sm:$0x3] }
 0x82d   :  { %v4009_v59 = vrot.slane %v4004_v36, %v6030_v39  ;;  %v4013_v37 = vrot.slane %v4004_v36, %v6036_v41 }
 0x82e   :  { %v3485_v43 = vpack.c.bf16 %v3481_v42, %v3481_v42  ;;  %v3487_v25 = vpack.c.bf16 %v3483_v61, %v3483_v61 }
 0x830   :  { %3916 = vmatprep.mubr.bf16.mxu0 %v3485_v43  ;;  %3957 = vmatprep.mubr.bf16.mxu1 %v3487_v25 }
 0x831   :  { %3917 = vmatmul.mubr.bf16.vlgmr.msra.gmra.mxu0 %v3484_v44  ;;  %3958 = vmatmul.mubr.bf16.vlgmr.msra.gmra.mxu1 %v3486_v45 }
 0x832   :  { %4177 = vmatpush1.bf16.msra.mxu0 %v5526_v26 }
 0x833   :  { %4178 = vmatprep.subr.bf16.mxu0 %v5531_v46 }
 0x836   :  { %4179 = vmatpush1.bf16.msra.mxu0 %v5529_v47 }
 0x837   :  { %4180 = vmatprep.subr.bf16.mxu0 %v5534_v48 }
 0x83a   :  { %4181 = vmatpush1.bf16.msra.mxu0 %v5532_v49 }
 0x83b   :  { %4182 = vmatprep.subr.bf16.mxu0 %v5537_v50 }
 0x83e   :  { %4183 = vmatpush1.bf16.msra.mxu0 %v5535_v51 }
 0x83f   :  { %4184 = vmatprep.subr.bf16.mxu0 %v5540_v52 }
 0x842   :  { %4185 = vmatpush1.bf16.msra.mxu0 %v5538_v53 }
 0x843   :  { %4186 = vmatprep.subr.bf16.mxu0 %v5543_v54 }
 0x846   :  { %4187 = vmatpush1.bf16.msra.mxu0 %v5541_v55 }
 0x847   :  { %4188 = vmatprep.subr.bf16.mxu0 %v5546_v56 }
 0x84a   :  { %4189 = vmatpush1.bf16.msra.mxu0 %v5544_v57 }
 0x84b   :  { %4190 = vmatprep.subr.bf16.mxu0 %v5549_v58 }
 0x84e   :  { %4191 = vmatpush1.bf16.msra.mxu0 %v5547_v60 }
 0x84f   :  { %4192 = vmatprep.subr.bf16.mxu0 %v5552_v62 }
 0x852   :  { %4193 = vmatpush2.bf16.msra.mxu0 %v5550_v63 }
 0x853   :  { %4194 = vmatprep.subr.bf16.mxu0 %v5555_v0 }
 0x856   :  { %4195 = vmatpush2.bf16.msra.mxu0 %v5553_v1 }
 0x857   :  { %4196 = vmatprep.subr.bf16.mxu0 %v5558_v2 }
 0x85a   :  { %4197 = vmatpush2.bf16.msra.mxu0 %v5556_v3 }
 0x85b   :  { %4198 = vmatprep.subr.bf16.mxu0 %v5561_v4 }
 0x85e   :  { %4199 = vmatpush2.bf16.msra.mxu0 %v5559_v5 }
 0x85f   :  { %4200 = vmatprep.subr.bf16.mxu0 %v5564_v6 }
 0x862   :  { %4201 = vmatpush2.bf16.msra.mxu0 %v5562_v7 }
 0x863   :  { %4202 = vmatprep.subr.bf16.mxu0 %v5567_v8 }
 0x866   :  { %4203 = vmatpush2.bf16.msra.mxu0 %v5565_v9 }
 0x867   :  { %4204 = vmatprep.subr.bf16.mxu0 %v5570_v10 }
 0x86a   :  { %4205 = vmatpush2.bf16.msra.mxu0 %v5568_v11 }
 0x86b   :  { %4206 = vmatprep.subr.bf16.mxu0 %v5573_v38 }
 0x86e   :  { %4207 = vmatpush2.bf16.msra.mxu0 %v5571_v12 }
 0x8f1   :  { %v3918_v16 = vpop.f32.mrf.mxu0  ;;  %v3959_v17 = vpop.f32.mrf.mxu1 }
 0x8f2   :  { %v3919_v18 = vadd.f32 %v3918_v16, %v3557_v14 }
 0x8f3   :  { %v3920_v19 = vpop.f32.mrf.mxu0  ;;  %v3961_v20 = vpop.f32.mrf.mxu1 }
 0x8f4   :  { %v3960_v21 = vadd.f32 %v3959_v17, %v3919_v18  ;;  %v3921_v22 = vadd.f32 %v3920_v19, %v3561_v15 }
 0x8f5   :  { %v3922_v23 = vpop.f32.mrf.mxu0  ;;  %v3963_v24 = vpop.f32.mrf.mxu1 }
 0x8f6   :  { %v3966_v27 = vmul.f32 0.2, %v3960_v21  ;;  %v3962_v28 = vadd.f32 %v3961_v20, %v3921_v22 }
 0x8f7   :  { %v3923_v29 = vpop.f32.mrf.mxu0  ;;  %v3964_v30 = vpop.f32.mrf.mxu1 }
 0x8f8   :  { %v3967_v31 = vmul.f32 0.2, %v3962_v28  ;;  %v3968_v32 = vmax.f32 %v3960_v21, %v3966_v27 }
 0x8fa   :  { %v3969_v33 = vmax.f32 %v3962_v28, %v3967_v31  ;;  %v3970_v35 = vpack.c.bf16 %v3968_v32, %v3968_v32 }
 0x8fc   :  { %v3971_v34 = vpack.c.bf16 %v3969_v33, %v3969_v33 }
 0x8fe   :  { %4208 = vmatprep.mubr.bf16.mxu0 %v3971_v34 }
 0x8ff   :  { %4209 = vmatmul.mubr.bf16.vlgmr.msra.gmra.mxu0 %v3970_v35 }
 0x9bf   :  { %v4210_v40 = vpop.f32.mrf.mxu0 }
 0x9c0   :  { %v4211_v42 = vadd.f32 %v4210_v40, %v4009_v59 }
 0x9c1   :  { %v4212_v61 = vpop.f32.mrf.mxu0 }
 0x9c2   :  { %4217 = vst [vmem:[#allocation19] sm:$0xff] %v4211_v42  ;;  %v4213_v43 = vadd.f32 %v4212_v61, %v4013_v37 }
 0x9c3   :  { %v4214_v25 = vpop.f32.mrf.mxu0 }
 0x9c4   :  { %4218 = vst [vmem:[#allocation19 + $0x8] sm:$0xff] %v4213_v43 }
 0x9c5   :  { %v4215_v26 = vpop.f32.mrf.mxu0 }
 0x9c6   :  { %5785 = shalt.err (!%p5782_p12)
}
 0x9c7   :  { %4228 = dma.vmem_to_hbm [thread:$0]  %s4226_s22, 256, %s6181_s24, [#allocation4]  }
 0x9c8   :  { %5806 = dma.done.wait [#allocation4], 256  }
 0x9c9   :  { %5807 = vsyncadd [#allocation4], 4294967040 }
 0x9ca   :  { %4236 = vsyncpa [#allocation3], 1 }
 0x9cb   :  { %4237 = vsyncpa [#allocation6], 1 }
 0x9cc   :  { %4238 = vsyncpa [#allocation9], 1 }
 0x9cd   :  { %4239 = vsyncpa [#allocation12], 1 }
 0x9ce   :  { %4240 = vsyncpa [#allocation15], 1 }
 0x9cf   :  { %4241 = vsyncpa [#allocation18], 1 }
 0x9d0   :  { %4242 = vsyncpa [#allocation4], 1 }

// kernel: _vae_forward.1
= control target key start
LH: loop header
LB: loop body
LE: loop exit
PB: predicated region body
PF: predicated region fallthrough
CT: control target
= control target key end

     0   :  { %s6157_s0 = inlined_call_operand.vmem [shape: bf16[8,256], index: 0, kind: input, shape index: {}]   ;;  %s6158_s1 = inlined_call_operand.vmem [shape: f32[8,128], index: 1, kind: input, shape index: {}]   ;;  %s6159_s2 = inlined_call_operand.hbm [shape: bf16[256,256], index: 2, kind: input, shape index: {}]   ;;  %s6160_s3 = inlined_call_operand.vmem [shape: f32[1,256], index: 3, kind: input, shape index: {}]   ;;  %s6161_s4 = inlined_call_operand.hbm [shape: bf16[256,512], index: 4, kind: input, shape index: {}]   ;;  %s6162_s5 = inlined_call_operand.vmem [shape: f32[1,512], index: 5, kind: input, shape index: {}]   ;;  %s6163_s6 = inlined_call_operand.hbm [shape: bf16[512,512], index: 6, kind: input, shape index: {}]   ;;  %s6164_s7 = inlined_call_operand.vmem [shape: f32[1,512], index: 7, kind: input, shape index: {}]   ;;  %s6165_s8 = inlined_call_operand.hbm [shape: bf16[512,256], index: 8, kind: input, shape index: {}]   ;;  %s6166_s9 = inlined_call_operand.vmem [shape: f32[1,256], index: 9, kind: input, shape index: {}]   ;;  %s6167_s10 = inlined_call_operand.hbm [shape: bf16[256,128], index: 10, kind: input, shape index: {}]   ;;  %s6168_s11 = inlined_call_operand.vmem [shape: f32[1,128], index: 11, kind: input, shape index: {}]   ;;  %s6169_s12 = inlined_call_operand.vmem [shape: bf16[128,128], index: 12, kind: input, shape index: {}]   ;;  %s6170_s13 = inlined_call_operand.vmem [shape: f32[1,128], index: 13, kind: input, shape index: {}]   ;;  %s6171_s14 = inlined_call_operand.hbm [shape: bf16[128,128], index: 14, kind: input, shape index: {}]   ;;  %s6172_s15 = inlined_call_operand.vmem [shape: f32[1,128], index: 15, kind: input, shape index: {}]   ;;  %s6173_s16 = inlined_call_operand.hbm [shape: bf16[128,256], index: 16, kind: input, shape index: {}]   ;;  %s6174_s17 = inlined_call_operand.vmem [shape: f32[1,256], index: 17, kind: input, shape index: {}]   ;;  %s6175_s18 = inlined_call_operand.hbm [shape: bf16[256,512], index: 18, kind: input, shape index: {}]   ;;  %s6176_s19 = inlined_call_operand.vmem [shape: f32[1,512], index: 19, kind: input, shape index: {}]   ;;  %s6177_s20 = inlined_call_operand.hbm [shape: bf16[512,256], index: 20, kind: input, shape index: {}]   ;;  %s6178_s21 = inlined_call_operand.vmem [shape: f32[1,256], index: 21, kind: input, shape index: {}]   ;;  %s6179_s22 = inlined_call_operand.hbm [shape: bf16[256,256], index: 22, kind: input, shape index: {}]   ;;  %s6180_s23 = inlined_call_operand.vmem [shape: f32[1,256], index: 23, kind: input, shape index: {}]   ;;  %s6181_s24 = inlined_call_operand.hbm [shape: f32[8,256], index: 24, kind: output, shape index: {0}]   ;;  %s6182_s25 = inlined_call_operand.vmem [shape: f32[8,128], index: 25, kind: output, shape index: {1}]  }
   0x1   :  { %6189 = sst [smem:[#allocation27_spill]] %s6157_s0 }
   0x2   :  { %6190 = sst [smem:[#allocation28_spill]] %s6158_s1 }
   0x3   :  { %6191 = sst [smem:[#allocation29_spill]] %s6159_s2 }
   0x4   :  { %6192 = sst [smem:[#allocation30_spill]] %s6160_s3 }
   0x5   :  { %6193 = sst [smem:[#allocation31_spill]] %s6161_s4 }
   0x6   :  { %6194 = sst [smem:[#allocation32_spill]] %s6162_s5 }
   0x7   :  { %6195 = sst [smem:[#allocation33_spill]] %s6163_s6 }
   0x8   :  { %6196 = sst [smem:[#allocation34_spill]] %s6164_s7 }
   0x9   :  { %6197 = sst [smem:[#allocation35_spill]] %s6165_s8 }
   0xa   :  { %6198 = sst [smem:[#allocation36_spill]] %s6166_s9 }
   0xb   :  { %31 = vsyncpa [#allocation3], 0 }
   0xc   :  { %32 = vsyncpa [#allocation6], 0 }
   0xd   :  { %33 = vsyncpa [#allocation9], 0 }
   0xe   :  { %34 = vsyncpa [#allocation12], 0 }
   0xf   :  { %35 = vsyncpa [#allocation15], 0 }
  0x10   :  { %36 = vsyncpa [#allocation18], 0 }
  0x11   :  { %37 = vsyncpa [#allocation4], 0  ;;  %s5808_s29 = smov [#allocation5]  }
  0x12   :  { %s61_s2 = sshll.u32 %s5808_s29, 4  ;;  %s62_s2 = int_to_ptr.vmem [resolvable:$true] %s61_s2 }
  0x13   :  { %s5582_s6 = scalar_lea.vmem %s62_s2, 8192  ;;  %p5587_p1 = scmp.lt.s32.totalorder %s62_s2, %s62_s2 }
  0x14   :  { %p5583_p0 = scmp.ne.s32.totalorder %s62_s2, %s5582_s6  ;;  %p5588_p2 = scmp.lt.s32.totalorder %s5582_s6, %s5582_s6 }
  0x16   :  { %p5589_p3 = por %p5588_p2, %p5587_p1 }
  0x18   :  { %p5590_p4 = pnand %p5589_p3, %p5583_p0 }
  0x1a   :  { %5593 = shalt.err (!%p5590_p4)
}
  0x1b   :  { %s5809_s30 = smov 256   ;;  %s5810_s7 = smov 16  }
  0x1c   :  { %s6199_s1 = sld [smem:[#allocation31_spill]]  ;;  %s5811_s8 = smov [#allocation8]  }
  0x1d   :  { %s89_s27 = sshll.u32 %s5811_s8, 4  ;;  %s90_s27 = int_to_ptr.vmem [resolvable:$true] %s89_s27 }
  0x1e   :  { %s5602_s4 = scalar_lea.vmem %s90_s27, 8192  ;;  %p5607_p6 = scmp.lt.s32.totalorder %s90_s27, %s90_s27 }
  0x1f   :  { %p5603_p5 = scmp.ne.s32.totalorder %s90_s27, %s5602_s4  ;;  %p5608_p7 = scmp.lt.s32.totalorder %s5602_s4, %s5602_s4 }
  0x21   :  { %p5609_p8 = por %p5608_p7, %p5607_p6 }
  0x22   :  { %67 = dma.hbm_to_vmem [thread:$0]  %s6199_s1, 8192, %s62_s2, [#allocation6], %s5809_s30, %s5809_s30, %s5810_s7  }
  0x23   :  { %p5610_p9 = pnand %p5609_p8, %p5603_p5 }
  0x25   :  { %5613 = shalt.err (!%p5610_p9)
}
  0x26   :  { %s6183_s28 = smov 128   ;;  %s6185_s9 = smov 8  }
  0x27   :  { %s6200_s29 = sld [smem:[#allocation35_spill]]  ;;  %s5814_s2 = smov [#allocation11]  }
  0x28   :  { %s121_s6 = sshll.u32 %s5814_s2, 4  ;;  %s5815_s3 = smov [#allocation14]   ;;  %s122_s6 = int_to_ptr.vmem [resolvable:$true] %s121_s6 }
  0x29   :  { %s149_s26 = sshll.u32 %s5815_s3, 4  ;;  %s5622_s1 = scalar_lea.vmem %s122_s6, 1024  ;;  %s150_s26 = int_to_ptr.vmem [resolvable:$true] %s149_s26 }
  0x2a   :  { %p5623_p10 = scmp.ne.s32.totalorder %s122_s6, %s5622_s1  ;;  %p5627_p11 = scmp.lt.s32.totalorder %s122_s6, %s122_s6 }
  0x2b   :  { %p5628_p12 = scmp.lt.s32.totalorder %s5622_s1, %s5622_s1 }
  0x2d   :  { %95 = dma.hbm_to_vmem [thread:$0]  %s6200_s29, 8192, %s90_s27, [#allocation9], %s6183_s28, %s6183_s28, %s6185_s9  }
  0x2e   :  { %p5629_p13 = por %p5628_p12, %p5627_p11 }
  0x30   :  { %p5630_p0 = pnand %p5629_p13, %p5623_p10 }
  0x32   :  { %5633 = shalt.err (!%p5630_p0)
}
  0x33   :  { %s6187_s8 = smov 64   ;;  %s6188_s4 = smov 4  }
  0x34   :  { %127 = dma.hbm_to_vmem [thread:$0]  %s6171_s14, 1024, %s122_s6, [#allocation12], %s6187_s8, %s6187_s8, %s6188_s4  }
  0x35   :  { %s5642_s0 = scalar_lea.vmem %s150_s26, 8192  ;;  %p5647_p2 = scmp.lt.s32.totalorder %s150_s26, %s150_s26 }
  0x36   :  { %p5643_p1 = scmp.ne.s32.totalorder %s150_s26, %s5642_s0  ;;  %p5648_p3 = scmp.lt.s32.totalorder %s5642_s0, %s5642_s0 }
  0x38   :  { %p5649_p4 = por %p5648_p3, %p5647_p2 }
  0x3a   :  { %p5650_p5 = pnand %p5649_p4, %p5643_p1 }
  0x3c   :  { %5653 = shalt.err (!%p5650_p5)
}
  0x3d   :  { %155 = dma.hbm_to_vmem [thread:$0]  %s6175_s18, 8192, %s150_s26, [#allocation15], %s5809_s30, %s5809_s30, %s5810_s7  }
  0x3e   :  { %s5818_s3 = smov [#allocation2]   ;;  %s5819_s28 = smov [#allocation7]  }
  0x3f   :  { %s47_s1 = sshll.u32 %s5818_s3, 4  ;;  %s75_s9 = sshll.u32 %s5819_s28, 4  ;;  %s48_s1 = int_to_ptr.vmem [resolvable:$true] %s47_s1  ;;  %s76_s9 = int_to_ptr.vmem [resolvable:$true] %s75_s9 }
  0x40   :  { %s5662_s14 = scalar_lea.vmem %s48_s1, 4096  ;;  %p5667_p7 = scmp.lt.s32.totalorder %s48_s1, %s48_s1 }
  0x41   :  { %p5663_p6 = scmp.ne.s32.totalorder %s48_s1, %s5662_s14  ;;  %p5668_p8 = scmp.lt.s32.totalorder %s5662_s14, %s5662_s14 }
  0x43   :  { %p5669_p9 = por %p5668_p8, %p5667_p7 }
  0x45   :  { %p5670_p10 = pnand %p5669_p9, %p5663_p6 }
  0x47   :  { %5673 = shalt.err (!%p5670_p10)
}
  0x48   :  { %s6201_s6 = smov 8   ;;  %s6202_s5 = smov 128  }
  0x49   :  { %s6203_s29 = sld [smem:[#allocation29_spill]]  ;;  %s5682_s18 = scalar_lea.vmem %s76_s9, 16384 }
  0x4a   :  { %p5683_p11 = scmp.ne.s32.totalorder %s76_s9, %s5682_s18  ;;  %p5687_p12 = scmp.lt.s32.totalorder %s76_s9, %s76_s9 }
  0x4b   :  { %p5688_p13 = scmp.lt.s32.totalorder %s5682_s18, %s5682_s18 }
  0x4d   :  { %p5689_p0 = por %p5688_p13, %p5687_p12 }
  0x4f   :  { %53 = dma.hbm_to_vmem [thread:$0]  %s6203_s29, 4096, %s48_s1, [#allocation3], %s6202_s5, %s6202_s5, %s6201_s6  }
  0x50   :  { %p5690_p1 = pnand %p5689_p0, %p5683_p11 }
  0x52   :  { %5693 = shalt.err (!%p5690_p1)
}
  0x53   :  { %s6204_s2 = sld [smem:[#allocation33_spill]]  ;;  %s5820_s3 = smov [#allocation10]  }
  0x54   :  { %s103_s14 = sshll.u32 %s5820_s3, 4  ;;  %s5821_s8 = smov [#allocation13]   ;;  %s104_s14 = int_to_ptr.vmem [resolvable:$true] %s103_s14 }
  0x55   :  { %s135_s4 = sshll.u32 %s5821_s8, 4  ;;  %s5702_s1 = scalar_lea.vmem %s104_s14, 2048  ;;  %s136_s4 = int_to_ptr.vmem [resolvable:$true] %s135_s4 }
  0x56   :  { %p5703_p2 = scmp.ne.s32.totalorder %s104_s14, %s5702_s1  ;;  %p5707_p3 = scmp.lt.s32.totalorder %s104_s14, %s104_s14 }
  0x57   :  { %p5708_p4 = scmp.lt.s32.totalorder %s5702_s1, %s5702_s1 }
  0x59   :  { %81 = dma.hbm_to_vmem [thread:$0]  %s6204_s2, 16384, %s76_s9, [#allocation6], %s5809_s30, %s5809_s30, %s5810_s7  }
  0x5a   :  { %p5709_p5 = por %p5708_p4, %p5707_p3 }
  0x5c   :  { %p5710_p6 = pnand %p5709_p5, %p5703_p2 }
  0x5e   :  { %5713 = shalt.err (!%p5710_p6)
}
  0x5f   :  { %s6205_s27 = smov 4   ;;  %s6206_s0 = smov 64  }
  0x60   :  { %109 = dma.hbm_to_vmem [thread:$0]  %s6167_s10, 2048, %s104_s14, [#allocation9], %s6206_s0, %s6206_s0, %s6205_s27  }
  0x61   :  { %s5722_s30 = scalar_lea.vmem %s136_s4, 2048  ;;  %p5727_p8 = scmp.lt.s32.totalorder %s136_s4, %s136_s4 }
  0x62   :  { %p5723_p7 = scmp.ne.s32.totalorder %s136_s4, %s5722_s30  ;;  %p5728_p9 = scmp.lt.s32.totalorder %s5722_s30, %s5722_s30 }
  0x64   :  { %p5729_p10 = por %p5728_p9, %p5727_p8 }
  0x66   :  { %p5730_p11 = pnand %p5729_p10, %p5723_p7 }
  0x68   :  { %5733 = shalt.err (!%p5730_p11)
}
  0x69   :  { %141 = dma.hbm_to_vmem [thread:$0]  %s6173_s16, 2048, %s136_s4, [#allocation12], %s6202_s5, %s6202_s5, %s6201_s6  }
  0x6a   :  { %s5822_s8 = smov [#allocation16]   ;;  %s5823_s26 = smov [#allocation17]  }
  0x6b   :  { %s163_s28 = sshll.u32 %s5822_s8, 4  ;;  %s177_s2 = sshll.u32 %s5823_s26, 4  ;;  %s164_s28 = int_to_ptr.vmem [resolvable:$true] %s163_s28  ;;  %s178_s2 = int_to_ptr.vmem [resolvable:$true] %s177_s2 }
  0x6c   :  { %s5742_s10 = scalar_lea.vmem %s164_s28, 8192  ;;  %p5747_p13 = scmp.lt.s32.totalorder %s164_s28, %s164_s28 }
  0x6d   :  { %p5743_p12 = scmp.ne.s32.totalorder %s164_s28, %s5742_s10  ;;  %p5748_p0 = scmp.lt.s32.totalorder %s5742_s10, %s5742_s10 }
  0x6f   :  { %p5749_p1 = por %p5748_p0, %p5747_p13 }
  0x71   :  { %p5750_p2 = pnand %p5749_p1, %p5743_p12 }
  0x73   :  { %5753 = shalt.err (!%p5750_p2)
}
  0x74   :  { %169 = dma.hbm_to_vmem [thread:$0]  %s6177_s20, 8192, %s164_s28, [#allocation15], %s6202_s5, %s6202_s5, %s6201_s6  }
  0x75   :  { %s5762_s16 = scalar_lea.vmem %s178_s2, 4096  ;;  %p5767_p4 = scmp.lt.s32.totalorder %s178_s2, %s178_s2 }
  0x76   :  { %p5763_p3 = scmp.ne.s32.totalorder %s178_s2, %s5762_s16  ;;  %p5768_p5 = scmp.lt.s32.totalorder %s5762_s16, %s5762_s16 }
  0x78   :  { %p5769_p6 = por %p5768_p5, %p5767_p4 }
  0x7a   :  { %p5770_p7 = pnand %p5769_p6, %p5763_p3 }
  0x7c   :  { %5773 = shalt.err (!%p5770_p7)
}
  0x7d   :  { %183 = dma.hbm_to_vmem [thread:$0]  %s6179_s22, 4096, %s178_s2, [#allocation18], %s6202_s5, %s6202_s5, %s6201_s6  }
  0x7e   :  { %5794 = dma.done.wait [#allocation3], 4096  }
  0x7f   :  { %5795 = vsyncadd [#allocation3], 4294963200 }
  0x80   :  { %5796 = dma.done.wait [#allocation6], 24576  }
  0x81   :  { %5797 = vsyncadd [#allocation6], 4294942720 }
  0x82   :  { %5798 = dma.done.wait [#allocation9], 10240  }
  0x83   :  { %5799 = vsyncadd [#allocation9], 4294957056 }
  0x84   :  { %5800 = dma.done.wait [#allocation12], 3072  }
  0x85   :  { %5801 = vsyncadd [#allocation12], 4294964224 }
  0x86   :  { %5802 = dma.done.wait [#allocation15], 16384  }
  0x87   :  { %5803 = vsyncadd [#allocation15], 4294950912 }
  0x88   :  { %5804 = dma.done.wait [#allocation18], 4096  }
  0x89   :  { %5805 = vsyncadd [#allocation18], 4294963200  ;;  %v4844_v0 = vld [vmem:[#allocation2 + $0x74] ss:$8 sps:$4 sm:$0xff]   ;;  %v4846_v1 = vld [vmem:[#allocation2 + $0x70] ss:$8 sps:$4 sm:$0xff]  }
  0x8a   :  { %429 = vmatprep.subr.bf16.mxu0 %v4844_v0  ;;  %v4847_v2 = vld [vmem:[#allocation2 + $0x64] ss:$8 sps:$4 sm:$0xff]   ;;  %v4849_v3 = vld [vmem:[#allocation2 + $0x60] ss:$8 sps:$4 sm:$0xff]   ;;  %v4850_v4 = vld [vmem:[#allocation2 + $0x54] ss:$8 sps:$4 sm:$0xff]  }
  0x8b   :  { %430 = vmatpush1.bf16.msra.mxu0 %v4846_v1  ;;  %v4852_v5 = vld [vmem:[#allocation2 + $0x50] ss:$8 sps:$4 sm:$0xff]   ;;  %v4853_v6 = vld [vmem:[#allocation2 + $0x44] ss:$8 sps:$4 sm:$0xff]   ;;  %v4855_v7 = vld [vmem:[#allocation2 + $0x40] ss:$8 sps:$4 sm:$0xff]  }
  0x8c   :  { %431 = vmatprep.subr.bf16.mxu0 %v4847_v2  ;;  %v4856_v8 = vld [vmem:[#allocation2 + $0x34] ss:$8 sps:$4 sm:$0xff]   ;;  %v4858_v9 = vld [vmem:[#allocation2 + $0x30] ss:$8 sps:$4 sm:$0xff]   ;;  %v4859_v10 = vld [vmem:[#allocation2 + $0x24] ss:$8 sps:$4 sm:$0xff]  }
  0x8d   :  { %v4861_v11 = vld [vmem:[#allocation2 + $0x20] ss:$8 sps:$4 sm:$0xff]   ;;  %v4862_v12 = vld [vmem:[#allocation2 + $0x14] ss:$8 sps:$4 sm:$0xff]   ;;  %s6207_s6 = sld [smem:[#allocation27_spill]]  ;;  %vm5825_vm0 = vmmov 0  }
  0x8e   :  { %v4894_v15 = vld [vmem:[#allocation5 + $0xe4] ss:$16 sps:$4 sm:$0xff]   ;;  %v4864_v16 = vld [vmem:[#allocation2 + $0x10] ss:$8 sps:$4 sm:$0xff]   ;;  %v4867_v20 = vld [vmem:[#allocation2] ss:$8 sps:$4 sm:$0xff]  }
  0x8f   :  { %432 = vmatpush1.bf16.msra.mxu0 %v4849_v3  ;;  %v4865_v17 = vld [vmem:[#allocation2 + $0x4] ss:$8 sps:$4 sm:$0xff]   ;;  %v4899_v18 = vld [vmem:[#allocation5 + $0xe0] ss:$16 sps:$4 sm:$0xff]   ;;  %882 = vmatprep.subr.bf16.mxu1 %v4894_v15  ;;  %v4868_v23 = vld [vmem:[#allocation2 + $0xf4] ss:$8 sps:$4 sm:$0xff]  }
  0x90   :  { %433 = vmatprep.subr.bf16.mxu0 %v4850_v4  ;;  %v4900_v19 = vld [vmem:[#allocation5 + $0xc4] ss:$16 sps:$4 sm:$0xff]   ;;  %883 = vmatpush1.bf16.msra.mxu1 %v4899_v18  ;;  %v4905_v21 = vld [vmem:[#allocation5 + $0xc0] ss:$16 sps:$4 sm:$0xff]   ;;  %v4898_v55 = vld [vmem:[#allocation5 + $0xec] ss:$16 sps:$4 sm:$0xff]  }
  0x91   :  { %884 = vmatprep.subr.bf16.mxu1 %v4900_v19  ;;  %v4906_v22 = vld [vmem:[#allocation5 + $0xa4] ss:$16 sps:$4 sm:$0xff]   ;;  %v4911_v24 = vld [vmem:[#allocation5 + $0xa0] ss:$16 sps:$4 sm:$0xff]   ;;  %v4896_v57 = vld [vmem:[#allocation5 + $0xe8] ss:$16 sps:$4 sm:$0xff]  }
  0x92   :  { %v4870_v25 = vld [vmem:[#allocation2 + $0xf0] ss:$8 sps:$4 sm:$0xff]   ;;  %v4912_v26 = vld [vmem:[#allocation5 + $0x84] ss:$16 sps:$4 sm:$0xff]   ;;  %v4873_v28 = vld [vmem:[#allocation2 + $0xe0] ss:$8 sps:$4 sm:$0xff]  }
  0x93   :  { %434 = vmatpush1.bf16.msra.mxu0 %v4852_v5  ;;  %v6021_v13 = vld [vmem:[%s6207_s6] sm:$0xff]  ;;  %v4874_v31 = vld [vmem:[#allocation2 + $0xd4] ss:$8 sps:$4 sm:$0xff]   ;;  %v4876_v33 = vld [vmem:[#allocation2 + $0xd0] ss:$8 sps:$4 sm:$0xff]   ;;  %s6208_s0 = sld [smem:[#allocation30_spill]] }
  0x94   :  { %435 = vmatprep.subr.bf16.mxu0 %v4853_v6  ;;  %v4244_v14 = vcombine.high %v6021_v13, %v6021_v13  ;;  %885 = vmatpush1.bf16.msra.mxu1 %v4905_v21  ;;  %v4871_v27 = vld [vmem:[#allocation2 + $0xe4] ss:$8 sps:$4 sm:$0xff]   ;;  %v4917_v29 = vld [vmem:[#allocation5 + $0x80] ss:$16 sps:$4 sm:$0xff]   ;;  %v4880_v39 = vld [vmem:[#allocation2 + $0xb4] ss:$8 sps:$4 sm:$0xff]   ;;  %v4243_v59 = vcombine.low %v6021_v13, %v6021_v13 }
  0x95   :  { %886 = vmatprep.subr.bf16.mxu1 %v4906_v22  ;;  %v4918_v30 = vld [vmem:[#allocation5 + $0x64] ss:$16 sps:$4 sm:$0xff]   ;;  %v4923_v32 = vld [vmem:[#allocation5 + $0x60] ss:$16 sps:$4 sm:$0xff]   ;;  %v4904_v60 = vld [vmem:[#allocation5 + $0xcc] ss:$16 sps:$4 sm:$0xff]  }
  0x96   :  { %461 = vmatprep.mubr.bf16.mxu0 %v4244_v14  ;;  %v4924_v34 = vld [vmem:[#allocation5 + $0x44] ss:$16 sps:$4 sm:$0xff]   ;;  %v4879_v36 = vld [vmem:[#allocation2 + $0xc0] ss:$8 sps:$4 sm:$0xff]   ;;  %v4882_v41 = vld [vmem:[#allocation2 + $0xb0] ss:$8 sps:$4 sm:$0xff]  }
  0x97   :  { %436 = vmatpush1.bf16.msra.mxu0 %v4855_v7  ;;  %v4877_v35 = vld [vmem:[#allocation2 + $0xc4] ss:$8 sps:$4 sm:$0xff]   ;;  %v4929_v37 = vld [vmem:[#allocation5 + $0x40] ss:$16 sps:$4 sm:$0xff]   ;;  %v4886_v47 = vld [vmem:[#allocation2 + $0x94] ss:$8 sps:$4 sm:$0xff]  }
  0x98   :  { %437 = vmatprep.subr.bf16.mxu0 %v4856_v8  ;;  %887 = vmatpush1.bf16.msra.mxu1 %v4911_v24  ;;  %v4930_v38 = vld [vmem:[#allocation5 + $0x24] ss:$16 sps:$4 sm:$0xff]   ;;  %v4935_v40 = vld [vmem:[#allocation5 + $0x20] ss:$16 sps:$4 sm:$0xff]   ;;  %v4902_v62 = vld [vmem:[#allocation5 + $0xc8] ss:$16 sps:$4 sm:$0xff]  }
  0x99   :  { %888 = vmatprep.subr.bf16.mxu1 %v4912_v26  ;;  %v4936_v42 = vld [vmem:[#allocation5 + $0x4] ss:$16 sps:$4 sm:$0xff]   ;;  %v4885_v44 = vld [vmem:[#allocation2 + $0xa0] ss:$8 sps:$4 sm:$0xff]   ;;  %v4888_v49 = vld [vmem:[#allocation2 + $0x90] ss:$8 sps:$4 sm:$0xff]  }
  0x9a   :  { %v4883_v43 = vld [vmem:[#allocation2 + $0xa4] ss:$8 sps:$4 sm:$0xff]   ;;  %v4941_v45 = vld [vmem:[#allocation5] ss:$16 sps:$4 sm:$0xff]   ;;  %v4908_v2 = vld [vmem:[#allocation5 + $0xa8] ss:$16 sps:$4 sm:$0xff]  }
  0x9b   :  { %438 = vmatpush1.bf16.msra.mxu0 %v4858_v9  ;;  %v4942_v46 = vld [vmem:[#allocation5 + $0x1e4] ss:$16 sps:$4 sm:$0xff]   ;;  %v4947_v48 = vld [vmem:[#allocation5 + $0x1e0] ss:$16 sps:$4 sm:$0xff]   ;;  %v4910_v0 = vld [vmem:[#allocation5 + $0xac] ss:$16 sps:$4 sm:$0xff]  }
  0x9c   :  { %439 = vmatprep.subr.bf16.mxu0 %v4859_v10  ;;  %889 = vmatpush1.bf16.msra.mxu1 %v4917_v29  ;;  %v4948_v50 = vld [vmem:[#allocation5 + $0x1c4] ss:$16 sps:$4 sm:$0xff]   ;;  %v4953_v52 = vld [vmem:[#allocation5 + $0x1c0] ss:$16 sps:$4 sm:$0xff]   ;;  %v4916_v3 = vld [vmem:[#allocation5 + $0x8c] ss:$16 sps:$4 sm:$0xff]  }
  0x9d   :  { %890 = vmatprep.subr.bf16.mxu1 %v4918_v30  ;;  %v4889_v51 = vld [vmem:[#allocation2 + $0x84] ss:$8 sps:$4 sm:$0xff]   ;;  %v4891_v53 = vld [vmem:[#allocation2 + $0x80] ss:$8 sps:$4 sm:$0xff]   ;;  %s6209_s30 = sld [smem:[#allocation32_spill]]  ;;  %s5827_s20 = smov [#allocation19]  }
  0x9e   :  { %v4954_v54 = vld [vmem:[#allocation5 + $0x1a4] ss:$16 sps:$4 sm:$0xff]   ;;  %v4959_v56 = vld [vmem:[#allocation5 + $0x1a0] ss:$16 sps:$4 sm:$0xff]   ;;  %v4914_v4 = vld [vmem:[#allocation5 + $0x88] ss:$16 sps:$4 sm:$0xff]  }
  0x9f   :  { %440 = vmatpush1.bf16.msra.mxu0 %v4861_v11  ;;  %v4960_v58 = vld [vmem:[#allocation5 + $0x184] ss:$16 sps:$4 sm:$0xff]   ;;  %v4965_v61 = vld [vmem:[#allocation5 + $0x180] ss:$16 sps:$4 sm:$0xff]   ;;  %v4922_v5 = vld [vmem:[#allocation5 + $0x6c] ss:$16 sps:$4 sm:$0xff]  }
  0xa0   :  { %441 = vmatprep.subr.bf16.mxu0 %v4862_v12  ;;  %891 = vmatpush1.bf16.msra.mxu1 %v4923_v32  ;;  %v4966_v63 = vld [vmem:[#allocation5 + $0x164] ss:$16 sps:$4 sm:$0xff]   ;;  %v4971_v1 = vld [vmem:[#allocation5 + $0x160] ss:$16 sps:$4 sm:$0xff]   ;;  %v4920_v6 = vld [vmem:[#allocation5 + $0x68] ss:$16 sps:$4 sm:$0xff]  }
  0xa1   :  { %892 = vmatprep.subr.bf16.mxu1 %v4924_v34  ;;  %v4928_v7 = vld [vmem:[#allocation5 + $0x4c] ss:$16 sps:$4 sm:$0xff]   ;;  %v4926_v8 = vld [vmem:[#allocation5 + $0x48] ss:$16 sps:$4 sm:$0xff]   ;;  %v4977_v26 = vld [vmem:[#allocation5 + $0x140] ss:$16 sps:$4 sm:$0xff]  }
  0xa2   :  { %v4934_v9 = vld [vmem:[#allocation5 + $0x2c] ss:$16 sps:$4 sm:$0xff]   ;;  %v4932_v10 = vld [vmem:[#allocation5 + $0x28] ss:$16 sps:$4 sm:$0xff]   ;;  %v4983_v30 = vld [vmem:[#allocation5 + $0x120] ss:$16 sps:$4 sm:$0xff]  }
  0xa3   :  { %442 = vmatpush1.bf16.msra.mxu0 %v4864_v16  ;;  %v4940_v11 = vld [vmem:[#allocation5 + $0xc] ss:$16 sps:$4 sm:$0xff]   ;;  %v4938_v12 = vld [vmem:[#allocation5 + $0x8] ss:$16 sps:$4 sm:$0xff]   ;;  %v4989_v34 = vld [vmem:[#allocation5 + $0x100] ss:$16 sps:$4 sm:$0xff]  }
  0xa4   :  { %443 = vmatprep.subr.bf16.mxu0 %v4865_v17  ;;  %893 = vmatpush1.bf16.msra.mxu1 %v4929_v37  ;;  %v4946_v13 = vld [vmem:[#allocation5 + $0x1ec] ss:$16 sps:$4 sm:$0xff]   ;;  %v4944_v14 = vld [vmem:[#allocation5 + $0x1e8] ss:$16 sps:$4 sm:$0xff]   ;;  %v252_v37 = vlaneseq  ;;  %s6210_s8 = sld [smem:[#allocation34_spill]]  ;;  %s4225_s22 = sshll.u32 %s5827_s20, 4  ;;  %s4226_s22 = int_to_ptr.vmem [resolvable:$true] %s4225_s22 }
  0xa5   :  { %894 = vmatprep.subr.bf16.mxu1 %v4930_v38  ;;  %v4952_v15 = vld [vmem:[#allocation5 + $0x1cc] ss:$16 sps:$4 sm:$0xff]   ;;  %v4950_v16 = vld [vmem:[#allocation5 + $0x1c8] ss:$16 sps:$4 sm:$0xff]   ;;  %s6211_s2 = sld [smem:[#allocation36_spill]]  ;;  %s5774_s6 = scalar_lea.vmem %s4226_s22, 256 }
  0xa6   :  { %v4958_v17 = vld [vmem:[#allocation5 + $0x1ac] ss:$16 sps:$4 sm:$0xff]   ;;  %v4956_v18 = vld [vmem:[#allocation5 + $0x1a8] ss:$16 sps:$4 sm:$0xff]   ;;  %v6027_v38 = vshrl.u32 %v252_v37, 7  ;;  %p5775_p8 = scmp.ne.s32.totalorder %s4226_s22, %s5774_s6  ;;  %p5779_p9 = scmp.lt.s32.totalorder %s4226_s22, %s4226_s22 }
  0xa7   :  { %444 = vmatpush1.bf16.msra.mxu0 %v4867_v20  ;;  %v4964_v19 = vld [vmem:[#allocation5 + $0x18c] ss:$16 sps:$4 sm:$0xff]   ;;  %v4962_v20 = vld [vmem:[#allocation5 + $0x188] ss:$16 sps:$4 sm:$0xff]   ;;  %v5059_v37 = vld [vmem:[#allocation7 + $0x380] ss:$16 sps:$4 sm:$0xff]   ;;  %p5780_p10 = scmp.lt.s32.totalorder %s5774_s6, %s5774_s6 }
  0xa8   :  { %445 = vmatprep.subr.bf16.mxu0 %v4868_v23  ;;  %895 = vmatpush1.bf16.msra.mxu1 %v4935_v40  ;;  %v4970_v21 = vld [vmem:[#allocation5 + $0x16c] ss:$16 sps:$4 sm:$0xff]   ;;  %v4968_v22 = vld [vmem:[#allocation5 + $0x168] ss:$16 sps:$4 sm:$0xff]   ;;  %v4972_v23 = vld [vmem:[#allocation5 + $0x144] ss:$16 sps:$4 sm:$0xff]  }
  0xa9   :  { %896 = vmatprep.subr.bf16.mxu1 %v4936_v42  ;;  %v4976_v24 = vld [vmem:[#allocation5 + $0x14c] ss:$16 sps:$4 sm:$0xff]   ;;  %v4980_v29 = vld [vmem:[#allocation5 + $0x128] ss:$16 sps:$4 sm:$0xff]   ;;  %v250_v40 = vld [vmem:[%s6208_s0] sm:$0x3]  ;;  %p5781_p11 = por %p5780_p10, %p5779_p9 }
  0xaa   :  { %v4988_v32 = vld [vmem:[#allocation5 + $0x10c] ss:$16 sps:$4 sm:$0xff]  }
  0xab   :  { %446 = vmatpush2.bf16.msra.mxu0 %v4870_v25  ;;  %v4974_v25 = vld [vmem:[#allocation5 + $0x148] ss:$16 sps:$4 sm:$0xff]   ;;  %p5782_p12 = pnand %p5781_p11, %p5775_p8 }
  0xac   :  { %447 = vmatprep.subr.bf16.mxu0 %v4871_v27  ;;  %897 = vmatpush1.bf16.msra.mxu1 %v4941_v45  ;;  %v4978_v27 = vld [vmem:[#allocation5 + $0x124] ss:$16 sps:$4 sm:$0xff]  }
  0xad   :  { %898 = vmatprep.subr.bf16.mxu1 %v4942_v46 }
  0xaf   :  { %448 = vmatpush2.bf16.msra.mxu0 %v4873_v28  ;;  %v4982_v28 = vld [vmem:[#allocation5 + $0x12c] ss:$16 sps:$4 sm:$0xff]  }
  0xb0   :  { %449 = vmatprep.subr.bf16.mxu0 %v4874_v31  ;;  %899 = vmatpush2.bf16.msra.mxu1 %v4947_v48  ;;  %v4984_v31 = vld [vmem:[#allocation5 + $0x104] ss:$16 sps:$4 sm:$0xff]  }
  0xb1   :  { %900 = vmatprep.subr.bf16.mxu1 %v4948_v50 }
  0xb3   :  { %450 = vmatpush2.bf16.msra.mxu0 %v4876_v33  ;;  %v4986_v33 = vld [vmem:[#allocation5 + $0x108] ss:$16 sps:$4 sm:$0xff]  }
  0xb4   :  { %451 = vmatprep.subr.bf16.mxu0 %v4877_v35  ;;  %901 = vmatpush2.bf16.msra.mxu1 %v4953_v52  ;;  %v4992_v35 = vld [vmem:[#allocation7 + $0xe4] ss:$16 sps:$4 sm:$0xff]  }
  0xb5   :  { %902 = vmatprep.subr.bf16.mxu1 %v4954_v54 }
  0xb7   :  { %452 = vmatpush2.bf16.msra.mxu0 %v4879_v36  ;;  %v4995_v36 = vld [vmem:[#allocation7 + $0x2e4] ss:$16 sps:$4 sm:$0xff]  }
  0xb8   :  { %453 = vmatprep.subr.bf16.mxu0 %v4880_v39  ;;  %903 = vmatpush2.bf16.msra.mxu1 %v4959_v56  ;;  %v6030_v39 = vsub.s32 0, %v6027_v38  ;;  %v4993_v56 = vld [vmem:[#allocation7 + $0x2e0] ss:$16 sps:$4 sm:$0xff]  }
  0xb9   :  { %904 = vmatprep.subr.bf16.mxu1 %v4960_v58  ;;  %v4998_v58 = vld [vmem:[#allocation7 + $0xc4] ss:$16 sps:$4 sm:$0xff]  }
  0xba   :  { %v255_v42 = vrot.slane %v250_v40, %v6030_v39 }
  0xbb   :  { %454 = vmatpush2.bf16.msra.mxu0 %v4882_v41  ;;  %v6036_v41 = vsub.s32 1, %v6027_v38 }
  0xbc   :  { %455 = vmatprep.subr.bf16.mxu0 %v4883_v43  ;;  %905 = vmatpush2.bf16.msra.mxu1 %v4965_v61  ;;  %v4999_v61 = vld [vmem:[#allocation7 + $0x2c0] ss:$16 sps:$4 sm:$0xff]  }
  0xbd   :  { %906 = vmatprep.subr.bf16.mxu1 %v4966_v63  ;;  %v259_v43 = vrot.slane %v250_v40, %v6036_v41  ;;  %v5007_v63 = vld [vmem:[#allocation7 + $0x2a4] ss:$16 sps:$4 sm:$0xff]  }
  0xbe   :  { %v5064_v40 = vld [vmem:[#allocation7 + $0x164] ss:$16 sps:$4 sm:$0xff]  }
  0xbf   :  { %456 = vmatpush2.bf16.msra.mxu0 %v4885_v44 }
  0xc0   :  { %457 = vmatprep.subr.bf16.mxu0 %v4886_v47  ;;  %907 = vmatpush2.bf16.msra.mxu1 %v4971_v1  ;;  %v5005_v1 = vld [vmem:[#allocation7 + $0x2a0] ss:$16 sps:$4 sm:$0xff]  }
  0xc1   :  { %908 = vmatprep.subr.bf16.mxu1 %v4972_v23  ;;  %v5043_v23 = vld [vmem:[#allocation7 + $0x3e4] ss:$16 sps:$4 sm:$0xff]  }
  0xc3   :  { %458 = vmatpush2.bf16.msra.mxu0 %v4888_v49 }
  0xc4   :  { %459 = vmatprep.subr.bf16.mxu0 %v4889_v51  ;;  %909 = vmatpush2.bf16.msra.mxu1 %v4977_v26  ;;  %v5046_v26 = vld [vmem:[#allocation7 + $0x1c4] ss:$16 sps:$4 sm:$0xff]  }
  0xc5   :  { %910 = vmatprep.subr.bf16.mxu1 %v4978_v27  ;;  %v5049_v27 = vld [vmem:[#allocation7 + $0x3c4] ss:$16 sps:$4 sm:$0xff]  }
  0xc7   :  { %460 = vmatpush2.bf16.msra.mxu0 %v4891_v53 }
  0xc8   :  { %923 = vmatprep.subr.bf16.mxu0 %v4898_v55  ;;  %911 = vmatpush2.bf16.msra.mxu1 %v4983_v30  ;;  %v4990_v55 = vld [vmem:[#allocation7 + $0xe0] ss:$16 sps:$4 sm:$0xff]   ;;  %v5052_v30 = vld [vmem:[#allocation7 + $0x1a4] ss:$16 sps:$4 sm:$0xff]  }
  0xc9   :  { %912 = vmatprep.subr.bf16.mxu1 %v4984_v31  ;;  %v5055_v31 = vld [vmem:[#allocation7 + $0x3a4] ss:$16 sps:$4 sm:$0xff]  }
  0xca   :  { %462 = vmatmul.mubr.bf16.vlgmr.msra.gmra.mxu0 %v4243_v59  ;;  %v5001_v59 = vld [vmem:[#allocation7 + $0x2c4] ss:$16 sps:$4 sm:$0xff]  }
  0xcb   :  { %924 = vmatpush1.bf16.msra.mxu0 %v4896_v57 }
  0xcc   :  { %925 = vmatprep.subr.bf16.mxu0 %v4904_v60  ;;  %913 = vmatpush2.bf16.msra.mxu1 %v4989_v34  ;;  %v4996_v60 = vld [vmem:[#allocation7 + $0xc0] ss:$16 sps:$4 sm:$0xff]   ;;  %v5058_v34 = vld [vmem:[#allocation7 + $0x184] ss:$16 sps:$4 sm:$0xff]  }
  0xcd   :  { %1766 = vmatprep.subr.bf16.mxu1 %v4992_v35  ;;  %v5061_v35 = vld [vmem:[#allocation7 + $0x384] ss:$16 sps:$4 sm:$0xff]  }
  0xcf   :  { %926 = vmatpush1.bf16.msra.mxu0 %v4902_v62  ;;  %v5004_v62 = vld [vmem:[#allocation7 + $0xa4] ss:$16 sps:$4 sm:$0xff]  }
  0xd0   :  { %927 = vmatprep.subr.bf16.mxu0 %v4910_v0  ;;  %v5002_v0 = vld [vmem:[#allocation7 + $0xa0] ss:$16 sps:$4 sm:$0xff]  }
  0xd3   :  { %928 = vmatpush1.bf16.msra.mxu0 %v4908_v2  ;;  %v5010_v2 = vld [vmem:[#allocation7 + $0x84] ss:$16 sps:$4 sm:$0xff]  }
  0xd4   :  { %929 = vmatprep.subr.bf16.mxu0 %v4916_v3  ;;  %v5013_v3 = vld [vmem:[#allocation7 + $0x284] ss:$16 sps:$4 sm:$0xff]  }
  0xd7   :  { %930 = vmatpush1.bf16.msra.mxu0 %v4914_v4  ;;  %v5008_v4 = vld [vmem:[#allocation7 + $0x80] ss:$16 sps:$4 sm:$0xff]  }
  0xd8   :  { %931 = vmatprep.subr.bf16.mxu0 %v4922_v5  ;;  %v5011_v5 = vld [vmem:[#allocation7 + $0x280] ss:$16 sps:$4 sm:$0xff]  }
  0xdb   :  { %932 = vmatpush1.bf16.msra.mxu0 %v4920_v6  ;;  %v5016_v6 = vld [vmem:[#allocation7 + $0x64] ss:$16 sps:$4 sm:$0xff]  }
  0xdc   :  { %933 = vmatprep.subr.bf16.mxu0 %v4928_v7  ;;  %v5019_v7 = vld [vmem:[#allocation7 + $0x264] ss:$16 sps:$4 sm:$0xff]  }
  0xdf   :  { %934 = vmatpush1.bf16.msra.mxu0 %v4926_v8  ;;  %v5014_v8 = vld [vmem:[#allocation7 + $0x60] ss:$16 sps:$4 sm:$0xff]  }
  0xe0   :  { %935 = vmatprep.subr.bf16.mxu0 %v4934_v9  ;;  %v5017_v9 = vld [vmem:[#allocation7 + $0x260] ss:$16 sps:$4 sm:$0xff]  }
  0xe3   :  { %936 = vmatpush1.bf16.msra.mxu0 %v4932_v10  ;;  %v5022_v10 = vld [vmem:[#allocation7 + $0x44] ss:$16 sps:$4 sm:$0xff]  }
  0xe4   :  { %937 = vmatprep.subr.bf16.mxu0 %v4940_v11  ;;  %v5025_v11 = vld [vmem:[#allocation7 + $0x244] ss:$16 sps:$4 sm:$0xff]  }
  0xe7   :  { %938 = vmatpush1.bf16.msra.mxu0 %v4938_v12  ;;  %v5020_v12 = vld [vmem:[#allocation7 + $0x40] ss:$16 sps:$4 sm:$0xff]  }
  0xe8   :  { %939 = vmatprep.subr.bf16.mxu0 %v4946_v13  ;;  %v5023_v13 = vld [vmem:[#allocation7 + $0x240] ss:$16 sps:$4 sm:$0xff]  }
  0xeb   :  { %940 = vmatpush2.bf16.msra.mxu0 %v4944_v14  ;;  %v5028_v14 = vld [vmem:[#allocation7 + $0x24] ss:$16 sps:$4 sm:$0xff]  }
  0xec   :  { %941 = vmatprep.subr.bf16.mxu0 %v4952_v15  ;;  %v5031_v15 = vld [vmem:[#allocation7 + $0x224] ss:$16 sps:$4 sm:$0xff]  }
  0xef   :  { %942 = vmatpush2.bf16.msra.mxu0 %v4950_v16  ;;  %v5026_v16 = vld [vmem:[#allocation7 + $0x20] ss:$16 sps:$4 sm:$0xff]  }
  0xf0   :  { %943 = vmatprep.subr.bf16.mxu0 %v4958_v17  ;;  %v5029_v17 = vld [vmem:[#allocation7 + $0x220] ss:$16 sps:$4 sm:$0xff]  }
  0xf3   :  { %944 = vmatpush2.bf16.msra.mxu0 %v4956_v18  ;;  %v5034_v18 = vld [vmem:[#allocation7 + $0x4] ss:$16 sps:$4 sm:$0xff]  }
  0xf4   :  { %945 = vmatprep.subr.bf16.mxu0 %v4964_v19  ;;  %v5037_v19 = vld [vmem:[#allocation7 + $0x204] ss:$16 sps:$4 sm:$0xff]  }
  0xf7   :  { %946 = vmatpush2.bf16.msra.mxu0 %v4962_v20  ;;  %v5032_v20 = vld [vmem:[#allocation7] ss:$16 sps:$4 sm:$0xff]  }
  0xf8   :  { %947 = vmatprep.subr.bf16.mxu0 %v4970_v21  ;;  %v5035_v21 = vld [vmem:[#allocation7 + $0x200] ss:$16 sps:$4 sm:$0xff]  }
  0xfb   :  { %948 = vmatpush2.bf16.msra.mxu0 %v4968_v22  ;;  %v5040_v22 = vld [vmem:[#allocation7 + $0x1e4] ss:$16 sps:$4 sm:$0xff]  }
  0xfc   :  { %949 = vmatprep.subr.bf16.mxu0 %v4976_v24  ;;  %v5038_v24 = vld [vmem:[#allocation7 + $0x1e0] ss:$16 sps:$4 sm:$0xff]  }
  0xff   :  { %950 = vmatpush2.bf16.msra.mxu0 %v4974_v25  ;;  %v5041_v25 = vld [vmem:[#allocation7 + $0x3e0] ss:$16 sps:$4 sm:$0xff]  }
 0x100   :  { %951 = vmatprep.subr.bf16.mxu0 %v4982_v28  ;;  %v5044_v28 = vld [vmem:[#allocation7 + $0x1c0] ss:$16 sps:$4 sm:$0xff]  }
 0x103   :  { %952 = vmatpush2.bf16.msra.mxu0 %v4980_v29  ;;  %v5047_v29 = vld [vmem:[#allocation7 + $0x3c0] ss:$16 sps:$4 sm:$0xff]  }
 0x104   :  { %953 = vmatprep.subr.bf16.mxu0 %v4988_v32  ;;  %v5050_v32 = vld [vmem:[#allocation7 + $0x1a0] ss:$16 sps:$4 sm:$0xff]  }
 0x107   :  { %954 = vmatpush2.bf16.msra.mxu0 %v4986_v33  ;;  %v5053_v33 = vld [vmem:[#allocation7 + $0x3a0] ss:$16 sps:$4 sm:$0xff]  }
 0x108   :  { %1807 = vmatprep.subr.bf16.mxu0 %v4995_v36  ;;  %v5056_v36 = vld [vmem:[#allocation7 + $0x180] ss:$16 sps:$4 sm:$0xff]  }
 0x18a   :  { %v463_v44 = vpop.f32.mrf.mxu0 }
 0x18b   :  { %v464_v45 = vadd.f32 %v463_v44, %v255_v42  ;;  %v5067_v42 = vld [vmem:[#allocation7 + $0x364] ss:$16 sps:$4 sm:$0xff]   ;;  %v5065_v44 = vld [vmem:[#allocation7 + $0x360] ss:$16 sps:$4 sm:$0xff]  }
 0x18c   :  { %v465_v46 = vpop.f32.mrf.mxu0 }
 0x18d   :  { %v470_v47 = vmul.f32 0.2, %v464_v45  ;;  %v466_v48 = vadd.f32 %v465_v46, %v259_v43  ;;  %v5062_v43 = vld [vmem:[#allocation7 + $0x160] ss:$16 sps:$4 sm:$0xff]   ;;  %v5073_v46 = vld [vmem:[#allocation7 + $0x344] ss:$16 sps:$4 sm:$0xff]  }
 0x18e   :  { %v467_v49 = vpop.f32.mrf.mxu0 }
 0x18f   :  { %v471_v50 = vmul.f32 0.2, %v466_v48  ;;  %v472_v51 = vmax.f32 %v464_v45, %v470_v47  ;;  %v5070_v45 = vld [vmem:[#allocation7 + $0x144] ss:$16 sps:$4 sm:$0xff]   ;;  %v5068_v47 = vld [vmem:[#allocation7 + $0x140] ss:$16 sps:$4 sm:$0xff]  }
 0x190   :  { %v468_v52 = vpop.f32.mrf.mxu0  ;;  %v5076_v49 = vld [vmem:[#allocation7 + $0x124] ss:$16 sps:$4 sm:$0xff]  }
 0x191   :  { %v473_v53 = vmax.f32 %v466_v48, %v471_v50  ;;  %v474_v57 = vpack.c.bf16 %v472_v51, %v472_v51  ;;  %v5071_v48 = vld [vmem:[#allocation7 + $0x340] ss:$16 sps:$4 sm:$0xff]   ;;  %v5079_v50 = vld [vmem:[#allocation7 + $0x324] ss:$16 sps:$4 sm:$0xff]  }
 0x192   :  { %v5074_v51 = vld [vmem:[#allocation7 + $0x120] ss:$16 sps:$4 sm:$0xff]  }
 0x193   :  { %v475_v54 = vpack.c.bf16 %v473_v53, %v473_v53  ;;  %v5077_v52 = vld [vmem:[#allocation7 + $0x320] ss:$16 sps:$4 sm:$0xff]   ;;  %v5082_v53 = vld [vmem:[#allocation7 + $0x104] ss:$16 sps:$4 sm:$0xff]  }
 0x195   :  { %914 = vmatprep.mubr.bf16.mxu1 %v475_v54  ;;  %955 = vmatprep.mubr.bf16.mxu0 %v475_v54  ;;  %v5085_v54 = vld [vmem:[#allocation7 + $0x304] ss:$16 sps:$4 sm:$0xff]  }
 0x196   :  { %915 = vmatmul.mubr.bf16.vlgmr.msra.gmra.mxu1 %v474_v57  ;;  %956 = vmatmul.mubr.bf16.vlgmr.msra.gmra.mxu0 %v474_v57  ;;  %v5088_v57 = vld [vmem:[#allocation7 + $0xec] ss:$16 sps:$4 sm:$0xff]  }
 0x197   :  { %1767 = vmatpush1.bf16.msra.mxu1 %v4990_v55  ;;  %1808 = vmatpush1.bf16.msra.mxu0 %v4993_v56  ;;  %v5080_v55 = vld [vmem:[#allocation7 + $0x100] ss:$16 sps:$4 sm:$0xff]  }
 0x198   :  { %1768 = vmatprep.subr.bf16.mxu1 %v4998_v58  ;;  %1809 = vmatprep.subr.bf16.mxu0 %v5001_v59  ;;  %v5083_v56 = vld [vmem:[#allocation7 + $0x300] ss:$16 sps:$4 sm:$0xff]   ;;  %v5091_v58 = vld [vmem:[#allocation7 + $0x2ec] ss:$16 sps:$4 sm:$0xff]   ;;  %v6041_v59 = vsub.s32 2, %v6027_v38 }
 0x19b   :  { %1769 = vmatpush1.bf16.msra.mxu1 %v4996_v60  ;;  %1810 = vmatpush1.bf16.msra.mxu0 %v4999_v61  ;;  %v540_v60 = vld [vmem:[%s6209_s30] sm:$0xf]  ;;  %v6047_v61 = vsub.s32 3, %v6027_v38 }
 0x19c   :  { %1770 = vmatprep.subr.bf16.mxu1 %v5004_v62  ;;  %1811 = vmatprep.subr.bf16.mxu0 %v5007_v63  ;;  %v545_v62 = vrot.slane %v540_v60, %v6030_v39  ;;  %v553_v63 = vrot.slane %v540_v60, %v6041_v59 }
 0x19f   :  { %1771 = vmatpush1.bf16.msra.mxu1 %v5002_v0  ;;  %1812 = vmatpush1.bf16.msra.mxu0 %v5005_v1  ;;  %v549_v0 = vrot.slane %v540_v60, %v6036_v41  ;;  %v557_v1 = vrot.slane %v540_v60, %v6047_v61  ;;  %v5139_v60 = vld [vmem:[#allocation7 + $0x3ec] ss:$16 sps:$4 sm:$0xff]  }
 0x1a0   :  { %1772 = vmatprep.subr.bf16.mxu1 %v5010_v2  ;;  %1813 = vmatprep.subr.bf16.mxu0 %v5013_v3 }
 0x1a3   :  { %1773 = vmatpush1.bf16.msra.mxu1 %v5008_v4  ;;  %1814 = vmatpush1.bf16.msra.mxu0 %v5011_v5 }
 0x1a4   :  { %1774 = vmatprep.subr.bf16.mxu1 %v5016_v6  ;;  %1815 = vmatprep.subr.bf16.mxu0 %v5019_v7 }
 0x1a7   :  { %1775 = vmatpush1.bf16.msra.mxu1 %v5014_v8  ;;  %1816 = vmatpush1.bf16.msra.mxu0 %v5017_v9 }
 0x1a8   :  { %1776 = vmatprep.subr.bf16.mxu1 %v5022_v10  ;;  %1817 = vmatprep.subr.bf16.mxu0 %v5025_v11 }
 0x1ab   :  { %1777 = vmatpush1.bf16.msra.mxu1 %v5020_v12  ;;  %1818 = vmatpush1.bf16.msra.mxu0 %v5023_v13 }
 0x1ac   :  { %1778 = vmatprep.subr.bf16.mxu1 %v5028_v14  ;;  %1819 = vmatprep.subr.bf16.mxu0 %v5031_v15 }
 0x1af   :  { %1779 = vmatpush1.bf16.msra.mxu1 %v5026_v16  ;;  %1820 = vmatpush1.bf16.msra.mxu0 %v5029_v17 }
 0x1b0   :  { %1780 = vmatprep.subr.bf16.mxu1 %v5034_v18  ;;  %1821 = vmatprep.subr.bf16.mxu0 %v5037_v19 }
 0x1b3   :  { %1781 = vmatpush1.bf16.msra.mxu1 %v5032_v20  ;;  %1822 = vmatpush1.bf16.msra.mxu0 %v5035_v21 }
 0x1b4   :  { %1782 = vmatprep.subr.bf16.mxu1 %v5040_v22  ;;  %1823 = vmatprep.subr.bf16.mxu0 %v5043_v23  ;;  %v5086_v23 = vld [vmem:[#allocation7 + $0xe8] ss:$16 sps:$4 sm:$0xff]  }
 0x1b7   :  { %1783 = vmatpush2.bf16.msra.mxu1 %v5038_v24  ;;  %1824 = vmatpush2.bf16.msra.mxu0 %v5041_v25  ;;  %v5089_v24 = vld [vmem:[#allocation7 + $0x2e8] ss:$16 sps:$4 sm:$0xff]  }
 0x1b8   :  { %1784 = vmatprep.subr.bf16.mxu1 %v5046_v26  ;;  %1825 = vmatprep.subr.bf16.mxu0 %v5049_v27  ;;  %v5094_v27 = vld [vmem:[#allocation7 + $0xcc] ss:$16 sps:$4 sm:$0xff]  }
 0x1bb   :  { %1785 = vmatpush2.bf16.msra.mxu1 %v5044_v28  ;;  %1826 = vmatpush2.bf16.msra.mxu0 %v5047_v29  ;;  %v5097_v28 = vld [vmem:[#allocation7 + $0x2cc] ss:$16 sps:$4 sm:$0xff]   ;;  %v5092_v29 = vld [vmem:[#allocation7 + $0xc8] ss:$16 sps:$4 sm:$0xff]  }
 0x1bc   :  { %1786 = vmatprep.subr.bf16.mxu1 %v5052_v30  ;;  %1827 = vmatprep.subr.bf16.mxu0 %v5055_v31  ;;  %v5095_v30 = vld [vmem:[#allocation7 + $0x2c8] ss:$16 sps:$4 sm:$0xff]   ;;  %v5100_v31 = vld [vmem:[#allocation7 + $0xac] ss:$16 sps:$4 sm:$0xff]  }
 0x1bf   :  { %1787 = vmatpush2.bf16.msra.mxu1 %v5050_v32  ;;  %1828 = vmatpush2.bf16.msra.mxu0 %v5053_v33  ;;  %v5103_v32 = vld [vmem:[#allocation7 + $0x2ac] ss:$16 sps:$4 sm:$0xff]   ;;  %v5098_v33 = vld [vmem:[#allocation7 + $0xa8] ss:$16 sps:$4 sm:$0xff]  }
 0x1c0   :  { %1788 = vmatprep.subr.bf16.mxu1 %v5058_v34  ;;  %1829 = vmatprep.subr.bf16.mxu0 %v5061_v35  ;;  %v5101_v34 = vld [vmem:[#allocation7 + $0x2a8] ss:$16 sps:$4 sm:$0xff]   ;;  %v5106_v35 = vld [vmem:[#allocation7 + $0x8c] ss:$16 sps:$4 sm:$0xff]  }
 0x1c3   :  { %1789 = vmatpush2.bf16.msra.mxu1 %v5056_v36  ;;  %1830 = vmatpush2.bf16.msra.mxu0 %v5059_v37  ;;  %v5109_v36 = vld [vmem:[#allocation7 + $0x28c] ss:$16 sps:$4 sm:$0xff]   ;;  %v5104_v37 = vld [vmem:[#allocation7 + $0x88] ss:$16 sps:$4 sm:$0xff]  }
 0x1c4   :  { %1790 = vmatprep.subr.bf16.mxu1 %v5064_v40  ;;  %1831 = vmatprep.subr.bf16.mxu0 %v5067_v42  ;;  %v5107_v40 = vld [vmem:[#allocation7 + $0x288] ss:$16 sps:$4 sm:$0xff]   ;;  %v5112_v42 = vld [vmem:[#allocation7 + $0x6c] ss:$16 sps:$4 sm:$0xff]  }
 0x1c7   :  { %1791 = vmatpush2.bf16.msra.mxu1 %v5062_v43  ;;  %1832 = vmatpush2.bf16.msra.mxu0 %v5065_v44  ;;  %v5115_v43 = vld [vmem:[#allocation7 + $0x26c] ss:$16 sps:$4 sm:$0xff]   ;;  %v5110_v44 = vld [vmem:[#allocation7 + $0x68] ss:$16 sps:$4 sm:$0xff]  }
 0x1c8   :  { %1792 = vmatprep.subr.bf16.mxu1 %v5070_v45  ;;  %1833 = vmatprep.subr.bf16.mxu0 %v5073_v46  ;;  %v5113_v45 = vld [vmem:[#allocation7 + $0x268] ss:$16 sps:$4 sm:$0xff]   ;;  %v5118_v46 = vld [vmem:[#allocation7 + $0x4c] ss:$16 sps:$4 sm:$0xff]  }
 0x1cb   :  { %1793 = vmatpush2.bf16.msra.mxu1 %v5068_v47  ;;  %1834 = vmatpush2.bf16.msra.mxu0 %v5071_v48  ;;  %v5121_v47 = vld [vmem:[#allocation7 + $0x24c] ss:$16 sps:$4 sm:$0xff]   ;;  %v5116_v48 = vld [vmem:[#allocation7 + $0x48] ss:$16 sps:$4 sm:$0xff]  }
 0x1cc   :  { %1794 = vmatprep.subr.bf16.mxu1 %v5076_v49  ;;  %1835 = vmatprep.subr.bf16.mxu0 %v5079_v50  ;;  %v5119_v49 = vld [vmem:[#allocation7 + $0x248] ss:$16 sps:$4 sm:$0xff]   ;;  %v5124_v50 = vld [vmem:[#allocation7 + $0x2c] ss:$16 sps:$4 sm:$0xff]  }
 0x1cf   :  { %1795 = vmatpush2.bf16.msra.mxu1 %v5074_v51  ;;  %1836 = vmatpush2.bf16.msra.mxu0 %v5077_v52  ;;  %v5127_v51 = vld [vmem:[#allocation7 + $0x22c] ss:$16 sps:$4 sm:$0xff]   ;;  %v5122_v52 = vld [vmem:[#allocation7 + $0x28] ss:$16 sps:$4 sm:$0xff]  }
 0x1d0   :  { %1796 = vmatprep.subr.bf16.mxu1 %v5082_v53  ;;  %1837 = vmatprep.subr.bf16.mxu0 %v5085_v54  ;;  %v5125_v53 = vld [vmem:[#allocation7 + $0x228] ss:$16 sps:$4 sm:$0xff]   ;;  %v5130_v54 = vld [vmem:[#allocation7 + $0xc] ss:$16 sps:$4 sm:$0xff]  }
 0x1d3   :  { %1797 = vmatpush2.bf16.msra.mxu1 %v5080_v55  ;;  %1838 = vmatpush2.bf16.msra.mxu0 %v5083_v56  ;;  %v5133_v55 = vld [vmem:[#allocation7 + $0x20c] ss:$16 sps:$4 sm:$0xff]   ;;  %v5128_v56 = vld [vmem:[#allocation7 + $0x8] ss:$16 sps:$4 sm:$0xff]  }
 0x1d4   :  { %1848 = vmatprep.subr.bf16.mxu1 %v5088_v57  ;;  %1889 = vmatprep.subr.bf16.mxu0 %v5091_v58  ;;  %v5131_v57 = vld [vmem:[#allocation7 + $0x208] ss:$16 sps:$4 sm:$0xff]   ;;  %v5136_v58 = vld [vmem:[#allocation7 + $0x1ec] ss:$16 sps:$4 sm:$0xff]  }
 0x256   :  { %v916_v2 = vpop.f32.mrf.mxu1  ;;  %v957_v3 = vpop.f32.mrf.mxu0 }
 0x257   :  { %v917_v4 = vadd.f32 %v916_v2, %v545_v62  ;;  %v958_v5 = vadd.f32 %v957_v3, %v553_v63  ;;  %v5134_v62 = vld [vmem:[#allocation7 + $0x1e8] ss:$16 sps:$4 sm:$0xff]  }
 0x258   :  { %v918_v6 = vpop.f32.mrf.mxu1  ;;  %v959_v7 = vpop.f32.mrf.mxu0  ;;  %v5137_v63 = vld [vmem:[#allocation7 + $0x3e8] ss:$16 sps:$4 sm:$0xff]  }
 0x259   :  { %v964_v8 = vmul.f32 0.2, %v917_v4  ;;  %v966_v9 = vmul.f32 0.2, %v958_v5  ;;  %v919_v10 = vadd.f32 %v918_v6, %v549_v0  ;;  %v960_v11 = vadd.f32 %v959_v7, %v557_v1  ;;  %v5142_v0 = vld [vmem:[#allocation7 + $0x1cc] ss:$16 sps:$4 sm:$0xff]  }
 0x25a   :  { %v920_v38 = vpop.f32.mrf.mxu1  ;;  %v961_v12 = vpop.f32.mrf.mxu0  ;;  %v5145_v1 = vld [vmem:[#allocation7 + $0x3cc] ss:$16 sps:$4 sm:$0xff]   ;;  %v5140_v2 = vld [vmem:[#allocation7 + $0x1c8] ss:$16 sps:$4 sm:$0xff]  }
 0x25b   :  { %v965_v13 = vmul.f32 0.2, %v919_v10  ;;  %v967_v14 = vmul.f32 0.2, %v960_v11  ;;  %v968_v15 = vmax.f32 %v917_v4, %v964_v8  ;;  %v970_v16 = vmax.f32 %v958_v5, %v966_v9  ;;  %v5143_v3 = vld [vmem:[#allocation7 + $0x3c8] ss:$16 sps:$4 sm:$0xff]  }
 0x25c   :  { %v921_v17 = vpop.f32.mrf.mxu1  ;;  %v962_v18 = vpop.f32.mrf.mxu0  ;;  %v5148_v4 = vld [vmem:[#allocation7 + $0x1ac] ss:$16 sps:$4 sm:$0xff]   ;;  %v5146_v6 = vld [vmem:[#allocation7 + $0x1a8] ss:$16 sps:$4 sm:$0xff]  }
 0x25d   :  { %v969_v19 = vmax.f32 %v919_v10, %v965_v13  ;;  %v971_v20 = vmax.f32 %v960_v11, %v967_v14  ;;  %v6053_v25 = vpack.c.bf16 %v968_v15, %v968_v15  ;;  %v6055_v26 = vpack.c.bf16 %v970_v16, %v970_v16  ;;  %v5151_v5 = vld [vmem:[#allocation7 + $0x3ac] ss:$16 sps:$4 sm:$0xff]   ;;  %v5149_v7 = vld [vmem:[#allocation7 + $0x3a8] ss:$16 sps:$4 sm:$0xff]  }
 0x25e   :  { %v5154_v8 = vld [vmem:[#allocation7 + $0x18c] ss:$16 sps:$4 sm:$0xff]   ;;  %v5152_v10 = vld [vmem:[#allocation7 + $0x188] ss:$16 sps:$4 sm:$0xff]  }
 0x25f   :  { %v973_v21 = vpack.c.bf16 %v969_v19, %v969_v19  ;;  %v975_v22 = vpack.c.bf16 %v971_v20, %v971_v20  ;;  %v5157_v9 = vld [vmem:[#allocation7 + $0x38c] ss:$16 sps:$4 sm:$0xff]   ;;  %v5155_v11 = vld [vmem:[#allocation7 + $0x388] ss:$16 sps:$4 sm:$0xff]  }
 0x260   :  { %v5160_v38 = vld [vmem:[#allocation7 + $0x16c] ss:$16 sps:$4 sm:$0xff]   ;;  %v5158_v13 = vld [vmem:[#allocation7 + $0x168] ss:$16 sps:$4 sm:$0xff]  }
 0x261   :  { %1798 = vmatprep.mubr.bf16.mxu1 %v973_v21  ;;  %1839 = vmatprep.mubr.bf16.mxu0 %v975_v22  ;;  %v5163_v12 = vld [vmem:[#allocation7 + $0x36c] ss:$16 sps:$4 sm:$0xff]   ;;  %v5161_v14 = vld [vmem:[#allocation7 + $0x368] ss:$16 sps:$4 sm:$0xff]  }
 0x262   :  { %1799 = vmatmul.mubr.bf16.vlgmr.msra.gmra.mxu1 %v6053_v25  ;;  %1840 = vmatmul.mubr.bf16.vlgmr.msra.gmra.mxu0 %v6055_v26  ;;  %v5166_v15 = vld [vmem:[#allocation7 + $0x14c] ss:$16 sps:$4 sm:$0xff]   ;;  %v5164_v17 = vld [vmem:[#allocation7 + $0x148] ss:$16 sps:$4 sm:$0xff]  }
 0x263   :  { %1849 = vmatpush1.bf16.msra.mxu1 %v5086_v23  ;;  %1890 = vmatpush1.bf16.msra.mxu0 %v5089_v24  ;;  %v5169_v16 = vld [vmem:[#allocation7 + $0x34c] ss:$16 sps:$4 sm:$0xff]   ;;  %v5167_v18 = vld [vmem:[#allocation7 + $0x348] ss:$16 sps:$4 sm:$0xff]  }
 0x264   :  { %1880 = vmatprep.mubr.bf16.mxu1 %v973_v21  ;;  %1921 = vmatprep.mubr.bf16.mxu0 %v975_v22  ;;  %v5172_v19 = vld [vmem:[#allocation7 + $0x12c] ss:$16 sps:$4 sm:$0xff]   ;;  %v5170_v21 = vld [vmem:[#allocation7 + $0x128] ss:$16 sps:$4 sm:$0xff]  }
 0x265   :  { %1850 = vmatprep.subr.bf16.mxu1 %v5094_v27  ;;  %1891 = vmatprep.subr.bf16.mxu0 %v5097_v28  ;;  %v5175_v20 = vld [vmem:[#allocation7 + $0x32c] ss:$16 sps:$4 sm:$0xff]   ;;  %v5173_v22 = vld [vmem:[#allocation7 + $0x328] ss:$16 sps:$4 sm:$0xff]  }
 0x266   :  { %v5178_v23 = vld [vmem:[#allocation7 + $0x10c] ss:$16 sps:$4 sm:$0xff]   ;;  %v5176_v27 = vld [vmem:[#allocation7 + $0x108] ss:$16 sps:$4 sm:$0xff]  }
 0x267   :  { %1851 = vmatpush1.bf16.msra.mxu1 %v5092_v29  ;;  %1892 = vmatpush1.bf16.msra.mxu0 %v5095_v30  ;;  %v5181_v24 = vld [vmem:[#allocation7 + $0x30c] ss:$16 sps:$4 sm:$0xff]   ;;  %v5179_v28 = vld [vmem:[#allocation7 + $0x308] ss:$16 sps:$4 sm:$0xff]  }
 0x268   :  { %1852 = vmatprep.subr.bf16.mxu1 %v5100_v31  ;;  %1893 = vmatprep.subr.bf16.mxu0 %v5103_v32  ;;  %v5184_v29 = vld [vmem:[#allocation8 + $0x74] ss:$8 sps:$4 sm:$0xff]   ;;  %v5182_v30 = vld [vmem:[#allocation8 + $0x70] ss:$8 sps:$4 sm:$0xff]   ;;  %v5187_v31 = vld [vmem:[#allocation8 + $0x64] ss:$8 sps:$4 sm:$0xff]  }
 0x269   :  { %v5185_v32 = vld [vmem:[#allocation8 + $0x60] ss:$8 sps:$4 sm:$0xff]  }
 0x26b   :  { %1853 = vmatpush1.bf16.msra.mxu1 %v5098_v33  ;;  %1894 = vmatpush1.bf16.msra.mxu0 %v5101_v34  ;;  %v5190_v33 = vld [vmem:[#allocation8 + $0x54] ss:$8 sps:$4 sm:$0xff]   ;;  %v5188_v34 = vld [vmem:[#allocation8 + $0x50] ss:$8 sps:$4 sm:$0xff]  }
 0x26c   :  { %1854 = vmatprep.subr.bf16.mxu1 %v5106_v35  ;;  %1895 = vmatprep.subr.bf16.mxu0 %v5109_v36  ;;  %v5193_v35 = vld [vmem:[#allocation8 + $0x44] ss:$8 sps:$4 sm:$0xff]   ;;  %v5191_v36 = vld [vmem:[#allocation8 + $0x40] ss:$8 sps:$4 sm:$0xff]  }
 0x26f   :  { %1855 = vmatpush1.bf16.msra.mxu1 %v5104_v37  ;;  %1896 = vmatpush1.bf16.msra.mxu0 %v5107_v40  ;;  %v5196_v37 = vld [vmem:[#allocation8 + $0x34] ss:$8 sps:$4 sm:$0xff]  }
 0x270   :  { %1856 = vmatprep.subr.bf16.mxu1 %v5112_v42  ;;  %1897 = vmatprep.subr.bf16.mxu0 %v5115_v43  ;;  %v5232_v40 = vld [vmem:[#allocation8 + $0x174] ss:$8 sps:$4 sm:$0xff]   ;;  %v5194_v42 = vld [vmem:[#allocation8 + $0x30] ss:$8 sps:$4 sm:$0xff]  }
 0x271   :  { %v5230_v43 = vld [vmem:[#allocation8 + $0x170] ss:$8 sps:$4 sm:$0xff]  }
 0x273   :  { %1857 = vmatpush1.bf16.msra.mxu1 %v5110_v44  ;;  %1898 = vmatpush1.bf16.msra.mxu0 %v5113_v45  ;;  %v5233_v44 = vld [vmem:[#allocation8 + $0x160] ss:$8 sps:$4 sm:$0xff]   ;;  %v5238_v45 = vld [vmem:[#allocation8 + $0x154] ss:$8 sps:$4 sm:$0xff]  }
 0x274   :  { %1858 = vmatprep.subr.bf16.mxu1 %v5118_v46  ;;  %1899 = vmatprep.subr.bf16.mxu0 %v5121_v47  ;;  %v5197_v46 = vld [vmem:[#allocation8 + $0x20] ss:$8 sps:$4 sm:$0xff]   ;;  %v5202_v47 = vld [vmem:[#allocation8 + $0x14] ss:$8 sps:$4 sm:$0xff]  }
 0x277   :  { %1859 = vmatpush1.bf16.msra.mxu1 %v5116_v48  ;;  %1900 = vmatpush1.bf16.msra.mxu0 %v5119_v49  ;;  %v5236_v48 = vld [vmem:[#allocation8 + $0x150] ss:$8 sps:$4 sm:$0xff]   ;;  %v5241_v49 = vld [vmem:[#allocation8 + $0x144] ss:$8 sps:$4 sm:$0xff]  }
 0x278   :  { %1860 = vmatprep.subr.bf16.mxu1 %v5124_v50  ;;  %1901 = vmatprep.subr.bf16.mxu0 %v5127_v51  ;;  %v5200_v50 = vld [vmem:[#allocation8 + $0x10] ss:$8 sps:$4 sm:$0xff]   ;;  %v5205_v51 = vld [vmem:[#allocation8 + $0x4] ss:$8 sps:$4 sm:$0xff]  }
 0x27b   :  { %1861 = vmatpush1.bf16.msra.mxu1 %v5122_v52  ;;  %1902 = vmatpush1.bf16.msra.mxu0 %v5125_v53  ;;  %v5239_v52 = vld [vmem:[#allocation8 + $0x140] ss:$8 sps:$4 sm:$0xff]   ;;  %v5244_v53 = vld [vmem:[#allocation8 + $0x134] ss:$8 sps:$4 sm:$0xff]  }
 0x27c   :  { %1862 = vmatprep.subr.bf16.mxu1 %v5130_v54  ;;  %1903 = vmatprep.subr.bf16.mxu0 %v5133_v55  ;;  %v5203_v54 = vld [vmem:[#allocation8] ss:$8 sps:$4 sm:$0xff]   ;;  %v5208_v55 = vld [vmem:[#allocation8 + $0xf4] ss:$8 sps:$4 sm:$0xff]  }
 0x27f   :  { %1863 = vmatpush1.bf16.msra.mxu1 %v5128_v56  ;;  %1904 = vmatpush1.bf16.msra.mxu0 %v5131_v57  ;;  %v5242_v56 = vld [vmem:[#allocation8 + $0x130] ss:$8 sps:$4 sm:$0xff]   ;;  %v5247_v57 = vld [vmem:[#allocation8 + $0x124] ss:$8 sps:$4 sm:$0xff]  }
 0x280   :  { %1864 = vmatprep.subr.bf16.mxu1 %v5136_v58  ;;  %1905 = vmatprep.subr.bf16.mxu0 %v5139_v60  ;;  %v5206_v58 = vld [vmem:[#allocation8 + $0xf0] ss:$8 sps:$4 sm:$0xff]   ;;  %v5211_v60 = vld [vmem:[#allocation8 + $0xe4] ss:$8 sps:$4 sm:$0xff]  }
 0x283   :  { %1865 = vmatpush2.bf16.msra.mxu1 %v5134_v62  ;;  %1906 = vmatpush2.bf16.msra.mxu0 %v5137_v63  ;;  %v5245_v62 = vld [vmem:[#allocation8 + $0x120] ss:$8 sps:$4 sm:$0xff]   ;;  %v5250_v63 = vld [vmem:[#allocation8 + $0x114] ss:$8 sps:$4 sm:$0xff]  }
 0x284   :  { %1866 = vmatprep.subr.bf16.mxu1 %v5142_v0  ;;  %1907 = vmatprep.subr.bf16.mxu0 %v5145_v1  ;;  %v5209_v0 = vld [vmem:[#allocation8 + $0xe0] ss:$8 sps:$4 sm:$0xff]   ;;  %v5214_v1 = vld [vmem:[#allocation8 + $0xd4] ss:$8 sps:$4 sm:$0xff]  }
 0x287   :  { %1867 = vmatpush2.bf16.msra.mxu1 %v5140_v2  ;;  %1908 = vmatpush2.bf16.msra.mxu0 %v5143_v3  ;;  %v5248_v2 = vld [vmem:[#allocation8 + $0x110] ss:$8 sps:$4 sm:$0xff]   ;;  %v5253_v3 = vld [vmem:[#allocation8 + $0x104] ss:$8 sps:$4 sm:$0xff]  }
 0x288   :  { %1868 = vmatprep.subr.bf16.mxu1 %v5148_v4  ;;  %1909 = vmatprep.subr.bf16.mxu0 %v5151_v5  ;;  %v5212_v4 = vld [vmem:[#allocation8 + $0xd0] ss:$8 sps:$4 sm:$0xff]   ;;  %v5217_v5 = vld [vmem:[#allocation8 + $0xc4] ss:$8 sps:$4 sm:$0xff]  }
 0x28b   :  { %1869 = vmatpush2.bf16.msra.mxu1 %v5146_v6  ;;  %1910 = vmatpush2.bf16.msra.mxu0 %v5149_v7  ;;  %v5251_v6 = vld [vmem:[#allocation8 + $0x100] ss:$8 sps:$4 sm:$0xff]   ;;  %v5256_v7 = vld [vmem:[#allocation8 + $0x1f4] ss:$8 sps:$4 sm:$0xff]  }
 0x28c   :  { %1870 = vmatprep.subr.bf16.mxu1 %v5154_v8  ;;  %1911 = vmatprep.subr.bf16.mxu0 %v5157_v9  ;;  %v5215_v8 = vld [vmem:[#allocation8 + $0xc0] ss:$8 sps:$4 sm:$0xff]   ;;  %v5220_v9 = vld [vmem:[#allocation8 + $0xb4] ss:$8 sps:$4 sm:$0xff]  }
 0x28f   :  { %1871 = vmatpush2.bf16.msra.mxu1 %v5152_v10  ;;  %1912 = vmatpush2.bf16.msra.mxu0 %v5155_v11  ;;  %v5254_v10 = vld [vmem:[#allocation8 + $0x1f0] ss:$8 sps:$4 sm:$0xff]   ;;  %v5259_v11 = vld [vmem:[#allocation8 + $0x1e4] ss:$8 sps:$4 sm:$0xff]  }
 0x290   :  { %1872 = vmatprep.subr.bf16.mxu1 %v5160_v38  ;;  %1913 = vmatprep.subr.bf16.mxu0 %v5163_v12  ;;  %v5218_v38 = vld [vmem:[#allocation8 + $0xb0] ss:$8 sps:$4 sm:$0xff]   ;;  %v5223_v12 = vld [vmem:[#allocation8 + $0xa4] ss:$8 sps:$4 sm:$0xff]  }
 0x293   :  { %1873 = vmatpush2.bf16.msra.mxu1 %v5158_v13  ;;  %1914 = vmatpush2.bf16.msra.mxu0 %v5161_v14  ;;  %v5257_v13 = vld [vmem:[#allocation8 + $0x1e0] ss:$8 sps:$4 sm:$0xff]   ;;  %v5262_v14 = vld [vmem:[#allocation8 + $0x1d4] ss:$8 sps:$4 sm:$0xff]  }
 0x294   :  { %1874 = vmatprep.subr.bf16.mxu1 %v5166_v15  ;;  %1915 = vmatprep.subr.bf16.mxu0 %v5169_v16  ;;  %v5221_v15 = vld [vmem:[#allocation8 + $0xa0] ss:$8 sps:$4 sm:$0xff]   ;;  %v5226_v16 = vld [vmem:[#allocation8 + $0x94] ss:$8 sps:$4 sm:$0xff]  }
 0x297   :  { %1875 = vmatpush2.bf16.msra.mxu1 %v5164_v17  ;;  %1916 = vmatpush2.bf16.msra.mxu0 %v5167_v18  ;;  %v5260_v17 = vld [vmem:[#allocation8 + $0x1d0] ss:$8 sps:$4 sm:$0xff]   ;;  %v5265_v18 = vld [vmem:[#allocation8 + $0x1c4] ss:$8 sps:$4 sm:$0xff]  }
 0x298   :  { %1876 = vmatprep.subr.bf16.mxu1 %v5172_v19  ;;  %1917 = vmatprep.subr.bf16.mxu0 %v5175_v20  ;;  %v5224_v19 = vld [vmem:[#allocation8 + $0x90] ss:$8 sps:$4 sm:$0xff]   ;;  %v5229_v20 = vld [vmem:[#allocation8 + $0x84] ss:$8 sps:$4 sm:$0xff]  }
 0x29b   :  { %1877 = vmatpush2.bf16.msra.mxu1 %v5170_v21  ;;  %1918 = vmatpush2.bf16.msra.mxu0 %v5173_v22  ;;  %v5263_v21 = vld [vmem:[#allocation8 + $0x1c0] ss:$8 sps:$4 sm:$0xff]   ;;  %v5268_v22 = vld [vmem:[#allocation8 + $0x1b4] ss:$8 sps:$4 sm:$0xff]  }
 0x29c   :  { %1878 = vmatprep.subr.bf16.mxu1 %v5178_v23  ;;  %1919 = vmatprep.subr.bf16.mxu0 %v5181_v24  ;;  %v5227_v23 = vld [vmem:[#allocation8 + $0x80] ss:$8 sps:$4 sm:$0xff]   ;;  %v5266_v24 = vld [vmem:[#allocation8 + $0x1b0] ss:$8 sps:$4 sm:$0xff]  }
 0x29f   :  { %1879 = vmatpush2.bf16.msra.mxu1 %v5176_v27  ;;  %1920 = vmatpush2.bf16.msra.mxu0 %v5179_v28  ;;  %v5271_v27 = vld [vmem:[#allocation8 + $0x1a4] ss:$8 sps:$4 sm:$0xff]   ;;  %v5269_v28 = vld [vmem:[#allocation8 + $0x1a0] ss:$8 sps:$4 sm:$0xff]  }
 0x2a0   :  { %2338 = vmatprep.subr.bf16.mxu1 %v5184_v29  ;;  %2379 = vmatprep.subr.bf16.mxu0 %v5232_v40  ;;  %v5274_v29 = vld [vmem:[#allocation8 + $0x194] ss:$8 sps:$4 sm:$0xff]  }
 0x2a2   :  { %1881 = vmatmul.mubr.bf16.vlgmr.msra.gmra.mxu1 %v6053_v25  ;;  %1922 = vmatmul.mubr.bf16.vlgmr.msra.gmra.mxu0 %v6055_v26  ;;  %v5199_v25 = vld [vmem:[#allocation8 + $0x24] ss:$8 sps:$4 sm:$0xff]  }
 0x2a3   :  { %2339 = vmatpush1.bf16.msra.mxu1 %v5182_v30  ;;  %v5235_v26 = vld [vmem:[#allocation8 + $0x164] ss:$8 sps:$4 sm:$0xff]   ;;  %2380 = vmatpush1.bf16.msra.mxu0 %v5230_v43  ;;  %v5272_v30 = vld [vmem:[#allocation8 + $0x190] ss:$8 sps:$4 sm:$0xff]  }
 0x2a4   :  { %2340 = vmatprep.subr.bf16.mxu1 %v5187_v31  ;;  %2381 = vmatprep.subr.bf16.mxu0 %v5235_v26  ;;  %v5277_v31 = vld [vmem:[#allocation8 + $0x184] ss:$8 sps:$4 sm:$0xff]  }
 0x2a7   :  { %2341 = vmatpush1.bf16.msra.mxu1 %v5185_v32  ;;  %2382 = vmatpush1.bf16.msra.mxu0 %v5233_v44  ;;  %v5275_v32 = vld [vmem:[#allocation8 + $0x180] ss:$8 sps:$4 sm:$0xff]  }
 0x2a8   :  { %2342 = vmatprep.subr.bf16.mxu1 %v5190_v33  ;;  %2383 = vmatprep.subr.bf16.mxu0 %v5238_v45  ;;  %v1104_v33 = vld [vmem:[%s6210_s8] sm:$0xf] }
 0x2ab   :  { %2343 = vmatpush1.bf16.msra.mxu1 %v5188_v34  ;;  %2384 = vmatpush1.bf16.msra.mxu0 %v5236_v48  ;;  %v1109_v34 = vrot.slane %v1104_v33, %v6030_v39 }
 0x2ac   :  { %2344 = vmatprep.subr.bf16.mxu1 %v5193_v35  ;;  %2385 = vmatprep.subr.bf16.mxu0 %v5241_v49  ;;  %v1113_v35 = vrot.slane %v1104_v33, %v6036_v41 }
 0x2af   :  { %2345 = vmatpush1.bf16.msra.mxu1 %v5191_v36  ;;  %2386 = vmatpush1.bf16.msra.mxu0 %v5239_v52 }
 0x2b0   :  { %2346 = vmatprep.subr.bf16.mxu1 %v5196_v37  ;;  %2387 = vmatprep.subr.bf16.mxu0 %v5244_v53 }
 0x2b3   :  { %2347 = vmatpush1.bf16.msra.mxu1 %v5194_v42  ;;  %2388 = vmatpush1.bf16.msra.mxu0 %v5242_v56  ;;  %v1121_v56 = vrot.slane %v1104_v33, %v6047_v61 }
 0x2b4   :  { %2348 = vmatprep.subr.bf16.mxu1 %v5199_v25  ;;  %2389 = vmatprep.subr.bf16.mxu0 %v5247_v57 }
 0x2b7   :  { %2349 = vmatpush1.bf16.msra.mxu1 %v5197_v46  ;;  %2390 = vmatpush1.bf16.msra.mxu0 %v5245_v62 }
 0x2b8   :  { %2350 = vmatprep.subr.bf16.mxu1 %v5202_v47  ;;  %2391 = vmatprep.subr.bf16.mxu0 %v5250_v63 }
 0x2bb   :  { %2351 = vmatpush1.bf16.msra.mxu1 %v5200_v50  ;;  %2392 = vmatpush1.bf16.msra.mxu0 %v5248_v2 }
 0x2bc   :  { %2352 = vmatprep.subr.bf16.mxu1 %v5205_v51  ;;  %2393 = vmatprep.subr.bf16.mxu0 %v5253_v3 }
 0x2bf   :  { %2353 = vmatpush1.bf16.msra.mxu1 %v5203_v54  ;;  %2394 = vmatpush1.bf16.msra.mxu0 %v5251_v6 }
 0x2c0   :  { %2354 = vmatprep.subr.bf16.mxu1 %v5208_v55  ;;  %2395 = vmatprep.subr.bf16.mxu0 %v5256_v7  ;;  %v1117_v55 = vrot.slane %v1104_v33, %v6041_v59 }
 0x2c3   :  { %2355 = vmatpush2.bf16.msra.mxu1 %v5206_v58  ;;  %2396 = vmatpush2.bf16.msra.mxu0 %v5254_v10 }
 0x2c4   :  { %2356 = vmatprep.subr.bf16.mxu1 %v5211_v60  ;;  %2397 = vmatprep.subr.bf16.mxu0 %v5259_v11 }
 0x2c7   :  { %2357 = vmatpush2.bf16.msra.mxu1 %v5209_v0  ;;  %2398 = vmatpush2.bf16.msra.mxu0 %v5257_v13  ;;  %v5279_v13 = vld [vmem:[#allocation10 + $0x38] sm:$0xff]  }
 0x2c8   :  { %2358 = vmatprep.subr.bf16.mxu1 %v5214_v1  ;;  %2399 = vmatprep.subr.bf16.mxu0 %v5262_v14  ;;  %v5280_v14 = vld [vmem:[#allocation10 + $0x70] sm:$0xff]  }
 0x2cb   :  { %2359 = vmatpush2.bf16.msra.mxu1 %v5212_v4  ;;  %2400 = vmatpush2.bf16.msra.mxu0 %v5260_v17  ;;  %v5283_v17 = vld [vmem:[#allocation10 + $0x28] sm:$0xff]  }
 0x2cc   :  { %2360 = vmatprep.subr.bf16.mxu1 %v5217_v5  ;;  %2401 = vmatprep.subr.bf16.mxu0 %v5265_v18  ;;  %v5284_v18 = vld [vmem:[#allocation10 + $0x60] sm:$0xff]  }
 0x2cf   :  { %2361 = vmatpush2.bf16.msra.mxu1 %v5215_v8  ;;  %2402 = vmatpush2.bf16.msra.mxu0 %v5263_v21  ;;  %v5287_v21 = vld [vmem:[#allocation10 + $0x18] sm:$0xff]  }
 0x2d0   :  { %2362 = vmatprep.subr.bf16.mxu1 %v5220_v9  ;;  %2403 = vmatprep.subr.bf16.mxu0 %v5268_v22  ;;  %v5288_v22 = vld [vmem:[#allocation10 + $0x50] sm:$0xff]  }
 0x2d3   :  { %2363 = vmatpush2.bf16.msra.mxu1 %v5218_v38  ;;  %2404 = vmatpush2.bf16.msra.mxu0 %v5266_v24  ;;  %v5290_v24 = vld [vmem:[#allocation10 + $0x48] sm:$0xff]  }
 0x2d4   :  { %2364 = vmatprep.subr.bf16.mxu1 %v5223_v12  ;;  %2405 = vmatprep.subr.bf16.mxu0 %v5271_v27  ;;  %v5278_v12 = vld [vmem:[#allocation10 + $0x78] sm:$0xff]   ;;  %v5291_v27 = vld [vmem:[#allocation10 + $0x8] sm:$0xff]  }
 0x2d7   :  { %2365 = vmatpush2.bf16.msra.mxu1 %v5221_v15  ;;  %2406 = vmatpush2.bf16.msra.mxu0 %v5269_v28  ;;  %v5281_v15 = vld [vmem:[#allocation10 + $0x30] sm:$0xff]   ;;  %v5292_v28 = vld [vmem:[#allocation10 + $0x40] sm:$0xff]  }
 0x2d8   :  { %2366 = vmatprep.subr.bf16.mxu1 %v5226_v16  ;;  %2407 = vmatprep.subr.bf16.mxu0 %v5274_v29  ;;  %v5282_v16 = vld [vmem:[#allocation10 + $0x68] sm:$0xff]   ;;  %v5293_v29 = vld [vmem:[#allocation10] sm:$0xff]  }
 0x2db   :  { %2367 = vmatpush2.bf16.msra.mxu1 %v5224_v19  ;;  %2408 = vmatpush2.bf16.msra.mxu0 %v5272_v30  ;;  %v5285_v19 = vld [vmem:[#allocation10 + $0x20] sm:$0xff]   ;;  %v5824_v30 = vmov 0.0  }
 0x2dc   :  { %2368 = vmatprep.subr.bf16.mxu1 %v5229_v20  ;;  %2409 = vmatprep.subr.bf16.mxu0 %v5277_v31  ;;  %v5286_v20 = vld [vmem:[#allocation10 + $0x58] sm:$0xff]  }
 0x2df   :  { %2369 = vmatpush2.bf16.msra.mxu1 %v5227_v23  ;;  %2410 = vmatpush2.bf16.msra.mxu0 %v5275_v32  ;;  %v5289_v23 = vld [vmem:[#allocation10 + $0x10] sm:$0xff]  }
 0x2e0   :  { %4744 = vmatprep.subr.bf16.mxu1 %v5278_v12  ;;  %v5306_v12 = vld [vmem:[#allocation11 + $0x18] sm:$0xff]  }
 0x322   :  { %v1800_v36 = vpop.f32.mrf.mxu1  ;;  %v1841_v37 = vpop.f32.mrf.mxu0 }
 0x323   :  { %v1801_v40 = vadd.f32 %v1800_v36, %v1109_v34 }
 0x324   :  { %v1802_v42 = vpop.f32.mrf.mxu1  ;;  %v1843_v43 = vpop.f32.mrf.mxu0 }
 0x325   :  { %v1842_v25 = vadd.f32 %v1841_v37, %v1801_v40  ;;  %v1803_v26 = vadd.f32 %v1802_v42, %v1113_v35  ;;  %v2006_v35 = vld [vmem:[%s6211_s2] sm:$0x3]  ;;  %s6212_s2 = sld [smem:[#allocation28_spill]] }
 0x326   :  { %v1804_v44 = vpop.f32.mrf.mxu1  ;;  %v1845_v45 = vpop.f32.mrf.mxu0  ;;  %v2011_v36 = vrot.slane %v2006_v35, %v6030_v39  ;;  %v2015_v37 = vrot.slane %v2006_v35, %v6036_v41  ;;  %v5324_v35 = vld [vmem:[#allocation13 + $0x34] ss:$8 sps:$4 sm:$0xff]  }
 0x327   :  { %v1930_v46 = vmul.f32 0.2, %v1842_v25  ;;  %v1844_v47 = vadd.f32 %v1843_v43, %v1803_v26 }
 0x328   :  { %v1805_v48 = vpop.f32.mrf.mxu1  ;;  %v1846_v49 = vpop.f32.mrf.mxu0 }
 0x329   :  { %v1931_v50 = vmul.f32 0.2, %v1844_v47  ;;  %v1934_v51 = vmax.f32 %v1842_v25, %v1930_v46 }
 0x32b   :  { %v1935_v52 = vmax.f32 %v1844_v47, %v1931_v50  ;;  %v1938_v54 = vpack.c.bf16 %v1934_v51, %v1934_v51 }
 0x32d   :  { %v1939_v53 = vpack.c.bf16 %v1935_v52, %v1935_v52  ;;  %v5294_v52 = vld [vmem:[%s6169_s12 + $0x38] sm:$0xff]  }
 0x32f   :  { %2370 = vmatprep.mubr.bf16.mxu1 %v1939_v53 }
 0x330   :  { %2371 = vmatmul.mubr.bf16.vlgmr.msra.gmra.mxu1 %v1938_v54  ;;  %v5295_v54 = vld [vmem:[%s6169_s12 + $0x30] sm:$0xff]  }
 0x331   :  { %4745 = vmatpush3.bf16.msra.mxu1 %v5279_v13  ;;  %v5307_v13 = vld [vmem:[#allocation11 + $0x10] sm:$0xff]  }
 0x332   :  { %4746 = vmatprep.subr.bf16.mxu1 %v5280_v14  ;;  %v5308_v14 = vld [vmem:[#allocation11 + $0x8] sm:$0xff]  }
 0x335   :  { %4747 = vmatpush3.bf16.msra.mxu1 %v5281_v15  ;;  %v5309_v15 = vld [vmem:[#allocation11] sm:$0xff]  }
 0x336   :  { %4748 = vmatprep.subr.bf16.mxu1 %v5282_v16  ;;  %v5312_v16 = vld [vmem:[#allocation13 + $0x74] ss:$8 sps:$4 sm:$0xff]  }
 0x339   :  { %4749 = vmatpush3.bf16.msra.mxu1 %v5283_v17  ;;  %v4550_v17 = vld [vmem:[%s6170_s13] ss:$0 sm:$0xff] }
 0x33a   :  { %4750 = vmatprep.subr.bf16.mxu1 %v5284_v18 }
 0x33d   :  { %4751 = vmatpush3.bf16.msra.mxu1 %v5285_v19  ;;  %v2716_v19 = vld [vmem:[%s6212_s2] sm:$0xff] }
 0x33e   :  { %4752 = vmatprep.subr.bf16.mxu1 %v5286_v20 }
 0x341   :  { %4753 = vmatpush3.bf16.msra.mxu1 %v5287_v21 }
 0x342   :  { %4754 = vmatprep.subr.bf16.mxu1 %v5288_v22 }
 0x345   :  { %4755 = vmatpush3.bf16.msra.mxu1 %v5289_v23 }
 0x346   :  { %4756 = vmatprep.subr.bf16.mxu1 %v5290_v24  ;;  %v5310_v24 = vld [vmem:[#allocation13 + $0x70] ss:$8 sps:$4 sm:$0xff]  }
 0x349   :  { %4757 = vmatpush3.bf16.msra.mxu1 %v5291_v27 }
 0x34a   :  { %4758 = vmatprep.subr.bf16.mxu1 %v5292_v28  ;;  %v5315_v28 = vld [vmem:[#allocation13 + $0x64] ss:$8 sps:$4 sm:$0xff]  }
 0x34d   :  { %4759 = vmatpush3.bf16.msra.mxu1 %v5293_v29 }
 0x34e   :  { %4784 = vmatprep.subr.bf16.mxu1 %v5824_v30 }
 0x362   :  { %v1882_v57 = vpop.f32.mrf.mxu1  ;;  %v1923_v58 = vpop.f32.mrf.mxu0 }
 0x363   :  { %v1883_v60 = vadd.f32 %v1882_v57, %v1117_v55  ;;  %v5296_v55 = vld [vmem:[%s6169_s12 + $0x28] sm:$0xff]   ;;  %v5298_v57 = vld [vmem:[%s6169_s12 + $0x18] sm:$0xff]  }
 0x364   :  { %v1884_v62 = vpop.f32.mrf.mxu1  ;;  %v1925_v63 = vpop.f32.mrf.mxu0 }
 0x365   :  { %v1924_v0 = vadd.f32 %v1923_v58, %v1883_v60  ;;  %v1885_v1 = vadd.f32 %v1884_v62, %v1121_v56  ;;  %v5297_v56 = vld [vmem:[%s6169_s12 + $0x20] sm:$0xff]   ;;  %v5299_v58 = vld [vmem:[%s6169_s12 + $0x10] sm:$0xff]   ;;  %v5300_v60 = vld [vmem:[%s6169_s12 + $0x8] sm:$0xff]  }
 0x366   :  { %v1886_v2 = vpop.f32.mrf.mxu1  ;;  %v1927_v3 = vpop.f32.mrf.mxu0  ;;  %v5301_v62 = vld [vmem:[%s6169_s12] sm:$0xff]  }
 0x367   :  { %v1932_v4 = vmul.f32 0.2, %v1924_v0  ;;  %v1926_v5 = vadd.f32 %v1925_v63, %v1885_v1 }
 0x368   :  { %v1887_v6 = vpop.f32.mrf.mxu1  ;;  %v1928_v7 = vpop.f32.mrf.mxu0 }
 0x369   :  { %v1933_v8 = vmul.f32 0.2, %v1926_v5  ;;  %v1936_v9 = vmax.f32 %v1924_v0, %v1932_v4  ;;  %v4533_v0 = vld [vmem:[%s6168_s11] ss:$0 sm:$0xff] }
 0x36b   :  { %v1937_v10 = vmax.f32 %v1926_v5, %v1933_v8  ;;  %v1940_v38 = vpack.c.bf16 %v1936_v9, %v1936_v9  ;;  %v5302_v8 = vld [vmem:[#allocation11 + $0x38] sm:$0xff]  }
 0x36d   :  { %v1941_v11 = vpack.c.bf16 %v1937_v10, %v1937_v10  ;;  %v5303_v10 = vld [vmem:[#allocation11 + $0x30] sm:$0xff]  }
 0x36f   :  { %2411 = vmatprep.mubr.bf16.mxu0 %v1941_v11  ;;  %v5304_v11 = vld [vmem:[#allocation11 + $0x28] sm:$0xff]  }
 0x370   :  { %2412 = vmatmul.mubr.bf16.vlgmr.msra.gmra.mxu0 %v1940_v38  ;;  %v5305_v38 = vld [vmem:[#allocation11 + $0x20] sm:$0xff]  }
 0x3f0   :  { %v2372_v31 = vpop.f32.mrf.mxu1 }
 0x3f1   :  { %v2373_v40 = vadd.f32 %v2372_v31, %v2011_v36  ;;  %v5318_v31 = vld [vmem:[#allocation13 + $0x54] ss:$8 sps:$4 sm:$0xff]   ;;  %v5322_v36 = vld [vmem:[#allocation13 + $0x30] ss:$8 sps:$4 sm:$0xff]  }
 0x3f2   :  { %v2374_v32 = vpop.f32.mrf.mxu1 }
 0x3f3   :  { %v2375_v43 = vadd.f32 %v2374_v32, %v2015_v37  ;;  %v5316_v32 = vld [vmem:[#allocation13 + $0x50] ss:$8 sps:$4 sm:$0xff]   ;;  %v5327_v37 = vld [vmem:[#allocation13 + $0x24] ss:$8 sps:$4 sm:$0xff]  }
 0x3f4   :  { %v2376_v33 = vpop.f32.mrf.mxu1 }
 0x3f5   :  { %v5321_v33 = vld [vmem:[#allocation13 + $0x44] ss:$8 sps:$4 sm:$0xff]  }
 0x3f6   :  { %v2377_v34 = vpop.f32.mrf.mxu1 }
 0x3f7   :  { %v5319_v34 = vld [vmem:[#allocation13 + $0x40] ss:$8 sps:$4 sm:$0xff]  }
 0x430   :  { %v2413_v42 = vpop.f32.mrf.mxu0 }
 0x431   :  { %v2414_v25 = vadd.f32 %v2413_v42, %v2373_v40  ;;  %v5325_v40 = vld [vmem:[#allocation13 + $0x20] ss:$8 sps:$4 sm:$0xff]   ;;  %v5330_v42 = vld [vmem:[#allocation13 + $0x14] ss:$8 sps:$4 sm:$0xff]  }
 0x432   :  { %v2415_v26 = vpop.f32.mrf.mxu0 }
 0x433   :  { %v2420_v44 = vmul.f32 0.2, %v2414_v25  ;;  %v2416_v45 = vadd.f32 %v2415_v26, %v2375_v43  ;;  %v5328_v43 = vld [vmem:[#allocation13 + $0x10] ss:$8 sps:$4 sm:$0xff]   ;;  %v5331_v26 = vld [vmem:[#allocation13] ss:$8 sps:$4 sm:$0xff]  }
 0x434   :  { %v2417_v46 = vpop.f32.mrf.mxu0 }
 0x435   :  { %v2421_v47 = vmul.f32 0.2, %v2416_v45  ;;  %v2422_v48 = vmax.f32 %v2414_v25, %v2420_v44  ;;  %v5333_v25 = vld [vmem:[#allocation13 + $0x4] ss:$8 sps:$4 sm:$0xff]   ;;  %v5826_v44 = vmov 0  }
 0x436   :  { %v2418_v49 = vpop.f32.mrf.mxu0  ;;  %v5336_v46 = vld [vmem:[#allocation14 + $0xe4] ss:$16 sps:$4 sm:$0xff]  }
 0x437   :  { %v2423_v50 = vmax.f32 %v2416_v45, %v2421_v47  ;;  %v2424_v53 = vpack.c.bf16 %v2422_v48, %v2422_v48  ;;  %v5334_v45 = vld [vmem:[#allocation14 + $0xe0] ss:$16 sps:$4 sm:$0xff]   ;;  %v5339_v47 = vld [vmem:[#allocation14 + $0xec] ss:$16 sps:$4 sm:$0xff]   ;;  %v5342_v48 = vld [vmem:[#allocation14 + $0xc4] ss:$16 sps:$4 sm:$0xff]   ;;  %3394 = vmatprep.subr.bf16.mxu0 %v5336_v46 }
 0x438   :  { %3395 = vmatpush1.bf16.msra.mxu0 %v5334_v45  ;;  %v5340_v49 = vld [vmem:[#allocation14 + $0xc0] ss:$16 sps:$4 sm:$0xff]   ;;  %v5409_v45 = vld [vmem:[#allocation14 + $0x168] ss:$16 sps:$4 sm:$0xff]   ;;  %v5414_v46 = vld [vmem:[#allocation14 + $0x144] ss:$16 sps:$4 sm:$0xff]  }
 0x439   :  { %v2425_v51 = vpack.c.bf16 %v2423_v50, %v2423_v50  ;;  %3396 = vmatprep.subr.bf16.mxu0 %v5342_v48  ;;  %v5348_v50 = vld [vmem:[#allocation14 + $0xa4] ss:$16 sps:$4 sm:$0xff]   ;;  %v5412_v48 = vld [vmem:[#allocation14 + $0x140] ss:$16 sps:$4 sm:$0xff]  }
 0x43b   :  { %2593 = vmatprep.mubr.bf16.mxu1 %v2425_v51  ;;  %v5346_v51 = vld [vmem:[#allocation14 + $0xa0] ss:$16 sps:$4 sm:$0xff]  }
 0x43c   :  { %2594 = vmatmul.mubr.bf16.vlgmr.msra.gmra.mxu1 %v2424_v53  ;;  %3397 = vmatpush1.bf16.msra.mxu0 %v5340_v49  ;;  %v5352_v53 = vld [vmem:[#allocation14 + $0x80] ss:$16 sps:$4 sm:$0xff]   ;;  %v5415_v49 = vld [vmem:[#allocation14 + $0x148] ss:$16 sps:$4 sm:$0xff]  }
 0x43d   :  { %4785 = vmatpush3.bf16.msra.mxu1 %v5294_v52  ;;  %4800 = vmatprep.mubr.msk.bf16.mxu1 %vm5825_vm0, %v5824_v30  ;;  %v5354_v52 = vld [vmem:[#allocation14 + $0x84] ss:$16 sps:$4 sm:$0xff]  }
 0x43e   :  { %4786 = vmatprep.subr.bf16.mxu1 %v5824_v30  ;;  %3398 = vmatprep.subr.bf16.mxu0 %v5348_v50  ;;  %v5420_v50 = vld [vmem:[#allocation14 + $0x124] ss:$16 sps:$4 sm:$0xff]  }
 0x440   :  { %3399 = vmatpush1.bf16.msra.mxu0 %v5346_v51  ;;  %v5423_v51 = vld [vmem:[#allocation14 + $0x12c] ss:$16 sps:$4 sm:$0xff]  }
 0x441   :  { %4787 = vmatpush3.bf16.msra.mxu1 %v5295_v54  ;;  %3400 = vmatprep.subr.bf16.mxu0 %v5354_v52  ;;  %v5360_v54 = vld [vmem:[#allocation14 + $0x64] ss:$16 sps:$4 sm:$0xff]   ;;  %v5418_v52 = vld [vmem:[#allocation14 + $0x120] ss:$16 sps:$4 sm:$0xff]  }
 0x442   :  { %4788 = vmatprep.subr.bf16.mxu1 %v5824_v30 }
 0x444   :  { %3401 = vmatpush1.bf16.msra.mxu0 %v5352_v53  ;;  %v5421_v53 = vld [vmem:[#allocation14 + $0x128] ss:$16 sps:$4 sm:$0xff]  }
 0x445   :  { %4789 = vmatpush3.bf16.msra.mxu1 %v5296_v55  ;;  %v5358_v55 = vld [vmem:[#allocation14 + $0x60] ss:$16 sps:$4 sm:$0xff]   ;;  %3402 = vmatprep.subr.bf16.mxu0 %v5360_v54  ;;  %v5426_v54 = vld [vmem:[#allocation14 + $0x104] ss:$16 sps:$4 sm:$0xff]  }
 0x446   :  { %4790 = vmatprep.subr.bf16.mxu1 %v5824_v30 }
 0x448   :  { %3403 = vmatpush1.bf16.msra.mxu0 %v5358_v55  ;;  %v5429_v55 = vld [vmem:[#allocation14 + $0x10c] ss:$16 sps:$4 sm:$0xff]  }
 0x449   :  { %4791 = vmatpush3.bf16.msra.mxu1 %v5297_v56  ;;  %v5366_v56 = vld [vmem:[#allocation14 + $0x44] ss:$16 sps:$4 sm:$0xff]  }
 0x44a   :  { %4792 = vmatprep.subr.bf16.mxu1 %v5824_v30  ;;  %3404 = vmatprep.subr.bf16.mxu0 %v5366_v56  ;;  %v5424_v56 = vld [vmem:[#allocation14 + $0x100] ss:$16 sps:$4 sm:$0xff]  }
 0x44d   :  { %4793 = vmatpush3.bf16.msra.mxu1 %v5298_v57  ;;  %v5364_v57 = vld [vmem:[#allocation14 + $0x40] ss:$16 sps:$4 sm:$0xff]  }
 0x44e   :  { %4794 = vmatprep.subr.bf16.mxu1 %v5824_v30  ;;  %3405 = vmatpush1.bf16.msra.mxu0 %v5364_v57  ;;  %v5427_v57 = vld [vmem:[#allocation14 + $0x108] ss:$16 sps:$4 sm:$0xff]  }
 0x451   :  { %4795 = vmatpush3.bf16.msra.mxu1 %v5299_v58  ;;  %v5372_v58 = vld [vmem:[#allocation14 + $0x24] ss:$16 sps:$4 sm:$0xff]  }
 0x452   :  { %4796 = vmatprep.subr.bf16.mxu1 %v5824_v30  ;;  %3406 = vmatprep.subr.bf16.mxu0 %v5372_v58  ;;  %v5432_v58 = vld [vmem:[#allocation16 + $0x74] ss:$8 sps:$4 sm:$0xff]  }
 0x455   :  { %4797 = vmatpush3.bf16.msra.mxu1 %v5300_v60  ;;  %v5370_v60 = vld [vmem:[#allocation14 + $0x20] ss:$16 sps:$4 sm:$0xff]  }
 0x456   :  { %4798 = vmatprep.subr.bf16.mxu1 %v5824_v30  ;;  %3407 = vmatpush1.bf16.msra.mxu0 %v5370_v60  ;;  %v5435_v60 = vld [vmem:[#allocation16 + $0x174] ss:$8 sps:$4 sm:$0xff]  }
 0x459   :  { %4799 = vmatpush3.bf16.msra.mxu1 %v5301_v62  ;;  %v5378_v62 = vld [vmem:[#allocation14 + $0x4] ss:$16 sps:$4 sm:$0xff]  }
 0x45a   :  { %4804 = vmatprep.subr.bf16.mxu1 %v5824_v30  ;;  %3408 = vmatprep.subr.bf16.mxu0 %v5378_v62  ;;  %v2849_v62 = vld [vmem:[%s6174_s17] sm:$0x3] }
 0x4fc   :  { %v4760_v63 = vpop.f32.mrf.mxu1 }
 0x4fe   :  { %v4761_v1 = vpop.f32.mrf.mxu1 }
 0x4ff   :  { %v4762_v2 = vadd.f32 %v4761_v1, %v4760_v63  ;;  %v5376_v63 = vld [vmem:[#allocation14] ss:$16 sps:$4 sm:$0xff]  }
 0x500   :  { %v4763_v3 = vpop.f32.mrf.mxu1  ;;  %3409 = vmatpush1.bf16.msra.mxu0 %v5376_v63  ;;  %v5382_v1 = vld [vmem:[#allocation14 + $0x1e0] ss:$16 sps:$4 sm:$0xff]   ;;  %v2854_v63 = vrot.slane %v2849_v62, %v6030_v39 }
 0x501   :  { %v2596_v4 = vadd.f32 %v4762_v2, %v4533_v0  ;;  %v5384_v0 = vld [vmem:[#allocation14 + $0x1e4] ss:$16 sps:$4 sm:$0xff]   ;;  %v5388_v3 = vld [vmem:[#allocation14 + $0x1c0] ss:$16 sps:$4 sm:$0xff]  }
 0x502   :  { %v4764_v5 = vpop.f32.mrf.mxu1  ;;  %3410 = vmatprep.subr.bf16.mxu0 %v5384_v0  ;;  %v5390_v2 = vld [vmem:[#allocation14 + $0x1c4] ss:$16 sps:$4 sm:$0xff]   ;;  %v2858_v0 = vrot.slane %v2849_v62, %v6036_v41  ;;  %v5499_v62 = vld [vmem:[#allocation16 + $0x1c0] ss:$8 sps:$4 sm:$0xff]  }
 0x503   :  { %v2601_v6 = vmul.f32 0.2, %v2596_v4  ;;  %v5394_v5 = vld [vmem:[#allocation14 + $0x1a0] ss:$16 sps:$4 sm:$0xff]  }
 0x504   :  { %3411 = vmatpush2.bf16.msra.mxu0 %v5382_v1 }
 0x505   :  { %v2602_v7 = vmax.f32 %v2596_v4, %v2601_v6  ;;  %3412 = vmatprep.subr.bf16.mxu0 %v5390_v2  ;;  %v5396_v4 = vld [vmem:[#allocation14 + $0x1a4] ss:$16 sps:$4 sm:$0xff]  }
 0x506   :  { %v5402_v6 = vld [vmem:[#allocation14 + $0x184] ss:$16 sps:$4 sm:$0xff]  }
 0x507   :  { %v2603_v9 = vpack.c.bf16 %v2602_v7, %v2602_v7  ;;  %v5400_v7 = vld [vmem:[#allocation14 + $0x180] ss:$16 sps:$4 sm:$0xff]  }
 0x508   :  { %3413 = vmatpush2.bf16.msra.mxu0 %v5388_v3 }
 0x509   :  { %4801 = vmatmul.mubr.bf16.vlgmr.msra.gmra.mxu1 %v2603_v9  ;;  %3414 = vmatprep.subr.bf16.mxu0 %v5396_v4  ;;  %v5406_v9 = vld [vmem:[#allocation14 + $0x160] ss:$16 sps:$4 sm:$0xff]  }
 0x50a   :  { %4805 = vmatpush3.bf16.msra.mxu1 %v5302_v8  ;;  %4820 = vmatprep.mubr.msk.bf16.mxu1 %vm5825_vm0, %v5824_v30  ;;  %v5408_v8 = vld [vmem:[#allocation14 + $0x164] ss:$16 sps:$4 sm:$0xff]  }
 0x50b   :  { %4806 = vmatprep.subr.bf16.mxu1 %v5824_v30 }
 0x50c   :  { %3415 = vmatpush2.bf16.msra.mxu0 %v5394_v5 }
 0x50d   :  { %3416 = vmatprep.subr.bf16.mxu0 %v5402_v6 }
 0x50e   :  { %4807 = vmatpush3.bf16.msra.mxu1 %v5303_v10  ;;  %v4559_v10 = vld [vmem:[%s6172_s15] ss:$0 sm:$0xff] }
 0x50f   :  { %4808 = vmatprep.subr.bf16.mxu1 %v5824_v30 }
 0x510   :  { %3417 = vmatpush2.bf16.msra.mxu0 %v5400_v7 }
 0x511   :  { %3418 = vmatprep.subr.bf16.mxu0 %v5408_v8 }
 0x512   :  { %4809 = vmatpush3.bf16.msra.mxu1 %v5304_v11 }
 0x513   :  { %4810 = vmatprep.subr.bf16.mxu1 %v5824_v30 }
 0x514   :  { %3419 = vmatpush2.bf16.msra.mxu0 %v5406_v9 }
 0x515   :  { %3420 = vmatprep.subr.bf16.mxu0 %v5414_v46  ;;  %v5483_v46 = vld [vmem:[#allocation16 + $0x1f4] ss:$8 sps:$4 sm:$0xff]  }
 0x516   :  { %4811 = vmatpush3.bf16.msra.mxu1 %v5305_v38 }
 0x517   :  { %4812 = vmatprep.subr.bf16.mxu1 %v5824_v30 }
 0x518   :  { %3421 = vmatpush2.bf16.msra.mxu0 %v5412_v48  ;;  %v5481_v48 = vld [vmem:[#allocation16 + $0x1f0] ss:$8 sps:$4 sm:$0xff]  }
 0x519   :  { %3422 = vmatprep.subr.bf16.mxu0 %v5420_v50  ;;  %v5489_v50 = vld [vmem:[#allocation16 + $0x1e4] ss:$8 sps:$4 sm:$0xff]  }
 0x51a   :  { %4813 = vmatpush3.bf16.msra.mxu1 %v5306_v12 }
 0x51b   :  { %4814 = vmatprep.subr.bf16.mxu1 %v5824_v30 }
 0x51c   :  { %3423 = vmatpush2.bf16.msra.mxu0 %v5418_v52  ;;  %v5487_v52 = vld [vmem:[#allocation16 + $0x1e0] ss:$8 sps:$4 sm:$0xff]  }
 0x51d   :  { %3424 = vmatprep.subr.bf16.mxu0 %v5426_v54  ;;  %v5495_v54 = vld [vmem:[#allocation16 + $0x1d4] ss:$8 sps:$4 sm:$0xff]  }
 0x51e   :  { %4815 = vmatpush3.bf16.msra.mxu1 %v5307_v13 }
 0x51f   :  { %4816 = vmatprep.subr.bf16.mxu1 %v5824_v30 }
 0x520   :  { %3425 = vmatpush2.bf16.msra.mxu0 %v5424_v56  ;;  %v5493_v56 = vld [vmem:[#allocation16 + $0x1d0] ss:$8 sps:$4 sm:$0xff]  }
 0x521   :  { %3884 = vmatprep.subr.bf16.mxu0 %v5432_v58  ;;  %v5501_v58 = vld [vmem:[#allocation16 + $0x1c4] ss:$8 sps:$4 sm:$0xff]  }
 0x522   :  { %4817 = vmatpush3.bf16.msra.mxu1 %v5308_v14 }
 0x523   :  { %4818 = vmatprep.subr.bf16.mxu1 %v5824_v30  ;;  %v5313_v30 = vld [vmem:[#allocation13 + $0x60] ss:$8 sps:$4 sm:$0xff]  }
 0x526   :  { %4819 = vmatpush3.bf16.msra.mxu1 %v5309_v15 }
 0x527   :  { %2941 = vmatprep.subr.bf16.mxu1 %v5312_v16 }
 0x5c9   :  { %v2709_v18 = vpop.f32.mrf.mxu1 }
 0x5ca   :  { %v2710_v20 = vadd.f32 %v4550_v17, %v2709_v18  ;;  %v5337_v17 = vld [vmem:[#allocation14 + $0xe8] ss:$16 sps:$4 sm:$0xff]  }
 0x5cb   :  { %v4802_v21 = vpop.f32.mrf.mxu1 }
 0x5cc   :  { %2715 = vst [vmem:[%s6182_s25] sm:$0xff] %v2710_v20  ;;  %v2717_v22 = vmul.f32 %v2716_v19, %v2710_v20  ;;  %v5345_v19 = vld [vmem:[#allocation14 + $0xcc] ss:$16 sps:$4 sm:$0xff]   ;;  %v5343_v20 = vld [vmem:[#allocation14 + $0xc8] ss:$16 sps:$4 sm:$0xff]  }
 0x5cd   :  { %v2712_v23 = vpop.f32.mrf.mxu1  ;;  %v5351_v21 = vld [vmem:[#allocation14 + $0xac] ss:$16 sps:$4 sm:$0xff]  }
 0x5ce   :  { %v2718_v27 = vpack.c.bf16 %v2717_v22, %v2717_v22  ;;  %v5349_v22 = vld [vmem:[#allocation14 + $0xa8] ss:$16 sps:$4 sm:$0xff]   ;;  %v5357_v23 = vld [vmem:[#allocation14 + $0x8c] ss:$16 sps:$4 sm:$0xff]  }
 0x5cf   :  { %v4803_v29 = vpop.f32.mrf.mxu1 }
 0x5d0   :  { %4821 = vmatmul.mubr.bf16.vlgmr.msra.gmra.mxu1 %v2718_v27  ;;  %v5363_v27 = vld [vmem:[#allocation14 + $0x6c] ss:$16 sps:$4 sm:$0xff]  }
 0x5d1   :  { %2942 = vmatpush1.bf16.msra.mxu1 %v5310_v24  ;;  %2973 = vmatprep.mubr.bf16.mxu1 %v5826_v44  ;;  %v5355_v24 = vld [vmem:[#allocation14 + $0x88] ss:$16 sps:$4 sm:$0xff]   ;;  %v5369_v29 = vld [vmem:[#allocation14 + $0x4c] ss:$16 sps:$4 sm:$0xff]  }
 0x5d2   :  { %2943 = vmatprep.subr.bf16.mxu1 %v5315_v28  ;;  %v5361_v28 = vld [vmem:[#allocation14 + $0x68] ss:$16 sps:$4 sm:$0xff]   ;;  %v5411_v44 = vld [vmem:[#allocation14 + $0x16c] ss:$16 sps:$4 sm:$0xff]  }
 0x5d5   :  { %2944 = vmatpush1.bf16.msra.mxu1 %v5313_v30  ;;  %v5367_v30 = vld [vmem:[#allocation14 + $0x48] ss:$16 sps:$4 sm:$0xff]  }
 0x5d6   :  { %2945 = vmatprep.subr.bf16.mxu1 %v5318_v31  ;;  %v5375_v31 = vld [vmem:[#allocation14 + $0x2c] ss:$16 sps:$4 sm:$0xff]  }
 0x5d9   :  { %2946 = vmatpush1.bf16.msra.mxu1 %v5316_v32  ;;  %v5373_v32 = vld [vmem:[#allocation14 + $0x28] ss:$16 sps:$4 sm:$0xff]  }
 0x5da   :  { %2947 = vmatprep.subr.bf16.mxu1 %v5321_v33  ;;  %v5381_v33 = vld [vmem:[#allocation14 + $0xc] ss:$16 sps:$4 sm:$0xff]  }
 0x5dd   :  { %2948 = vmatpush1.bf16.msra.mxu1 %v5319_v34  ;;  %v5379_v34 = vld [vmem:[#allocation14 + $0x8] ss:$16 sps:$4 sm:$0xff]  }
 0x5de   :  { %2949 = vmatprep.subr.bf16.mxu1 %v5324_v35  ;;  %v5387_v35 = vld [vmem:[#allocation14 + $0x1ec] ss:$16 sps:$4 sm:$0xff]  }
 0x5e1   :  { %2950 = vmatpush1.bf16.msra.mxu1 %v5322_v36  ;;  %v5385_v36 = vld [vmem:[#allocation14 + $0x1e8] ss:$16 sps:$4 sm:$0xff]  }
 0x5e2   :  { %2951 = vmatprep.subr.bf16.mxu1 %v5327_v37  ;;  %v5393_v37 = vld [vmem:[#allocation14 + $0x1cc] ss:$16 sps:$4 sm:$0xff]  }
 0x5e5   :  { %2952 = vmatpush1.bf16.msra.mxu1 %v5325_v40  ;;  %v5391_v40 = vld [vmem:[#allocation14 + $0x1c8] ss:$16 sps:$4 sm:$0xff]  }
 0x5e6   :  { %2953 = vmatprep.subr.bf16.mxu1 %v5330_v42  ;;  %v5399_v42 = vld [vmem:[#allocation14 + $0x1ac] ss:$16 sps:$4 sm:$0xff]  }
 0x5e9   :  { %2954 = vmatpush1.bf16.msra.mxu1 %v5328_v43  ;;  %v5397_v43 = vld [vmem:[#allocation14 + $0x1a8] ss:$16 sps:$4 sm:$0xff]  }
 0x5ea   :  { %2955 = vmatprep.subr.bf16.mxu1 %v5333_v25  ;;  %v5405_v25 = vld [vmem:[#allocation14 + $0x18c] ss:$16 sps:$4 sm:$0xff]  }
 0x5ed   :  { %2956 = vmatpush1.bf16.msra.mxu1 %v5331_v26  ;;  %v5403_v26 = vld [vmem:[#allocation14 + $0x188] ss:$16 sps:$4 sm:$0xff]  }
 0x5ee   :  { %3435 = vmatprep.subr.bf16.mxu1 %v5339_v47  ;;  %v5417_v47 = vld [vmem:[#allocation14 + $0x14c] ss:$16 sps:$4 sm:$0xff]  }
 0x690   :  { %v2824_v11 = vpop.f32.mrf.mxu1 }
 0x691   :  { %v2825_v38 = vadd.f32 %v4559_v10, %v2824_v11 }
 0x692   :  { %v4822_v12 = vpop.f32.mrf.mxu1 }
 0x693   :  { %v2830_v13 = vmul.f32 0.2, %v2825_v38  ;;  %v5433_v12 = vld [vmem:[#allocation16 + $0x170] ss:$8 sps:$4 sm:$0xff]  }
 0x694   :  { %v2827_v14 = vpop.f32.mrf.mxu1 }
 0x695   :  { %v2831_v15 = vmax.f32 %v2825_v38, %v2830_v13  ;;  %v5430_v38 = vld [vmem:[#allocation16 + $0x70] ss:$8 sps:$4 sm:$0xff]   ;;  %v5438_v14 = vld [vmem:[#allocation16 + $0x64] ss:$8 sps:$4 sm:$0xff]  }
 0x696   :  { %v4823_v16 = vpop.f32.mrf.mxu1 }
 0x697   :  { %v2832_v18 = vpack.c.bf16 %v2831_v15, %v2831_v15  ;;  %v5441_v15 = vld [vmem:[#allocation16 + $0x164] ss:$8 sps:$4 sm:$0xff]   ;;  %v5436_v16 = vld [vmem:[#allocation16 + $0x60] ss:$8 sps:$4 sm:$0xff]  }
 0x699   :  { %2974 = vmatmul.mubr.bf16.vlgmr.msra.gmra.mxu1 %v2832_v18  ;;  %v5444_v18 = vld [vmem:[#allocation16 + $0x54] ss:$8 sps:$4 sm:$0xff]  }
 0x69a   :  { %3436 = vmatpush1.bf16.msra.mxu1 %v5337_v17  ;;  %v5439_v17 = vld [vmem:[#allocation16 + $0x160] ss:$8 sps:$4 sm:$0xff]  }
 0x69b   :  { %3437 = vmatprep.subr.bf16.mxu1 %v5345_v19  ;;  %v5447_v19 = vld [vmem:[#allocation16 + $0x154] ss:$8 sps:$4 sm:$0xff]  }
 0x69e   :  { %3438 = vmatpush1.bf16.msra.mxu1 %v5343_v20  ;;  %v5442_v20 = vld [vmem:[#allocation16 + $0x50] ss:$8 sps:$4 sm:$0xff]  }
 0x69f   :  { %3439 = vmatprep.subr.bf16.mxu1 %v5351_v21  ;;  %v5445_v21 = vld [vmem:[#allocation16 + $0x150] ss:$8 sps:$4 sm:$0xff]  }
 0x6a2   :  { %3440 = vmatpush1.bf16.msra.mxu1 %v5349_v22  ;;  %v5450_v22 = vld [vmem:[#allocation16 + $0x44] ss:$8 sps:$4 sm:$0xff]  }
 0x6a3   :  { %3441 = vmatprep.subr.bf16.mxu1 %v5357_v23  ;;  %v5453_v23 = vld [vmem:[#allocation16 + $0x144] ss:$8 sps:$4 sm:$0xff]  }
 0x6a6   :  { %3442 = vmatpush1.bf16.msra.mxu1 %v5355_v24  ;;  %v5448_v24 = vld [vmem:[#allocation16 + $0x40] ss:$8 sps:$4 sm:$0xff]  }
 0x6a7   :  { %3443 = vmatprep.subr.bf16.mxu1 %v5363_v27  ;;  %v5451_v27 = vld [vmem:[#allocation16 + $0x140] ss:$8 sps:$4 sm:$0xff]  }
 0x6aa   :  { %3444 = vmatpush1.bf16.msra.mxu1 %v5361_v28  ;;  %v5456_v28 = vld [vmem:[#allocation16 + $0x34] ss:$8 sps:$4 sm:$0xff]  }
 0x6ab   :  { %3445 = vmatprep.subr.bf16.mxu1 %v5369_v29  ;;  %v5459_v29 = vld [vmem:[#allocation16 + $0x134] ss:$8 sps:$4 sm:$0xff]  }
 0x6ae   :  { %3446 = vmatpush1.bf16.msra.mxu1 %v5367_v30  ;;  %v5454_v30 = vld [vmem:[#allocation16 + $0x30] ss:$8 sps:$4 sm:$0xff]  }
 0x6af   :  { %3447 = vmatprep.subr.bf16.mxu1 %v5375_v31  ;;  %v5457_v31 = vld [vmem:[#allocation16 + $0x130] ss:$8 sps:$4 sm:$0xff]  }
 0x6b2   :  { %3448 = vmatpush1.bf16.msra.mxu1 %v5373_v32  ;;  %v5462_v32 = vld [vmem:[#allocation16 + $0x24] ss:$8 sps:$4 sm:$0xff]  }
 0x6b3   :  { %3449 = vmatprep.subr.bf16.mxu1 %v5381_v33  ;;  %v5465_v33 = vld [vmem:[#allocation16 + $0x124] ss:$8 sps:$4 sm:$0xff]  }
 0x6b6   :  { %3450 = vmatpush1.bf16.msra.mxu1 %v5379_v34  ;;  %v5460_v34 = vld [vmem:[#allocation16 + $0x20] ss:$8 sps:$4 sm:$0xff]  }
 0x6b7   :  { %3451 = vmatprep.subr.bf16.mxu1 %v5387_v35  ;;  %v5463_v35 = vld [vmem:[#allocation16 + $0x120] ss:$8 sps:$4 sm:$0xff]  }
 0x6ba   :  { %3452 = vmatpush2.bf16.msra.mxu1 %v5385_v36  ;;  %v5468_v36 = vld [vmem:[#allocation16 + $0x14] ss:$8 sps:$4 sm:$0xff]  }
 0x6bb   :  { %3453 = vmatprep.subr.bf16.mxu1 %v5393_v37  ;;  %v5471_v37 = vld [vmem:[#allocation16 + $0x114] ss:$8 sps:$4 sm:$0xff]  }
 0x6be   :  { %3454 = vmatpush2.bf16.msra.mxu1 %v5391_v40  ;;  %v5466_v40 = vld [vmem:[#allocation16 + $0x10] ss:$8 sps:$4 sm:$0xff]  }
 0x6bf   :  { %3455 = vmatprep.subr.bf16.mxu1 %v5399_v42  ;;  %v5469_v42 = vld [vmem:[#allocation16 + $0x110] ss:$8 sps:$4 sm:$0xff]  }
 0x6c2   :  { %3456 = vmatpush2.bf16.msra.mxu1 %v5397_v43  ;;  %v5474_v43 = vld [vmem:[#allocation16 + $0x4] ss:$8 sps:$4 sm:$0xff]  }
 0x6c3   :  { %3457 = vmatprep.subr.bf16.mxu1 %v5405_v25  ;;  %v5477_v25 = vld [vmem:[#allocation16 + $0x104] ss:$8 sps:$4 sm:$0xff]  }
 0x6c6   :  { %3458 = vmatpush2.bf16.msra.mxu1 %v5403_v26  ;;  %v5472_v26 = vld [vmem:[#allocation16] ss:$8 sps:$4 sm:$0xff]  }
 0x6c7   :  { %3459 = vmatprep.subr.bf16.mxu1 %v5411_v44  ;;  %v5475_v44 = vld [vmem:[#allocation16 + $0x100] ss:$8 sps:$4 sm:$0xff]  }
 0x6ca   :  { %3460 = vmatpush2.bf16.msra.mxu1 %v5409_v45  ;;  %v5480_v45 = vld [vmem:[#allocation16 + $0xf4] ss:$8 sps:$4 sm:$0xff]  }
 0x6cb   :  { %3461 = vmatprep.subr.bf16.mxu1 %v5417_v47  ;;  %v5478_v47 = vld [vmem:[#allocation16 + $0xf0] ss:$8 sps:$4 sm:$0xff]  }
 0x6ce   :  { %3462 = vmatpush2.bf16.msra.mxu1 %v5415_v49  ;;  %v5486_v49 = vld [vmem:[#allocation16 + $0xe4] ss:$8 sps:$4 sm:$0xff]  }
 0x6cf   :  { %3463 = vmatprep.subr.bf16.mxu1 %v5423_v51  ;;  %v5484_v51 = vld [vmem:[#allocation16 + $0xe0] ss:$8 sps:$4 sm:$0xff]  }
 0x6d2   :  { %3464 = vmatpush2.bf16.msra.mxu1 %v5421_v53  ;;  %v5492_v53 = vld [vmem:[#allocation16 + $0xd4] ss:$8 sps:$4 sm:$0xff]  }
 0x6d3   :  { %3465 = vmatprep.subr.bf16.mxu1 %v5429_v55  ;;  %v5490_v55 = vld [vmem:[#allocation16 + $0xd0] ss:$8 sps:$4 sm:$0xff]  }
 0x6d6   :  { %3466 = vmatpush2.bf16.msra.mxu1 %v5427_v57  ;;  %v5498_v57 = vld [vmem:[#allocation16 + $0xc4] ss:$8 sps:$4 sm:$0xff]  }
 0x6d7   :  { %3925 = vmatprep.subr.bf16.mxu1 %v5435_v60  ;;  %v5496_v60 = vld [vmem:[#allocation16 + $0xc0] ss:$8 sps:$4 sm:$0xff]  }
 0x759   :  { %v2975_v1 = vpop.f32.mrf.mxu1 }
 0x75a   :  { %v2976_v2 = vadd.f32 %v2975_v1, %v2854_v63  ;;  %v5504_v63 = vld [vmem:[#allocation16 + $0xb4] ss:$8 sps:$4 sm:$0xff]   ;;  %v5502_v1 = vld [vmem:[#allocation16 + $0xb0] ss:$8 sps:$4 sm:$0xff]  }
 0x75b   :  { %v2977_v3 = vpop.f32.mrf.mxu1 }
 0x75c   :  { %v2982_v4 = vmul.f32 0.2, %v2976_v2  ;;  %v2978_v5 = vadd.f32 %v2977_v3, %v2858_v0  ;;  %v5507_v0 = vld [vmem:[#allocation16 + $0x1b4] ss:$8 sps:$4 sm:$0xff]   ;;  %v5510_v3 = vld [vmem:[#allocation16 + $0xa4] ss:$8 sps:$4 sm:$0xff]  }
 0x75d   :  { %v2979_v6 = vpop.f32.mrf.mxu1 }
 0x75e   :  { %v2983_v7 = vmul.f32 0.2, %v2978_v5  ;;  %v2984_v8 = vmax.f32 %v2976_v2, %v2982_v4  ;;  %v5505_v2 = vld [vmem:[#allocation16 + $0x1b0] ss:$8 sps:$4 sm:$0xff]   ;;  %v5513_v4 = vld [vmem:[#allocation16 + $0x1a4] ss:$8 sps:$4 sm:$0xff]  }
 0x75f   :  { %v2980_v9 = vpop.f32.mrf.mxu1  ;;  %v5511_v6 = vld [vmem:[#allocation16 + $0x1a0] ss:$8 sps:$4 sm:$0xff]  }
 0x760   :  { %v2985_v10 = vmax.f32 %v2978_v5, %v2983_v7  ;;  %v2986_v13 = vpack.c.bf16 %v2984_v8, %v2984_v8  ;;  %v5508_v5 = vld [vmem:[#allocation16 + $0xa0] ss:$8 sps:$4 sm:$0xff]   ;;  %v5516_v7 = vld [vmem:[#allocation16 + $0x94] ss:$8 sps:$4 sm:$0xff]   ;;  %v5514_v9 = vld [vmem:[#allocation16 + $0x90] ss:$8 sps:$4 sm:$0xff]  }
 0x761   :  { %v5519_v8 = vld [vmem:[#allocation16 + $0x194] ss:$8 sps:$4 sm:$0xff]  }
 0x762   :  { %v2987_v11 = vpack.c.bf16 %v2985_v10, %v2985_v10  ;;  %v5517_v10 = vld [vmem:[#allocation16 + $0x190] ss:$8 sps:$4 sm:$0xff]  }
 0x764   :  { %3426 = vmatprep.mubr.bf16.mxu0 %v2987_v11  ;;  %3467 = vmatprep.mubr.bf16.mxu1 %v2987_v11  ;;  %v5522_v11 = vld [vmem:[#allocation16 + $0x84] ss:$8 sps:$4 sm:$0xff]  }
 0x765   :  { %3427 = vmatmul.mubr.bf16.vlgmr.msra.gmra.mxu0 %v2986_v13  ;;  %3468 = vmatmul.mubr.bf16.vlgmr.msra.gmra.mxu1 %v2986_v13  ;;  %v5523_v13 = vld [vmem:[#allocation16 + $0x180] ss:$8 sps:$4 sm:$0xff]  }
 0x766   :  { %3885 = vmatpush1.bf16.msra.mxu0 %v5430_v38  ;;  %3926 = vmatpush1.bf16.msra.mxu1 %v5433_v12  ;;  %v5525_v38 = vld [vmem:[#allocation16 + $0x184] ss:$8 sps:$4 sm:$0xff]   ;;  %v5520_v12 = vld [vmem:[#allocation16 + $0x80] ss:$8 sps:$4 sm:$0xff]  }
 0x767   :  { %3886 = vmatprep.subr.bf16.mxu0 %v5438_v14  ;;  %3927 = vmatprep.subr.bf16.mxu1 %v5441_v15  ;;  %v5528_v14 = vld [vmem:[#allocation17 + $0x74] ss:$8 sps:$4 sm:$0xff]   ;;  %v3052_v15 = vld [vmem:[%s6176_s19] sm:$0xf] }
 0x76a   :  { %3887 = vmatpush1.bf16.msra.mxu0 %v5436_v16  ;;  %3928 = vmatpush1.bf16.msra.mxu1 %v5439_v17  ;;  %v3057_v16 = vrot.slane %v3052_v15, %v6030_v39  ;;  %v3065_v17 = vrot.slane %v3052_v15, %v6041_v59 }
 0x76b   :  { %3888 = vmatprep.subr.bf16.mxu0 %v5444_v18  ;;  %3929 = vmatprep.subr.bf16.mxu1 %v5447_v19  ;;  %v3061_v18 = vrot.slane %v3052_v15, %v6036_v41  ;;  %v3069_v19 = vrot.slane %v3052_v15, %v6047_v61 }
 0x76e   :  { %3889 = vmatpush1.bf16.msra.mxu0 %v5442_v20  ;;  %3930 = vmatpush1.bf16.msra.mxu1 %v5445_v21 }
 0x76f   :  { %3890 = vmatprep.subr.bf16.mxu0 %v5450_v22  ;;  %3931 = vmatprep.subr.bf16.mxu1 %v5453_v23 }
 0x772   :  { %3891 = vmatpush1.bf16.msra.mxu0 %v5448_v24  ;;  %3932 = vmatpush1.bf16.msra.mxu1 %v5451_v27 }
 0x773   :  { %3892 = vmatprep.subr.bf16.mxu0 %v5456_v28  ;;  %3933 = vmatprep.subr.bf16.mxu1 %v5459_v29 }
 0x776   :  { %3893 = vmatpush1.bf16.msra.mxu0 %v5454_v30  ;;  %3934 = vmatpush1.bf16.msra.mxu1 %v5457_v31 }
 0x777   :  { %3894 = vmatprep.subr.bf16.mxu0 %v5462_v32  ;;  %3935 = vmatprep.subr.bf16.mxu1 %v5465_v33 }
 0x77a   :  { %3895 = vmatpush1.bf16.msra.mxu0 %v5460_v34  ;;  %3936 = vmatpush1.bf16.msra.mxu1 %v5463_v35 }
 0x77b   :  { %3896 = vmatprep.subr.bf16.mxu0 %v5468_v36  ;;  %3937 = vmatprep.subr.bf16.mxu1 %v5471_v37 }
 0x77e   :  { %3897 = vmatpush1.bf16.msra.mxu0 %v5466_v40  ;;  %3938 = vmatpush1.bf16.msra.mxu1 %v5469_v42 }
 0x77f   :  { %3898 = vmatprep.subr.bf16.mxu0 %v5474_v43  ;;  %3939 = vmatprep.subr.bf16.mxu1 %v5477_v25 }
 0x782   :  { %3899 = vmatpush1.bf16.msra.mxu0 %v5472_v26  ;;  %3940 = vmatpush1.bf16.msra.mxu1 %v5475_v44  ;;  %v5526_v26 = vld [vmem:[#allocation17 + $0x70] ss:$8 sps:$4 sm:$0xff]  }
 0x783   :  { %3900 = vmatprep.subr.bf16.mxu0 %v5480_v45  ;;  %3941 = vmatprep.subr.bf16.mxu1 %v5483_v46  ;;  %v5531_v46 = vld [vmem:[#allocation17 + $0x64] ss:$8 sps:$4 sm:$0xff]  }
 0x786   :  { %3901 = vmatpush2.bf16.msra.mxu0 %v5478_v47  ;;  %3942 = vmatpush2.bf16.msra.mxu1 %v5481_v48  ;;  %v5529_v47 = vld [vmem:[#allocation17 + $0x60] ss:$8 sps:$4 sm:$0xff]   ;;  %v5534_v48 = vld [vmem:[#allocation17 + $0x54] ss:$8 sps:$4 sm:$0xff]  }
 0x787   :  { %3902 = vmatprep.subr.bf16.mxu0 %v5486_v49  ;;  %3943 = vmatprep.subr.bf16.mxu1 %v5489_v50  ;;  %v5532_v49 = vld [vmem:[#allocation17 + $0x50] ss:$8 sps:$4 sm:$0xff]   ;;  %v5537_v50 = vld [vmem:[#allocation17 + $0x44] ss:$8 sps:$4 sm:$0xff]  }
 0x78a   :  { %3903 = vmatpush2.bf16.msra.mxu0 %v5484_v51  ;;  %3944 = vmatpush2.bf16.msra.mxu1 %v5487_v52  ;;  %v5535_v51 = vld [vmem:[#allocation17 + $0x40] ss:$8 sps:$4 sm:$0xff]   ;;  %v5540_v52 = vld [vmem:[#allocation17 + $0x34] ss:$8 sps:$4 sm:$0xff]  }
 0x78b   :  { %3904 = vmatprep.subr.bf16.mxu0 %v5492_v53  ;;  %3945 = vmatprep.subr.bf16.mxu1 %v5495_v54  ;;  %v5538_v53 = vld [vmem:[#allocation17 + $0x30] ss:$8 sps:$4 sm:$0xff]   ;;  %v5543_v54 = vld [vmem:[#allocation17 + $0x24] ss:$8 sps:$4 sm:$0xff]  }
 0x78e   :  { %3905 = vmatpush2.bf16.msra.mxu0 %v5490_v55  ;;  %3946 = vmatpush2.bf16.msra.mxu1 %v5493_v56  ;;  %v5541_v55 = vld [vmem:[#allocation17 + $0x20] ss:$8 sps:$4 sm:$0xff]   ;;  %v5546_v56 = vld [vmem:[#allocation17 + $0x14] ss:$8 sps:$4 sm:$0xff]  }
 0x78f   :  { %3906 = vmatprep.subr.bf16.mxu0 %v5498_v57  ;;  %3947 = vmatprep.subr.bf16.mxu1 %v5501_v58  ;;  %v5544_v57 = vld [vmem:[#allocation17 + $0x10] ss:$8 sps:$4 sm:$0xff]   ;;  %v5549_v58 = vld [vmem:[#allocation17 + $0x4] ss:$8 sps:$4 sm:$0xff]  }
 0x792   :  { %3907 = vmatpush2.bf16.msra.mxu0 %v5496_v60  ;;  %3948 = vmatpush2.bf16.msra.mxu1 %v5499_v62  ;;  %v5547_v60 = vld [vmem:[#allocation17] ss:$8 sps:$4 sm:$0xff]   ;;  %v5552_v62 = vld [vmem:[#allocation17 + $0xf4] ss:$8 sps:$4 sm:$0xff]  }
 0x793   :  { %3908 = vmatprep.subr.bf16.mxu0 %v5504_v63  ;;  %3949 = vmatprep.subr.bf16.mxu1 %v5507_v0  ;;  %v5550_v63 = vld [vmem:[#allocation17 + $0xf0] ss:$8 sps:$4 sm:$0xff]   ;;  %v5555_v0 = vld [vmem:[#allocation17 + $0xe4] ss:$8 sps:$4 sm:$0xff]  }
 0x796   :  { %3909 = vmatpush2.bf16.msra.mxu0 %v5502_v1  ;;  %3950 = vmatpush2.bf16.msra.mxu1 %v5505_v2  ;;  %v5553_v1 = vld [vmem:[#allocation17 + $0xe0] ss:$8 sps:$4 sm:$0xff]   ;;  %v5558_v2 = vld [vmem:[#allocation17 + $0xd4] ss:$8 sps:$4 sm:$0xff]  }
 0x797   :  { %3910 = vmatprep.subr.bf16.mxu0 %v5510_v3  ;;  %3951 = vmatprep.subr.bf16.mxu1 %v5513_v4  ;;  %v5556_v3 = vld [vmem:[#allocation17 + $0xd0] ss:$8 sps:$4 sm:$0xff]   ;;  %v5561_v4 = vld [vmem:[#allocation17 + $0xc4] ss:$8 sps:$4 sm:$0xff]  }
 0x79a   :  { %3911 = vmatpush2.bf16.msra.mxu0 %v5508_v5  ;;  %3952 = vmatpush2.bf16.msra.mxu1 %v5511_v6  ;;  %v5559_v5 = vld [vmem:[#allocation17 + $0xc0] ss:$8 sps:$4 sm:$0xff]   ;;  %v5564_v6 = vld [vmem:[#allocation17 + $0xb4] ss:$8 sps:$4 sm:$0xff]  }
 0x79b   :  { %3912 = vmatprep.subr.bf16.mxu0 %v5516_v7  ;;  %3953 = vmatprep.subr.bf16.mxu1 %v5519_v8  ;;  %v5562_v7 = vld [vmem:[#allocation17 + $0xb0] ss:$8 sps:$4 sm:$0xff]   ;;  %v5567_v8 = vld [vmem:[#allocation17 + $0xa4] ss:$8 sps:$4 sm:$0xff]  }
 0x79e   :  { %3913 = vmatpush2.bf16.msra.mxu0 %v5514_v9  ;;  %3954 = vmatpush2.bf16.msra.mxu1 %v5517_v10  ;;  %v5565_v9 = vld [vmem:[#allocation17 + $0xa0] ss:$8 sps:$4 sm:$0xff]   ;;  %v5570_v10 = vld [vmem:[#allocation17 + $0x94] ss:$8 sps:$4 sm:$0xff]  }
 0x79f   :  { %3914 = vmatprep.subr.bf16.mxu0 %v5522_v11  ;;  %3955 = vmatprep.subr.bf16.mxu1 %v5525_v38  ;;  %v5568_v11 = vld [vmem:[#allocation17 + $0x90] ss:$8 sps:$4 sm:$0xff]   ;;  %v5573_v38 = vld [vmem:[#allocation17 + $0x84] ss:$8 sps:$4 sm:$0xff]  }
 0x7a2   :  { %3915 = vmatpush2.bf16.msra.mxu0 %v5520_v12  ;;  %3956 = vmatpush2.bf16.msra.mxu1 %v5523_v13  ;;  %v5571_v12 = vld [vmem:[#allocation17 + $0x80] ss:$8 sps:$4 sm:$0xff]  }
 0x7a3   :  { %4176 = vmatprep.subr.bf16.mxu0 %v5528_v14  ;;  %v3552_v13 = vld [vmem:[%s6178_s21] sm:$0x3] }
 0x7a4   :  { %v3557_v14 = vrot.slane %v3552_v13, %v6030_v39  ;;  %v3561_v15 = vrot.slane %v3552_v13, %v6036_v41 }
 0x825   :  { %v3428_v20 = vpop.f32.mrf.mxu0  ;;  %v3469_v21 = vpop.f32.mrf.mxu1 }
 0x826   :  { %v3429_v22 = vadd.f32 %v3428_v20, %v3057_v16  ;;  %v3470_v23 = vadd.f32 %v3469_v21, %v3065_v17 }
 0x827   :  { %v3430_v24 = vpop.f32.mrf.mxu0  ;;  %v3471_v27 = vpop.f32.mrf.mxu1 }
 0x828   :  { %v3476_v28 = vmul.f32 0.2, %v3429_v22  ;;  %v3478_v29 = vmul.f32 0.2, %v3470_v23  ;;  %v3431_v30 = vadd.f32 %v3430_v24, %v3061_v18  ;;  %v3472_v31 = vadd.f32 %v3471_v27, %v3069_v19 }
 0x829   :  { %v3432_v32 = vpop.f32.mrf.mxu0  ;;  %v3473_v33 = vpop.f32.mrf.mxu1 }
 0x82a   :  { %v3477_v34 = vmul.f32 0.2, %v3431_v30  ;;  %v3479_v35 = vmul.f32 0.2, %v3472_v31  ;;  %v3480_v36 = vmax.f32 %v3429_v22, %v3476_v28  ;;  %v3482_v59 = vmax.f32 %v3470_v23, %v3478_v29 }
 0x82b   :  { %v3433_v37 = vpop.f32.mrf.mxu0  ;;  %v3474_v40 = vpop.f32.mrf.mxu1 }
 0x82c   :  { %v3481_v42 = vmax.f32 %v3431_v30, %v3477_v34  ;;  %v3483_v61 = vmax.f32 %v3472_v31, %v3479_v35  ;;  %v3484_v44 = vpack.c.bf16 %v3480_v36, %v3480_v36  ;;  %v3486_v45 = vpack.c.bf16 %v3482_v59, %v3482_v59  ;;  %v4004_v36 = vld [vmem:[%s6180_s23] sm:$0x3] }
 0x82d   :  { %v4009_v59 = vrot.slane %v4004_v36, %v6030_v39  ;;  %v4013_v37 = vrot.slane %v4004_v36, %v6036_v41 }
 0x82e   :  { %v3485_v43 = vpack.c.bf16 %v3481_v42, %v3481_v42  ;;  %v3487_v25 = vpack.c.bf16 %v3483_v61, %v3483_v61 }
 0x830   :  { %3916 = vmatprep.mubr.bf16.mxu0 %v3485_v43  ;;  %3957 = vmatprep.mubr.bf16.mxu1 %v3487_v25 }
 0x831   :  { %3917 = vmatmul.mubr.bf16.vlgmr.msra.gmra.mxu0 %v3484_v44  ;;  %3958 = vmatmul.mubr.bf16.vlgmr.msra.gmra.mxu1 %v3486_v45 }
 0x832   :  { %4177 = vmatpush1.bf16.msra.mxu0 %v5526_v26 }
 0x833   :  { %4178 = vmatprep.subr.bf16.mxu0 %v5531_v46 }
 0x836   :  { %4179 = vmatpush1.bf16.msra.mxu0 %v5529_v47 }
 0x837   :  { %4180 = vmatprep.subr.bf16.mxu0 %v5534_v48 }
 0x83a   :  { %4181 = vmatpush1.bf16.msra.mxu0 %v5532_v49 }
 0x83b   :  { %4182 = vmatprep.subr.bf16.mxu0 %v5537_v50 }
 0x83e   :  { %4183 = vmatpush1.bf16.msra.mxu0 %v5535_v51 }
 0x83f   :  { %4184 = vmatprep.subr.bf16.mxu0 %v5540_v52 }
 0x842   :  { %4185 = vmatpush1.bf16.msra.mxu0 %v5538_v53 }
 0x843   :  { %4186 = vmatprep.subr.bf16.mxu0 %v5543_v54 }
 0x846   :  { %4187 = vmatpush1.bf16.msra.mxu0 %v5541_v55 }
 0x847   :  { %4188 = vmatprep.subr.bf16.mxu0 %v5546_v56 }
 0x84a   :  { %4189 = vmatpush1.bf16.msra.mxu0 %v5544_v57 }
 0x84b   :  { %4190 = vmatprep.subr.bf16.mxu0 %v5549_v58 }
 0x84e   :  { %4191 = vmatpush1.bf16.msra.mxu0 %v5547_v60 }
 0x84f   :  { %4192 = vmatprep.subr.bf16.mxu0 %v5552_v62 }
 0x852   :  { %4193 = vmatpush2.bf16.msra.mxu0 %v5550_v63 }
 0x853   :  { %4194 = vmatprep.subr.bf16.mxu0 %v5555_v0 }
 0x856   :  { %4195 = vmatpush2.bf16.msra.mxu0 %v5553_v1 }
 0x857   :  { %4196 = vmatprep.subr.bf16.mxu0 %v5558_v2 }
 0x85a   :  { %4197 = vmatpush2.bf16.msra.mxu0 %v5556_v3 }
 0x85b   :  { %4198 = vmatprep.subr.bf16.mxu0 %v5561_v4 }
 0x85e   :  { %4199 = vmatpush2.bf16.msra.mxu0 %v5559_v5 }
 0x85f   :  { %4200 = vmatprep.subr.bf16.mxu0 %v5564_v6 }
 0x862   :  { %4201 = vmatpush2.bf16.msra.mxu0 %v5562_v7 }
 0x863   :  { %4202 = vmatprep.subr.bf16.mxu0 %v5567_v8 }
 0x866   :  { %4203 = vmatpush2.bf16.msra.mxu0 %v5565_v9 }
 0x867   :  { %4204 = vmatprep.subr.bf16.mxu0 %v5570_v10 }
 0x86a   :  { %4205 = vmatpush2.bf16.msra.mxu0 %v5568_v11 }
 0x86b   :  { %4206 = vmatprep.subr.bf16.mxu0 %v5573_v38 }
 0x86e   :  { %4207 = vmatpush2.bf16.msra.mxu0 %v5571_v12 }
 0x8f1   :  { %v3918_v16 = vpop.f32.mrf.mxu0  ;;  %v3959_v17 = vpop.f32.mrf.mxu1 }
 0x8f2   :  { %v3919_v18 = vadd.f32 %v3918_v16, %v3557_v14 }
 0x8f3   :  { %v3920_v19 = vpop.f32.mrf.mxu0  ;;  %v3961_v20 = vpop.f32.mrf.mxu1 }
 0x8f4   :  { %v3960_v21 = vadd.f32 %v3959_v17, %v3919_v18  ;;  %v3921_v22 = vadd.f32 %v3920_v19, %v3561_v15 }
 0x8f5   :  { %v3922_v23 = vpop.f32.mrf.mxu0  ;;  %v3963_v24 = vpop.f32.mrf.mxu1 }
 0x8f6   :  { %v3966_v27 = vmul.f32 0.2, %v3960_v21  ;;  %v3962_v28 = vadd.f32 %v3961_v20, %v3921_v22 }
 0x8f7   :  { %v3923_v29 = vpop.f32.mrf.mxu0  ;;  %v3964_v30 = vpop.f32.mrf.mxu1 }
 0x8f8   :  { %v3967_v31 = vmul.f32 0.2, %v3962_v28  ;;  %v3968_v32 = vmax.f32 %v3960_v21, %v3966_v27 }
 0x8fa   :  { %v3969_v33 = vmax.f32 %v3962_v28, %v3967_v31  ;;  %v3970_v35 = vpack.c.bf16 %v3968_v32, %v3968_v32 }
 0x8fc   :  { %v3971_v34 = vpack.c.bf16 %v3969_v33, %v3969_v33 }
 0x8fe   :  { %4208 = vmatprep.mubr.bf16.mxu0 %v3971_v34 }
 0x8ff   :  { %4209 = vmatmul.mubr.bf16.vlgmr.msra.gmra.mxu0 %v3970_v35 }
 0x9bf   :  { %v4210_v40 = vpop.f32.mrf.mxu0 }
 0x9c0   :  { %v4211_v42 = vadd.f32 %v4210_v40, %v4009_v59 }
 0x9c1   :  { %v4212_v61 = vpop.f32.mrf.mxu0 }
 0x9c2   :  { %4217 = vst [vmem:[#allocation19] sm:$0xff] %v4211_v42  ;;  %v4213_v43 = vadd.f32 %v4212_v61, %v4013_v37 }
 0x9c3   :  { %v4214_v25 = vpop.f32.mrf.mxu0 }
 0x9c4   :  { %4218 = vst [vmem:[#allocation19 + $0x8] sm:$0xff] %v4213_v43 }
 0x9c5   :  { %v4215_v26 = vpop.f32.mrf.mxu0 }
 0x9c6   :  { %5785 = shalt.err (!%p5782_p12)
}
 0x9c7   :  { %4228 = dma.vmem_to_hbm [thread:$0]  %s4226_s22, 256, %s6181_s24, [#allocation4]  }
 0x9c8   :  { %5806 = dma.done.wait [#allocation4], 256  }
 0x9c9   :  { %5807 = vsyncadd [#allocation4], 4294967040 }
 0x9ca   :  { %4236 = vsyncpa [#allocation3], 1 }
 0x9cb   :  { %4237 = vsyncpa [#allocation6], 1 }
 0x9cc   :  { %4238 = vsyncpa [#allocation9], 1 }
 0x9cd   :  { %4239 = vsyncpa [#allocation12], 1 }
 0x9ce   :  { %4240 = vsyncpa [#allocation15], 1 }
 0x9cf   :  { %4241 = vsyncpa [#allocation18], 1 }
 0x9d0   :  { %4242 = vsyncpa [#allocation4], 1 }

</bundles_post_ra>
